<compile_context>
chip_gen: v7x
topology: tpu7x:2x2x1
jax: 0.10.0
libtpu: 0.0.40
codegen_flags: <defaults>
</compile_context>

<pallas_src>
import math
import functools

import jax
import jax.numpy as jnp
from jax.experimental import pallas as pl
from jax.experimental.pallas import tpu as pltpu

_BN_EPS = 1e-5
_VMEM_LIMIT = 32 * 1024 * 1024   # per-step working set is ~<16 MiB; safe on v5e/v6e/v7x
_K_SINGLE_MAX = 2048             # collapse the K grid axis whenever Kp fits one block


def _round_up(x, m):
    return (x + m - 1) // m * m


def _pick_tile_m(M):
    if M >= 1024:
        return 512
    if M >= 512:
        return 256
    if M >= 128:
        return 128
    return _round_up(max(M, 16), 16)


def _pick_tile_n(Np):
    if Np <= 512:
        return Np
    for t in (512, 256, 128):
        if Np % t == 0:
            return t
    return 128


# ----------------------------------------------------------------------------
# Pallas matmul kernel (prologue BN+ReLU, epilogue bias/BN/ReLU fused)
# ----------------------------------------------------------------------------
def _make_matmul_kernel(has_pro, relu, multi_k):
    def kernel(*refs):
        if multi_k:
            refs, acc_ref = refs[:-1], refs[-1]
        else:
            acc_ref = None
        if has_pro:
            a_ref, b_ref, ps_ref, pt_ref, es_ref, et_ref, o_ref = refs
        else:
            a_ref, b_ref, es_ref, et_ref, o_ref = refs
            ps_ref = pt_ref = None

        def load_a():
            a = a_ref[...]
            if has_pro:
                # BN + ReLU of the *preceding* norm/relu, applied on the fly (VPU slack).
                a = jnp.maximum(a.astype(jnp.float32) * ps_ref[...] + pt_ref[...], 0.0)
                a = a.astype(jnp.bfloat16)
            return a

        def epilogue(acc):
            y = acc * es_ref[...] + et_ref[...]   # conv bias pre-folded into et
            if relu:
                y = jnp.maximum(y, 0.0)
            o_ref[...] = y.astype(o_ref.dtype)

        if not multi_k:
            epilogue(jnp.dot(load_a(), b_ref[...],
                             preferred_element_type=jnp.float32))
        else:
            k = pl.program_id(2)

            @pl.when(k == 0)
            def _():
                acc_ref[...] = jnp.zeros_like(acc_ref)

            acc_ref[...] += jnp.dot(load_a(), b_ref[...],
                                    preferred_element_type=jnp.float32)

            @pl.when(k == pl.num_programs(2) - 1)
            def _():
                epilogue(acc_ref[...])

    return kernel


def matmul_fused(a, b, *, eshift, escale=None, pscale=None, pshift=None,
                 relu=False, out_dtype=jnp.bfloat16):
    """out = epilogue( prologue(a[:, :K]) @ b ).

    a: (M, Ka) activations (bf16 preferred). Only the first Kp = round_up(K,128)
       columns are read; extra columns (e.g. the dense-block channel buffer) are ignored.
    b: (K, N) weight.
    prologue (optional, per-K): relu(a*pscale + pshift)  -- the preceding BN+ReLU.
    epilogue (per-N): y = acc*escale + eshift (+ optional ReLU). Conv bias must be
       pre-folded into eshift by the caller (eshift = bn_shift + bias*bn_scale).
    """
    M, Ka = a.shape
    K, N = b.shape

    Kp = _round_up(K, 128)
    Np = _round_up(N, 128)
    TN = _pick_tile_n(Np)
    TM = _pick_tile_m(M)
    Mp = _round_up(M, TM)
    multi_k = Kp > _K_SINGLE_MAX
    if multi_k:
        TK = 512 if Kp % 512 == 0 else (256 if Kp % 256 == 0 else 128)
    else:
        TK = Kp

    has_pro = pscale is not None
    if escale is None:
        escale = jnp.ones((N,), jnp.float32)

    a_p = a.astype(jnp.bfloat16)
    pad_rows = Mp - M
    pad_cols = max(0, Kp - Ka)
    if pad_rows or pad_cols:
        a_p = jnp.pad(a_p, ((0, pad_rows), (0, pad_cols)))
    # Zero-padded K region is harmless: B rows (and prologue scale/shift) are zero there.
    b_p = jnp.pad(b.astype(jnp.bfloat16), ((0, Kp - K), (0, Np - N)))
    es_p = jnp.pad(escale.astype(jnp.float32), (0, Np - N)).reshape(1, Np)
    et_p = jnp.pad(eshift.astype(jnp.float32), (0, Np - N)).reshape(1, Np)

    inputs = [a_p, b_p]
    if has_pro:
        ps_p = jnp.pad(pscale.astype(jnp.float32), (0, Kp - K)).reshape(1, Kp)
        pt_p = jnp.pad(pshift.astype(jnp.float32), (0, Kp - K)).reshape(1, Kp)
        inputs += [ps_p, pt_p]
    inputs += [es_p, et_p]

    if not multi_k:
        grid = (Mp // TM, Np // TN)
        in_specs = [
            pl.BlockSpec((TM, TK), lambda i, j: (i, 0)),
            pl.BlockSpec((TK, TN), lambda i, j: (0, j)),   # weight VMEM-resident over M
        ]
        if has_pro:
            in_specs += [pl.BlockSpec((1, TK), lambda i, j: (0, 0)),
                         pl.BlockSpec((1, TK), lambda i, j: (0, 0))]
        in_specs += [pl.BlockSpec((1, TN), lambda i, j: (0, j)),
                     pl.BlockSpec((1, TN), lambda i, j: (0, j))]
        out_spec = pl.BlockSpec((TM, TN), lambda i, j: (i, j))
        scratch = []
        dims = ("parallel", "parallel")
    else:
        grid = (Mp // TM, Np // TN, Kp // TK)
        in_specs = [
            pl.BlockSpec((TM, TK), lambda i, j, k: (i, k)),
            pl.BlockSpec((TK, TN), lambda i, j, k: (k, j)),
        ]
        if has_pro:
            in_specs += [pl.BlockSpec((1, TK), lambda i, j, k: (0, k)),
                         pl.BlockSpec((1, TK), lambda i, j, k: (0, k))]
        in_specs += [pl.BlockSpec((1, TN), lambda i, j, k: (0, j)),
                     pl.BlockSpec((1, TN), lambda i, j, k: (0, j))]
        out_spec = pl.BlockSpec((TM, TN), lambda i, j, k: (i, j))
        scratch = [pltpu.VMEM((TM, TN), jnp.float32)]
        dims = ("parallel", "parallel", "arbitrary")

    cost = pl.CostEstimate(
        flops=2 * Mp * Np * Kp,
        transcendentals=0,
        bytes_accessed=(Mp * Kp + Kp * Np) * 2
        + Mp * Np * jnp.dtype(out_dtype).itemsize,
    )

    out = pl.pallas_call(
        _make_matmul_kernel(has_pro, relu, multi_k),
        out_shape=jax.ShapeDtypeStruct((Mp, Np), out_dtype),
        grid=grid,
        in_specs=in_specs,
        out_specs=out_spec,
        scratch_shapes=scratch,
        compiler_params=pltpu.CompilerParams(
            dimension_semantics=dims, vmem_limit_bytes=_VMEM_LIMIT),
        cost_estimate=cost,
    )(*inputs)
    if Mp == M and Np == N:
        return out
    return out[:M, :N]


# ----------------------------------------------------------------------------
# Pooling kernels
# ----------------------------------------------------------------------------
def _max_lead_kernel(x_ref, o_ref):
    o_ref[...] = jnp.max(x_ref[...], axis=0)


def _mean_lead_kernel(x_ref, o_ref, *, inv):
    o_ref[...] = (jnp.sum(x_ref[...].astype(jnp.float32), axis=0) * inv
                  ).astype(o_ref.dtype)


def _reduce_lead(stacked, kind):
    """Reduce a (K, M, C) stack over axis 0 (mean or max), tiled over the M axis.

    M-padding uses zeros; padded rows/channels are sliced off afterwards so the
    zero-padding is safe for both max and mean.
    """
    K, M, C = stacked.shape
    TMB = 512 if M >= 512 else _round_up(max(M, 8), 8)
    Mp = _round_up(M, TMB)
    x_p = stacked if Mp == M else jnp.pad(stacked, ((0, 0), (0, Mp - M), (0, 0)))
    if kind == "mean":
        kern = functools.partial(_mean_lead_kernel, inv=1.0 / K)
    else:
        kern = _max_lead_kernel
    out = pl.pallas_call(
        kern,
        out_shape=jax.ShapeDtypeStruct((Mp, C), stacked.dtype),
        grid=(Mp // TMB,),
        in_specs=[pl.BlockSpec((K, TMB, C), lambda i: (0, i, 0))],
        out_specs=pl.BlockSpec((TMB, C), lambda i: (i, 0)),
        compiler_params=pltpu.CompilerParams(
            dimension_semantics=("parallel",), vmem_limit_bytes=_VMEM_LIMIT),
    )(x_p)
    return out if Mp == M else out[:M]


def _gap_kernel(x_ref, s_ref, t_ref, o_ref, *, inv):
    x = x_ref[...].astype(jnp.float32)                       # (HW, NB, TC)
    y = jnp.maximum(x * s_ref[...] + t_ref[...], 0.0)        # fused norm5 + relu5
    o_ref[...] = jnp.sum(y, axis=0) * inv                    # (NB, TC)


def global_avg_pool_bn_relu(x, scale, shift):
    """relu(x*scale + shift) followed by mean over H,W. x: (N,H,W,C) -> (N,C) f32."""
    N, H, W, C = x.shape
    HW = H * W
    NB = _round_up(max(N, 8), 8)
    xr = jnp.transpose(x.reshape(N, HW, C), (1, 0, 2))       # (HW, N, C), tiny
    if NB != N:
        xr = jnp.pad(xr, ((0, 0), (0, NB - N), (0, 0)))
    TC = 512 if C % 512 == 0 else (256 if C % 256 == 0 else 128)
    s = scale.astype(jnp.float32).reshape(1, 1, C)
    t = shift.astype(jnp.float32).reshape(1, 1, C)
    out = pl.pallas_call(
        functools.partial(_gap_kernel, inv=1.0 / HW),
        out_shape=jax.ShapeDtypeStruct((NB, C), jnp.float32),
        grid=(C // TC,),
        in_specs=[pl.BlockSpec((HW, NB, TC), lambda i: (0, 0, i)),
                  pl.BlockSpec((1, 1, TC), lambda i: (0, 0, i)),
                  pl.BlockSpec((1, 1, TC), lambda i: (0, 0, i))],
        out_specs=pl.BlockSpec((NB, TC), lambda i: (0, i)),
        compiler_params=pltpu.CompilerParams(
            dimension_semantics=("parallel",), vmem_limit_bytes=_VMEM_LIMIT),
    )(xr, s, t)
    return out[:N]


# ----------------------------------------------------------------------------
# Layer helpers (JAX glue around the Pallas kernels)
# ----------------------------------------------------------------------------
def _bn_scale_shift(bn):
    gamma, beta, mean, var = bn
    scale = gamma / jnp.sqrt(var + _BN_EPS)
    shift = beta - mean * scale
    return scale, shift


def _im2col(x, kh, kw, stride, pad):
    # TODO(synk): fold the kh*kw taps into the matmul's K sweep (manual DMA / element
    # offsets) instead of materializing the patch matrix (9x traffic for 3x3 convs).
    N, H, W, C = x.shape
    xp = jnp.pad(x, ((0, 0), (pad, pad), (pad, pad), (0, 0)))
    Ho = (H + 2 * pad - kh) // stride + 1
    Wo = (W + 2 * pad - kw) // stride + 1
    cols = []
    for dy in range(kh):
        for dx in range(kw):
            cols.append(
                xp[:, dy:dy + stride * (Ho - 1) + 1:stride,
                   dx:dx + stride * (Wo - 1) + 1:stride, :]
            )
    patches = jnp.concatenate(cols, axis=-1)  # (dy, dx, c) order matches HWIO weights
    return patches.reshape(N * Ho * Wo, kh * kw * C), (N, Ho, Wo)


def conv2d_im2col(x, w_mat, bias, kh, kw, stride, pad, bn=None, relu=False):
    """Convolution via im2col + Pallas matmul; optionally fuses a BN+ReLU epilogue."""
    patches, (N, Ho, Wo) = _im2col(x, kh, kw, stride, pad)
    if bn is not None:
        s, t = _bn_scale_shift(bn)
        escale, eshift = s, t + bias * s           # BN(conv+bias) = acc*s + (t + bias*s)
    else:
        escale, eshift = None, bias
    out = matmul_fused(patches, w_mat, escale=escale, eshift=eshift, relu=relu)
    return out.reshape(N, Ho, Wo, w_mat.shape[1])


def max_pool_3x3_s2_p1(x):
    # TODO(synk): do the 9 shifted taps in-kernel (manual DMA) instead of stacking.
    N, H, W, C = x.shape
    NEG = -3.0e38  # effectively -inf; representable in bf16
    xp = jnp.pad(x, ((0, 0), (1, 1), (1, 1), (0, 0)), constant_values=NEG)
    Ho = (H + 2 - 3) // 2 + 1
    Wo = (W + 2 - 3) // 2 + 1
    sl = []
    for dy in range(3):
        for dx in range(3):
            sl.append(xp[:, dy:dy + 2 * (Ho - 1) + 1:2,
                         dx:dx + 2 * (Wo - 1) + 1:2, :])
    stacked = jnp.stack(sl, 0).reshape(9, N * Ho * Wo, C)
    return _reduce_lead(stacked, "max").reshape(N, Ho, Wo, C)


def avg_pool_2x2(x):
    N, H, W, C = x.shape
    Ho, Wo = H // 2, W // 2
    sl = [x[:, dy::2, dx::2, :][:, :Ho, :Wo, :] for dy in range(2) for dx in range(2)]
    stacked = jnp.stack(sl, 0).reshape(4, N * Ho * Wo, C)
    return _reduce_lead(stacked, "mean").reshape(N, Ho, Wo, C)


# ----------------------------------------------------------------------------
# Parameter init (deterministic, mirrors the module's __init__ shapes & rules)
# ----------------------------------------------------------------------------
def _kaiming_conv(key, kh, kw, cin, cout):
    fan_in = kh * kw * cin
    std = math.sqrt(2.0 / fan_in)
    return std * jax.random.normal(key, (kh, kw, cin, cout), jnp.float32)


def _conv_bias(key, kh, kw, cin, cout):
    bound = 1.0 / math.sqrt(kh * kw * cin)
    return jax.random.uniform(key, (cout,), jnp.float32, -bound, bound)


def _bn_params(c):
    # gamma=1, beta=0 (module init); running_mean=0, running_var=1 (PyTorch default)
    return (jnp.ones((c,), jnp.float32), jnp.zeros((c,), jnp.float32),
            jnp.zeros((c,), jnp.float32), jnp.ones((c,), jnp.float32))


def init_densenet(key, growth_rate, block_config, bn_size, theta, num_classes):
    keys = iter(jax.random.split(key, 4096))
    nk = lambda: next(keys)
    p = {"growth_rate": growth_rate}
    num_init = 2 * growth_rate
    # stem (num_classes != 10 branch): conv 7x7/s2/p3 with bias, BN, ReLU, maxpool
    p["conv0_w"] = _kaiming_conv(nk(), 7, 7, 3, num_init)
    p["conv0_b"] = _conv_bias(nk(), 7, 7, 3, num_init)
    p["norm0"] = _bn_params(num_init)

    num_feature = num_init
    blocks = []
    for bi, num_layers in enumerate(block_config):
        layers = []
        for li in range(num_layers):
            cin = num_feature + growth_rate * li
            mid = bn_size * growth_rate
            layers.append({
                "norm1": _bn_params(cin),
                "conv1_w": _kaiming_conv(nk(), 1, 1, cin, mid),
                "conv1_b": _conv_bias(nk(), 1, 1, cin, mid),
                "norm2": _bn_params(mid),
                "conv2_w": _kaiming_conv(nk(), 3, 3, mid, growth_rate),
                "conv2_b": _conv_bias(nk(), 3, 3, mid, growth_rate),
            })
        num_feature += growth_rate * num_layers
        block = {"layers": layers}
        if bi != len(block_config) - 1:
            cout = int(num_feature * theta)
            block["trans"] = {
                "norm": _bn_params(num_feature),
                "conv_w": _kaiming_conv(nk(), 1, 1, num_feature, cout),
                "conv_b": _conv_bias(nk(), 1, 1, num_feature, cout),
            }
            num_feature = cout
        blocks.append(block)
    p["blocks"] = blocks
    p["norm5"] = _bn_params(num_feature)

    bound = 1.0 / math.sqrt(num_feature)
    p["fc_w"] = jax.random.uniform(nk(), (num_feature, num_classes), jnp.float32,
                                   -bound, bound)
    # NOTE: prior is hard-coded to 7 entries (as in the reference module).
    prior = jnp.array([0.01, 0.8, 0.01, 0.01, 0.01, 0.01, 0.01], jnp.float32)
    p["fc_b"] = jnp.log(prior[:num_classes] / (1.0 - prior[:num_classes]))
    return p


def preprocess_params(p):
    """Pre-reshape conv weights to (K, N) matmul operands and pre-cast to bf16."""
    def wmat(w):  # HWIO -> (kh*kw*cin, cout), bf16
        kh, kw, ci, co = w.shape
        return w.reshape(kh * kw * ci, co).astype(jnp.bfloat16)

    q = {"growth_rate": p["growth_rate"],
         "conv0_w": wmat(p["conv0_w"]), "conv0_b": p["conv0_b"],
         "norm0": p["norm0"], "norm5": p["norm5"],
         "fc_w": p["fc_w"].astype(jnp.bfloat16), "fc_b": p["fc_b"]}
    blocks = []
    for blk in p["blocks"]:
        layers = []
        for l in blk["layers"]:
            layers.append({"norm1": l["norm1"], "norm2": l["norm2"],
                           "conv1_w": wmat(l["conv1_w"]), "conv1_b": l["conv1_b"],
                           "conv2_w": wmat(l["conv2_w"]), "conv2_b": l["conv2_b"]})
        nb = {"layers": layers}
        if "trans" in blk:
            t = blk["trans"]
            nb["trans"] = {"norm": t["norm"], "conv_w": wmat(t["conv_w"]),
                           "conv_b": t["conv_b"]}
        blocks.append(nb)
    q["blocks"] = blocks
    return q


# ----------------------------------------------------------------------------
# Forward pass
# ----------------------------------------------------------------------------
def densenet_forward(params, x_nchw):
    x = jnp.transpose(x_nchw, (0, 2, 3, 1)).astype(jnp.bfloat16)  # NCHW -> NHWC, bf16
    growth = params["growth_rate"]

    # stem: conv0 -> norm0 -> relu0 (BN+ReLU fused into the conv epilogue) -> maxpool
    x = conv2d_im2col(x, params["conv0_w"], params["conv0_b"], 7, 7, 2, 3,
                      bn=params["norm0"], relu=True)
    x = max_pool_3x3_s2_p1(x)

    last_C_tot = last_C_buf = None
    for block in params["blocks"]:
        N, H, W, C_in = x.shape
        L = len(block["layers"])
        C_tot = C_in + growth * L
        C_buf = _round_up(C_tot, 128)
        M = N * H * W
        # 128-aligned per-block channel buffer; each layer only appends its growth
        # channels (in-place dynamic_update_slice) instead of re-copying the whole map.
        feat = jnp.zeros((N, H, W, C_buf), jnp.bfloat16)
        feat = jax.lax.dynamic_update_slice(feat, x, (0, 0, 0, 0))
        c_used = C_in
        for layer in block["layers"]:
            s1, t1 = _bn_scale_shift(layer["norm1"])
            s2, t2 = _bn_scale_shift(layer["norm2"])
            a = feat.reshape(M, C_buf)
            # norm1+relu1 fused as matmul prologue; conv1 bias + norm2 + relu2 fused
            # into the epilogue -> one kernel per 1x1 conv, no standalone BN pass.
            mid = matmul_fused(a, layer["conv1_w"],
                               pscale=s1, pshift=t1,
                               escale=s2, eshift=t2 + layer["conv1_b"] * s2,
                               relu=True)
            mid = mid.reshape(N, H, W, -1)
            y = conv2d_im2col(mid, layer["conv2_w"], layer["conv2_b"], 3, 3, 1, 1)
            feat = jax.lax.dynamic_update_slice(feat, y, (0, 0, 0, c_used))
            c_used += growth
        if "trans" in block:
            tp = block["trans"]
            st, tt = _bn_scale_shift(tp["norm"])
            a = feat.reshape(M, C_buf)
            z = matmul_fused(a, tp["conv_w"], pscale=st, pshift=tt,
                             eshift=tp["conv_b"])
            z = z.reshape(N, H, W, tp["conv_w"].shape[1])
            x = avg_pool_2x2(z)
        else:
            x = feat
            last_C_tot, last_C_buf = C_tot, C_buf

    # head: norm5 + relu5 fused into the global average pool; then the fc matmul.
    s5, t5 = _bn_scale_shift(params["norm5"])
    s5 = jnp.pad(s5, (0, last_C_buf - last_C_tot))
    t5 = jnp.pad(t5, (0, last_C_buf - last_C_tot))
    pooled = global_avg_pool_bn_relu(x, s5, t5)                 # (N, C_buf) f32
    logits = matmul_fused(pooled, params["fc_w"], eshift=params["fc_b"],
                          out_dtype=jnp.float32)                # (N, num_classes)
    return logits


if __name__ == "__main__":
    key = jax.random.PRNGKey(0)
    pkey, xkey = jax.random.split(key)
    # Small but structurally faithful DenseNet-BC config (constructor parameters).
    growth_rate, block_config, bn_size, theta, num_classes = 8, (2, 2), 4, 0.5, 7
    params = preprocess_params(
        init_densenet(pkey, growth_rate, block_config, bn_size, theta, num_classes))
    x = jax.random.normal(xkey, (2, 3, 32, 32), jnp.float32)  # NCHW, PyTorch convention
    fwd = jax.jit(functools.partial(densenet_forward, params))
    out = fwd(x)
    jax.block_until_ready(out)
    assert out.shape == (2, num_classes), out.shape
    print("KERNEL_OK")
</pallas_src>

<mosaic_0001>
module attributes {stable_mosaic.version = 11 : i64} {
  func.func @kernel(%arg0: i32, %arg1: i32, %arg2: memref<256x256xbf16, #tpu.memory_space<vmem>>, %arg3: memref<256x128xbf16, #tpu.memory_space<vmem>>, %arg4: memref<1x128xf32, #tpu.memory_space<vmem>>, %arg5: memref<1x128xf32, #tpu.memory_space<vmem>>, %arg6: memref<256x128xbf16, #tpu.memory_space<vmem>>) attributes {dimension_semantics = [#tpu.dimension_semantics<parallel>, #tpu.dimension_semantics<parallel>], iteration_bounds = array<i64: 2, 1>, scalar_prefetch = 0 : i64, scratch_operands = 0 : i64, tpu.core_type = #tpu.core_type<tc>, window_params = [{transform_indices = @transform_0, window_bounds = array<i64: 256, 256>}, {transform_indices = @transform_1, window_bounds = array<i64: 256, 128>}, {transform_indices = @transform_2, window_bounds = array<i64: 1, 128>}, {transform_indices = @transform_3, window_bounds = array<i64: 1, 128>}, {transform_indices = @transform_4, window_bounds = array<i64: 256, 128>}]} {
    %c0 = arith.constant 0 : index
    %c0_0 = arith.constant 0 : index
    %0 = vector.load %arg2[%c0, %c0_0] : memref<256x256xbf16, #tpu.memory_space<vmem>>, vector<256x256xbf16>
    %c0_1 = arith.constant 0 : index
    %c0_2 = arith.constant 0 : index
    %1 = vector.load %arg3[%c0_1, %c0_2] : memref<256x128xbf16, #tpu.memory_space<vmem>>, vector<256x128xbf16>
    %cst = arith.constant dense<0.000000e+00> : vector<256x128xf32>
    %2 = tpu.matmul %0, %1, %cst {dimension_numbers = #tpu.dot_dimension_numbers<[1], [0], [0], [1], [0, 0, 1, 1], [], []>} : vector<256x256xbf16>, vector<256x128xbf16>, vector<256x128xf32> -> vector<256x128xf32>
    %c0_3 = arith.constant 0 : index
    %c0_4 = arith.constant 0 : index
    %3 = vector.load %arg4[%c0_3, %c0_4] : memref<1x128xf32, #tpu.memory_space<vmem>>, vector<1x128xf32>
    %4 = vector.broadcast %3 : vector<1x128xf32> to vector<256x128xf32>
    %5 = arith.mulf %2, %4 : vector<256x128xf32>
    %c0_5 = arith.constant 0 : index
    %c0_6 = arith.constant 0 : index
    %6 = vector.load %arg5[%c0_5, %c0_6] : memref<1x128xf32, #tpu.memory_space<vmem>>, vector<1x128xf32>
    %7 = vector.broadcast %6 : vector<1x128xf32> to vector<256x128xf32>
    %8 = arith.addf %5, %7 : vector<256x128xf32>
    %cst_7 = arith.constant 0.000000e+00 : f32
    %9 = vector.broadcast %cst_7 : f32 to vector<256x128xf32>
    %10 = arith.maximumf %8, %9 : vector<256x128xf32>
    %11 = arith.truncf %10 : vector<256x128xf32> to vector<256x128xbf16>
    %c0_8 = arith.constant 0 : index
    %c0_9 = arith.constant 0 : index
    %12 = vector.load %arg6[%c0_8, %c0_9] : memref<256x128xbf16, #tpu.memory_space<vmem>>, vector<256x128xbf16>
    tpu.vector_store %arg6[%c0_8, %c0_9], %11 {strides = array<i32>} : memref<256x128xbf16, #tpu.memory_space<vmem>>, vector<256x128xbf16>,
    return
  }
  func.func @transform_0(%arg0: i32, %arg1: i32) -> (i32, i32) {
    %c0_i32 = arith.constant 0 : i32
    %c0_i32_0 = arith.constant 0 : i32
    return %arg0, %c0_i32 : i32, i32
  }
  func.func @transform_1(%arg0: i32, %arg1: i32) -> (i32, i32) {
    %c0_i32 = arith.constant 0 : i32
    %c0_i32_0 = arith.constant 0 : i32
    return %c0_i32, %arg1 : i32, i32
  }
  func.func @transform_2(%arg0: i32, %arg1: i32) -> (i32, i32) {
    %c0_i32 = arith.constant 0 : i32
    %c0_i32_0 = arith.constant 0 : i32
    return %c0_i32, %arg1 : i32, i32
  }
  func.func @transform_3(%arg0: i32, %arg1: i32) -> (i32, i32) {
    %c0_i32 = arith.constant 0 : i32
    %c0_i32_0 = arith.constant 0 : i32
    return %c0_i32, %arg1 : i32, i32
  }
  func.func @transform_4(%arg0: i32, %arg1: i32) -> (i32, i32) {
    %c0_i32 = arith.constant 0 : i32
    return %arg0, %arg1 : i32, i32
  }
}

module attributes {stable_mosaic.version = 11 : i64} {
  func.func @_max_lead_kernel(%arg0: i32, %arg1: memref<9x128x16xbf16, #tpu.memory_space<vmem>>, %arg2: memref<128x16xbf16, #tpu.memory_space<vmem>>) attributes {dimension_semantics = [#tpu.dimension_semantics<parallel>], iteration_bounds = array<i64: 1>, scalar_prefetch = 0 : i64, scratch_operands = 0 : i64, tpu.core_type = #tpu.core_type<tc>, window_params = [{transform_indices = @transform_0, window_bounds = array<i64: 9, 128, 16>}, {transform_indices = @transform_1, window_bounds = array<i64: 128, 16>}]} {
    %c0 = arith.constant 0 : index
    %c0_0 = arith.constant 0 : index
    %c0_1 = arith.constant 0 : index
    %0 = vector.load %arg1[%c0, %c0_0, %c0_1] : memref<9x128x16xbf16, #tpu.memory_space<vmem>>, vector<9x128x16xbf16>
    %cst = arith.constant dense<0xFF80> : vector<128x16xbf16>
    %1 = vector.multi_reduction <maximumf>, %0, %cst [0] : vector<9x128x16xbf16> to vector<128x16xbf16>
    %c0_2 = arith.constant 0 : index
    %c0_3 = arith.constant 0 : index
    %2 = vector.load %arg2[%c0_2, %c0_3] : memref<128x16xbf16, #tpu.memory_space<vmem>>, vector<128x16xbf16>
    tpu.vector_store %arg2[%c0_2, %c0_3], %1 {strides = array<i32>} : memref<128x16xbf16, #tpu.memory_space<vmem>>, vector<128x16xbf16>,
    return
  }
  func.func @transform_0(%arg0: i32) -> (i32, i32, i32) {
    %c0_i32 = arith.constant 0 : i32
    %c0_i32_0 = arith.constant 0 : i32
    %c0_i32_1 = arith.constant 0 : i32
    return %c0_i32, %arg0, %c0_i32_0 : i32, i32, i32
  }
  func.func @transform_1(%arg0: i32) -> (i32, i32) {
    %c0_i32 = arith.constant 0 : i32
    %c0_i32_0 = arith.constant 0 : i32
    return %arg0, %c0_i32 : i32, i32
  }
}

module attributes {stable_mosaic.version = 11 : i64} {
  func.func @kernel(%arg0: i32, %arg1: i32, %arg2: memref<128x128xbf16, #tpu.memory_space<vmem>>, %arg3: memref<128x128xbf16, #tpu.memory_space<vmem>>, %arg4: memref<1x128xf32, #tpu.memory_space<vmem>>, %arg5: memref<1x128xf32, #tpu.memory_space<vmem>>, %arg6: memref<1x128xf32, #tpu.memory_space<vmem>>, %arg7: memref<1x128xf32, #tpu.memory_space<vmem>>, %arg8: memref<128x128xbf16, #tpu.memory_space<vmem>>) attributes {dimension_semantics = [#tpu.dimension_semantics<parallel>, #tpu.dimension_semantics<parallel>], iteration_bounds = array<i64: 1, 1>, scalar_prefetch = 0 : i64, scratch_operands = 0 : i64, tpu.core_type = #tpu.core_type<tc>, window_params = [{transform_indices = @transform_0, window_bounds = array<i64: 128, 128>}, {transform_indices = @transform_1, window_bounds = array<i64: 128, 128>}, {pipeline_mode = #tpu.pipeline_mode<synchronous>, transform_indices = @transform_2, window_bounds = array<i64: 1, 128>}, {pipeline_mode = #tpu.pipeline_mode<synchronous>, transform_indices = @transform_3, window_bounds = array<i64: 1, 128>}, {transform_indices = @transform_4, window_bounds = array<i64: 1, 128>}, {transform_indices = @transform_5, window_bounds = array<i64: 1, 128>}, {transform_indices = @transform_6, window_bounds = array<i64: 128, 128>}]} {
    %c0 = arith.constant 0 : index
    %c0_0 = arith.constant 0 : index
    %0 = vector.load %arg2[%c0, %c0_0] : memref<128x128xbf16, #tpu.memory_space<vmem>>, vector<128x128xbf16>
    %1 = arith.extf %0 : vector<128x128xbf16> to vector<128x128xf32>
    %c0_1 = arith.constant 0 : index
    %c0_2 = arith.constant 0 : index
    %2 = vector.load %arg4[%c0_1, %c0_2] : memref<1x128xf32, #tpu.memory_space<vmem>>, vector<1x128xf32>
    %3 = vector.broadcast %2 : vector<1x128xf32> to vector<128x128xf32>
    %4 = arith.mulf %1, %3 : vector<128x128xf32>
    %c0_3 = arith.constant 0 : index
    %c0_4 = arith.constant 0 : index
    %5 = vector.load %arg5[%c0_3, %c0_4] : memref<1x128xf32, #tpu.memory_space<vmem>>, vector<1x128xf32>
    %6 = vector.broadcast %5 : vector<1x128xf32> to vector<128x128xf32>
    %7 = arith.addf %4, %6 : vector<128x128xf32>
    %cst = arith.constant 0.000000e+00 : f32
    %8 = vector.broadcast %cst : f32 to vector<128x128xf32>
    %9 = arith.maximumf %7, %8 : vector<128x128xf32>
    %10 = arith.truncf %9 : vector<128x128xf32> to vector<128x128xbf16>
    %c0_5 = arith.constant 0 : index
    %c0_6 = arith.constant 0 : index
    %11 = vector.load %arg3[%c0_5, %c0_6] : memref<128x128xbf16, #tpu.memory_space<vmem>>, vector<128x128xbf16>
    %cst_7 = arith.constant dense<0.000000e+00> : vector<128x128xf32>
    %12 = tpu.matmul %10, %11, %cst_7 {dimension_numbers = #tpu.dot_dimension_numbers<[1], [0], [0], [1], [0, 0, 1, 1], [], []>} : vector<128x128xbf16>, vector<128x128xbf16>, vector<128x128xf32> -> vector<128x128xf32>
    %c0_8 = arith.constant 0 : index
    %c0_9 = arith.constant 0 : index
    %13 = vector.load %arg6[%c0_8, %c0_9] : memref<1x128xf32, #tpu.memory_space<vmem>>, vector<1x128xf32>
    %14 = vector.broadcast %13 : vector<1x128xf32> to vector<128x128xf32>
    %15 = arith.mulf %12, %14 : vector<128x128xf32>
    %c0_10 = arith.constant 0 : index
    %c0_11 = arith.constant 0 : index
    %16 = vector.load %arg7[%c0_10, %c0_11] : memref<1x128xf32, #tpu.memory_space<vmem>>, vector<1x128xf32>
    %17 = vector.broadcast %16 : vector<1x128xf32> to vector<128x128xf32>
    %18 = arith.addf %15, %17 : vector<128x128xf32>
    %cst_12 = arith.constant 0.000000e+00 : f32
    %19 = vector.broadcast %cst_12 : f32 to vector<128x128xf32>
    %20 = arith.maximumf %18, %19 : vector<128x128xf32>
    %21 = arith.truncf %20 : vector<128x128xf32> to vector<128x128xbf16>
    %c0_13 = arith.constant 0 : index
    %c0_14 = arith.constant 0 : index
    %22 = vector.load %arg8[%c0_13, %c0_14] : memref<128x128xbf16, #tpu.memory_space<vmem>>, vector<128x128xbf16>
    tpu.vector_store %arg8[%c0_13, %c0_14], %21 {strides = array<i32>} : memref<128x128xbf16, #tpu.memory_space<vmem>>, vector<128x128xbf16>,
    return
  }
  func.func @transform_0(%arg0: i32, %arg1: i32) -> (i32, i32) {
    %c0_i32 = arith.constant 0 : i32
    %c0_i32_0 = arith.constant 0 : i32
    return %arg0, %c0_i32 : i32, i32
  }
  func.func @transform_1(%arg0: i32, %arg1: i32) -> (i32, i32) {
    %c0_i32 = arith.constant 0 : i32
    %c0_i32_0 = arith.constant 0 : i32
    return %c0_i32, %arg1 : i32, i32
  }
  func.func @transform_2(%arg0: i32, %arg1: i32) -> (i32, i32) {
    %c0_i32 = arith.constant 0 : i32
    %c0_i32_0 = arith.constant 0 : i32
    %c0_i32_1 = arith.constant 0 : i32
    return %c0_i32, %c0_i32_0 : i32, i32
  }
  func.func @transform_3(%arg0: i32, %arg1: i32) -> (i32, i32) {
    %c0_i32 = arith.constant 0 : i32
    %c0_i32_0 = arith.constant 0 : i32
    %c0_i32_1 = arith.constant 0 : i32
    return %c0_i32, %c0_i32_0 : i32, i32
  }
  func.func @transform_4(%arg0: i32, %arg1: i32) -> (i32, i32) {
    %c0_i32 = arith.constant 0 : i32
    %c0_i32_0 = arith.constant 0 : i32
    return %c0_i32, %arg1 : i32, i32
  }
  func.func @transform_5(%arg0: i32, %arg1: i32) -> (i32, i32) {
    %c0_i32 = arith.constant 0 : i32
    %c0_i32_0 = arith.constant 0 : i32
    return %c0_i32, %arg1 : i32, i32
  }
  func.func @transform_6(%arg0: i32, %arg1: i32) -> (i32, i32) {
    %c0_i32 = arith.constant 0 : i32
    return %arg0, %arg1 : i32, i32
  }
}

module attributes {stable_mosaic.version = 11 : i64} {
  func.func @kernel(%arg0: i32, %arg1: i32, %arg2: memref<128x384xbf16, #tpu.memory_space<vmem>>, %arg3: memref<384x128xbf16, #tpu.memory_space<vmem>>, %arg4: memref<1x128xf32, #tpu.memory_space<vmem>>, %arg5: memref<1x128xf32, #tpu.memory_space<vmem>>, %arg6: memref<128x128xbf16, #tpu.memory_space<vmem>>) attributes {dimension_semantics = [#tpu.dimension_semantics<parallel>, #tpu.dimension_semantics<parallel>], iteration_bounds = array<i64: 1, 1>, scalar_prefetch = 0 : i64, scratch_operands = 0 : i64, tpu.core_type = #tpu.core_type<tc>, window_params = [{transform_indices = @transform_0, window_bounds = array<i64: 128, 384>}, {transform_indices = @transform_1, window_bounds = array<i64: 384, 128>}, {transform_indices = @transform_2, window_bounds = array<i64: 1, 128>}, {transform_indices = @transform_3, window_bounds = array<i64: 1, 128>}, {transform_indices = @transform_4, window_bounds = array<i64: 128, 128>}]} {
    %c0 = arith.constant 0 : index
    %c0_0 = arith.constant 0 : index
    %0 = vector.load %arg2[%c0, %c0_0] : memref<128x384xbf16, #tpu.memory_space<vmem>>, vector<128x384xbf16>
    %c0_1 = arith.constant 0 : index
    %c0_2 = arith.constant 0 : index
    %1 = vector.load %arg3[%c0_1, %c0_2] : memref<384x128xbf16, #tpu.memory_space<vmem>>, vector<384x128xbf16>
    %cst = arith.constant dense<0.000000e+00> : vector<128x128xf32>
    %2 = tpu.matmul %0, %1, %cst {dimension_numbers = #tpu.dot_dimension_numbers<[1], [0], [0], [1], [0, 0, 1, 1], [], []>} : vector<128x384xbf16>, vector<384x128xbf16>, vector<128x128xf32> -> vector<128x128xf32>
    %c0_3 = arith.constant 0 : index
    %c0_4 = arith.constant 0 : index
    %3 = vector.load %arg4[%c0_3, %c0_4] : memref<1x128xf32, #tpu.memory_space<vmem>>, vector<1x128xf32>
    %4 = vector.broadcast %3 : vector<1x128xf32> to vector<128x128xf32>
    %5 = arith.mulf %2, %4 : vector<128x128xf32>
    %c0_5 = arith.constant 0 : index
    %c0_6 = arith.constant 0 : index
    %6 = vector.load %arg5[%c0_5, %c0_6] : memref<1x128xf32, #tpu.memory_space<vmem>>, vector<1x128xf32>
    %7 = vector.broadcast %6 : vector<1x128xf32> to vector<128x128xf32>
    %8 = arith.addf %5, %7 : vector<128x128xf32>
    %9 = arith.truncf %8 : vector<128x128xf32> to vector<128x128xbf16>
    %c0_7 = arith.constant 0 : index
    %c0_8 = arith.constant 0 : index
    %10 = vector.load %arg6[%c0_7, %c0_8] : memref<128x128xbf16, #tpu.memory_space<vmem>>, vector<128x128xbf16>
    tpu.vector_store %arg6[%c0_7, %c0_8], %9 {strides = array<i32>} : memref<128x128xbf16, #tpu.memory_space<vmem>>, vector<128x128xbf16>,
    return
  }
  func.func @transform_0(%arg0: i32, %arg1: i32) -> (i32, i32) {
    %c0_i32 = arith.constant 0 : i32
    %c0_i32_0 = arith.constant 0 : i32
    return %arg0, %c0_i32 : i32, i32
  }
  func.func @transform_1(%arg0: i32, %arg1: i32) -> (i32, i32) {
    %c0_i32 = arith.constant 0 : i32
    %c0_i32_0 = arith.constant 0 : i32
    return %c0_i32, %arg1 : i32, i32
  }
  func.func @transform_2(%arg0: i32, %arg1: i32) -> (i32, i32) {
    %c0_i32 = arith.constant 0 : i32
    %c0_i32_0 = arith.constant 0 : i32
    return %c0_i32, %arg1 : i32, i32
  }
  func.func @transform_3(%arg0: i32, %arg1: i32) -> (i32, i32) {
    %c0_i32 = arith.constant 0 : i32
    %c0_i32_0 = arith.constant 0 : i32
    return %c0_i32, %arg1 : i32, i32
  }
  func.func @transform_4(%arg0: i32, %arg1: i32) -> (i32, i32) {
    %c0_i32 = arith.constant 0 : i32
    return %arg0, %arg1 : i32, i32
  }
}

module attributes {stable_mosaic.version = 11 : i64} {
  func.func @kernel(%arg0: i32, %arg1: i32, %arg2: memref<128x128xbf16, #tpu.memory_space<vmem>>, %arg3: memref<128x128xbf16, #tpu.memory_space<vmem>>, %arg4: memref<1x128xf32, #tpu.memory_space<vmem>>, %arg5: memref<1x128xf32, #tpu.memory_space<vmem>>, %arg6: memref<1x128xf32, #tpu.memory_space<vmem>>, %arg7: memref<1x128xf32, #tpu.memory_space<vmem>>, %arg8: memref<128x128xbf16, #tpu.memory_space<vmem>>) attributes {dimension_semantics = [#tpu.dimension_semantics<parallel>, #tpu.dimension_semantics<parallel>], iteration_bounds = array<i64: 1, 1>, scalar_prefetch = 0 : i64, scratch_operands = 0 : i64, tpu.core_type = #tpu.core_type<tc>, window_params = [{transform_indices = @transform_0, window_bounds = array<i64: 128, 128>}, {transform_indices = @transform_1, window_bounds = array<i64: 128, 128>}, {pipeline_mode = #tpu.pipeline_mode<synchronous>, transform_indices = @transform_2, window_bounds = array<i64: 1, 128>}, {pipeline_mode = #tpu.pipeline_mode<synchronous>, transform_indices = @transform_3, window_bounds = array<i64: 1, 128>}, {transform_indices = @transform_4, window_bounds = array<i64: 1, 128>}, {transform_indices = @transform_5, window_bounds = array<i64: 1, 128>}, {transform_indices = @transform_6, window_bounds = array<i64: 128, 128>}]} {
    %c0 = arith.constant 0 : index
    %c0_0 = arith.constant 0 : index
    %0 = vector.load %arg2[%c0, %c0_0] : memref<128x128xbf16, #tpu.memory_space<vmem>>, vector<128x128xbf16>
    %1 = arith.extf %0 : vector<128x128xbf16> to vector<128x128xf32>
    %c0_1 = arith.constant 0 : index
    %c0_2 = arith.constant 0 : index
    %2 = vector.load %arg4[%c0_1, %c0_2] : memref<1x128xf32, #tpu.memory_space<vmem>>, vector<1x128xf32>
    %3 = vector.broadcast %2 : vector<1x128xf32> to vector<128x128xf32>
    %4 = arith.mulf %1, %3 : vector<128x128xf32>
    %c0_3 = arith.constant 0 : index
    %c0_4 = arith.constant 0 : index
    %5 = vector.load %arg5[%c0_3, %c0_4] : memref<1x128xf32, #tpu.memory_space<vmem>>, vector<1x128xf32>
    %6 = vector.broadcast %5 : vector<1x128xf32> to vector<128x128xf32>
    %7 = arith.addf %4, %6 : vector<128x128xf32>
    %cst = arith.constant 0.000000e+00 : f32
    %8 = vector.broadcast %cst : f32 to vector<128x128xf32>
    %9 = arith.maximumf %7, %8 : vector<128x128xf32>
    %10 = arith.truncf %9 : vector<128x128xf32> to vector<128x128xbf16>
    %c0_5 = arith.constant 0 : index
    %c0_6 = arith.constant 0 : index
    %11 = vector.load %arg3[%c0_5, %c0_6] : memref<128x128xbf16, #tpu.memory_space<vmem>>, vector<128x128xbf16>
    %cst_7 = arith.constant dense<0.000000e+00> : vector<128x128xf32>
    %12 = tpu.matmul %10, %11, %cst_7 {dimension_numbers = #tpu.dot_dimension_numbers<[1], [0], [0], [1], [0, 0, 1, 1], [], []>} : vector<128x128xbf16>, vector<128x128xbf16>, vector<128x128xf32> -> vector<128x128xf32>
    %c0_8 = arith.constant 0 : index
    %c0_9 = arith.constant 0 : index
    %13 = vector.load %arg6[%c0_8, %c0_9] : memref<1x128xf32, #tpu.memory_space<vmem>>, vector<1x128xf32>
    %14 = vector.broadcast %13 : vector<1x128xf32> to vector<128x128xf32>
    %15 = arith.mulf %12, %14 : vector<128x128xf32>
    %c0_10 = arith.constant 0 : index
    %c0_11 = arith.constant 0 : index
    %16 = vector.load %arg7[%c0_10, %c0_11] : memref<1x128xf32, #tpu.memory_space<vmem>>, vector<1x128xf32>
    %17 = vector.broadcast %16 : vector<1x128xf32> to vector<128x128xf32>
    %18 = arith.addf %15, %17 : vector<128x128xf32>
    %19 = arith.truncf %18 : vector<128x128xf32> to vector<128x128xbf16>
    %c0_12 = arith.constant 0 : index
    %c0_13 = arith.constant 0 : index
    %20 = vector.load %arg8[%c0_12, %c0_13] : memref<128x128xbf16, #tpu.memory_space<vmem>>, vector<128x128xbf16>
    tpu.vector_store %arg8[%c0_12, %c0_13], %19 {strides = array<i32>} : memref<128x128xbf16, #tpu.memory_space<vmem>>, vector<128x128xbf16>,
    return
  }
  func.func @transform_0(%arg0: i32, %arg1: i32) -> (i32, i32) {
    %c0_i32 = arith.constant 0 : i32
    %c0_i32_0 = arith.constant 0 : i32
    return %arg0, %c0_i32 : i32, i32
  }
  func.func @transform_1(%arg0: i32, %arg1: i32) -> (i32, i32) {
    %c0_i32 = arith.constant 0 : i32
    %c0_i32_0 = arith.constant 0 : i32
    return %c0_i32, %arg1 : i32, i32
  }
  func.func @transform_2(%arg0: i32, %arg1: i32) -> (i32, i32) {
    %c0_i32 = arith.constant 0 : i32
    %c0_i32_0 = arith.constant 0 : i32
    %c0_i32_1 = arith.constant 0 : i32
    return %c0_i32, %c0_i32_0 : i32, i32
  }
  func.func @transform_3(%arg0: i32, %arg1: i32) -> (i32, i32) {
    %c0_i32 = arith.constant 0 : i32
    %c0_i32_0 = arith.constant 0 : i32
    %c0_i32_1 = arith.constant 0 : i32
    return %c0_i32, %c0_i32_0 : i32, i32
  }
  func.func @transform_4(%arg0: i32, %arg1: i32) -> (i32, i32) {
    %c0_i32 = arith.constant 0 : i32
    %c0_i32_0 = arith.constant 0 : i32
    return %c0_i32, %arg1 : i32, i32
  }
  func.func @transform_5(%arg0: i32, %arg1: i32) -> (i32, i32) {
    %c0_i32 = arith.constant 0 : i32
    %c0_i32_0 = arith.constant 0 : i32
    return %c0_i32, %arg1 : i32, i32
  }
  func.func @transform_6(%arg0: i32, %arg1: i32) -> (i32, i32) {
    %c0_i32 = arith.constant 0 : i32
    return %arg0, %arg1 : i32, i32
  }
}

module attributes {stable_mosaic.version = 11 : i64} {
  func.func @_mean_lead_kernel(%arg0: i32, %arg1: memref<4x32x16xbf16, #tpu.memory_space<vmem>>, %arg2: memref<32x16xbf16, #tpu.memory_space<vmem>>) attributes {dimension_semantics = [#tpu.dimension_semantics<parallel>], iteration_bounds = array<i64: 1>, scalar_prefetch = 0 : i64, scratch_operands = 0 : i64, tpu.core_type = #tpu.core_type<tc>, window_params = [{transform_indices = @transform_0, window_bounds = array<i64: 4, 32, 16>}, {transform_indices = @transform_1, window_bounds = array<i64: 32, 16>}]} {
    %c0 = arith.constant 0 : index
    %c0_0 = arith.constant 0 : index
    %c0_1 = arith.constant 0 : index
    %0 = vector.load %arg1[%c0, %c0_0, %c0_1] : memref<4x32x16xbf16, #tpu.memory_space<vmem>>, vector<4x32x16xbf16>
    %1 = arith.extf %0 : vector<4x32x16xbf16> to vector<4x32x16xf32>
    %cst = arith.constant dense<0.000000e+00> : vector<32x16xf32>
    %2 = vector.multi_reduction <add>, %1, %cst [0] : vector<4x32x16xf32> to vector<32x16xf32>
    %cst_2 = arith.constant 2.500000e-01 : f32
    %3 = vector.broadcast %cst_2 : f32 to vector<32x16xf32>
    %4 = arith.mulf %2, %3 : vector<32x16xf32>
    %5 = arith.truncf %4 : vector<32x16xf32> to vector<32x16xbf16>
    %c0_3 = arith.constant 0 : index
    %c0_4 = arith.constant 0 : index
    %6 = vector.load %arg2[%c0_3, %c0_4] : memref<32x16xbf16, #tpu.memory_space<vmem>>, vector<32x16xbf16>
    tpu.vector_store %arg2[%c0_3, %c0_4], %5 {strides = array<i32>} : memref<32x16xbf16, #tpu.memory_space<vmem>>, vector<32x16xbf16>,
    return
  }
  func.func @transform_0(%arg0: i32) -> (i32, i32, i32) {
    %c0_i32 = arith.constant 0 : i32
    %c0_i32_0 = arith.constant 0 : i32
    %c0_i32_1 = arith.constant 0 : i32
    return %c0_i32, %arg0, %c0_i32_0 : i32, i32, i32
  }
  func.func @transform_1(%arg0: i32) -> (i32, i32) {
    %c0_i32 = arith.constant 0 : i32
    %c0_i32_0 = arith.constant 0 : i32
    return %arg0, %c0_i32 : i32, i32
  }
}

module attributes {stable_mosaic.version = 11 : i64} {
  func.func @kernel(%arg0: i32, %arg1: i32, %arg2: memref<32x128xbf16, #tpu.memory_space<vmem>>, %arg3: memref<128x128xbf16, #tpu.memory_space<vmem>>, %arg4: memref<1x128xf32, #tpu.memory_space<vmem>>, %arg5: memref<1x128xf32, #tpu.memory_space<vmem>>, %arg6: memref<1x128xf32, #tpu.memory_space<vmem>>, %arg7: memref<1x128xf32, #tpu.memory_space<vmem>>, %arg8: memref<32x128xbf16, #tpu.memory_space<vmem>>) attributes {dimension_semantics = [#tpu.dimension_semantics<parallel>, #tpu.dimension_semantics<parallel>], iteration_bounds = array<i64: 1, 1>, scalar_prefetch = 0 : i64, scratch_operands = 0 : i64, tpu.core_type = #tpu.core_type<tc>, window_params = [{transform_indices = @transform_0, window_bounds = array<i64: 32, 128>}, {transform_indices = @transform_1, window_bounds = array<i64: 128, 128>}, {pipeline_mode = #tpu.pipeline_mode<synchronous>, transform_indices = @transform_2, window_bounds = array<i64: 1, 128>}, {pipeline_mode = #tpu.pipeline_mode<synchronous>, transform_indices = @transform_3, window_bounds = array<i64: 1, 128>}, {transform_indices = @transform_4, window_bounds = array<i64: 1, 128>}, {transform_indices = @transform_5, window_bounds = array<i64: 1, 128>}, {transform_indices = @transform_6, window_bounds = array<i64: 32, 128>}]} {
    %c0 = arith.constant 0 : index
    %c0_0 = arith.constant 0 : index
    %0 = vector.load %arg2[%c0, %c0_0] : memref<32x128xbf16, #tpu.memory_space<vmem>>, vector<32x128xbf16>
    %1 = arith.extf %0 : vector<32x128xbf16> to vector<32x128xf32>
    %c0_1 = arith.constant 0 : index
    %c0_2 = arith.constant 0 : index
    %2 = vector.load %arg4[%c0_1, %c0_2] : memref<1x128xf32, #tpu.memory_space<vmem>>, vector<1x128xf32>
    %3 = vector.broadcast %2 : vector<1x128xf32> to vector<32x128xf32>
    %4 = arith.mulf %1, %3 : vector<32x128xf32>
    %c0_3 = arith.constant 0 : index
    %c0_4 = arith.constant 0 : index
    %5 = vector.load %arg5[%c0_3, %c0_4] : memref<1x128xf32, #tpu.memory_space<vmem>>, vector<1x128xf32>
    %6 = vector.broadcast %5 : vector<1x128xf32> to vector<32x128xf32>
    %7 = arith.addf %4, %6 : vector<32x128xf32>
    %cst = arith.constant 0.000000e+00 : f32
    %8 = vector.broadcast %cst : f32 to vector<32x128xf32>
    %9 = arith.maximumf %7, %8 : vector<32x128xf32>
    %10 = arith.truncf %9 : vector<32x128xf32> to vector<32x128xbf16>
    %c0_5 = arith.constant 0 : index
    %c0_6 = arith.constant 0 : index
    %11 = vector.load %arg3[%c0_5, %c0_6] : memref<128x128xbf16, #tpu.memory_space<vmem>>, vector<128x128xbf16>
    %cst_7 = arith.constant dense<0.000000e+00> : vector<32x128xf32>
    %12 = tpu.matmul %10, %11, %cst_7 {dimension_numbers = #tpu.dot_dimension_numbers<[1], [0], [0], [1], [0, 0, 1, 1], [], []>} : vector<32x128xbf16>, vector<128x128xbf16>, vector<32x128xf32> -> vector<32x128xf32>
    %c0_8 = arith.constant 0 : index
    %c0_9 = arith.constant 0 : index
    %13 = vector.load %arg6[%c0_8, %c0_9] : memref<1x128xf32, #tpu.memory_space<vmem>>, vector<1x128xf32>
    %14 = vector.broadcast %13 : vector<1x128xf32> to vector<32x128xf32>
    %15 = arith.mulf %12, %14 : vector<32x128xf32>
    %c0_10 = arith.constant 0 : index
    %c0_11 = arith.constant 0 : index
    %16 = vector.load %arg7[%c0_10, %c0_11] : memref<1x128xf32, #tpu.memory_space<vmem>>, vector<1x128xf32>
    %17 = vector.broadcast %16 : vector<1x128xf32> to vector<32x128xf32>
    %18 = arith.addf %15, %17 : vector<32x128xf32>
    %cst_12 = arith.constant 0.000000e+00 : f32
    %19 = vector.broadcast %cst_12 : f32 to vector<32x128xf32>
    %20 = arith.maximumf %18, %19 : vector<32x128xf32>
    %21 = arith.truncf %20 : vector<32x128xf32> to vector<32x128xbf16>
    %c0_13 = arith.constant 0 : index
    %c0_14 = arith.constant 0 : index
    %22 = vector.load %arg8[%c0_13, %c0_14] : memref<32x128xbf16, #tpu.memory_space<vmem>>, vector<32x128xbf16>
    tpu.vector_store %arg8[%c0_13, %c0_14], %21 {strides = array<i32>} : memref<32x128xbf16, #tpu.memory_space<vmem>>, vector<32x128xbf16>,
    return
  }
  func.func @transform_0(%arg0: i32, %arg1: i32) -> (i32, i32) {
    %c0_i32 = arith.constant 0 : i32
    %c0_i32_0 = arith.constant 0 : i32
    return %arg0, %c0_i32 : i32, i32
  }
  func.func @transform_1(%arg0: i32, %arg1: i32) -> (i32, i32) {
    %c0_i32 = arith.constant 0 : i32
    %c0_i32_0 = arith.constant 0 : i32
    return %c0_i32, %arg1 : i32, i32
  }
  func.func @transform_2(%arg0: i32, %arg1: i32) -> (i32, i32) {
    %c0_i32 = arith.constant 0 : i32
    %c0_i32_0 = arith.constant 0 : i32
    %c0_i32_1 = arith.constant 0 : i32
    return %c0_i32, %c0_i32_0 : i32, i32
  }
  func.func @transform_3(%arg0: i32, %arg1: i32) -> (i32, i32) {
    %c0_i32 = arith.constant 0 : i32
    %c0_i32_0 = arith.constant 0 : i32
    %c0_i32_1 = arith.constant 0 : i32
    return %c0_i32, %c0_i32_0 : i32, i32
  }
  func.func @transform_4(%arg0: i32, %arg1: i32) -> (i32, i32) {
    %c0_i32 = arith.constant 0 : i32
    %c0_i32_0 = arith.constant 0 : i32
    return %c0_i32, %arg1 : i32, i32
  }
  func.func @transform_5(%arg0: i32, %arg1: i32) -> (i32, i32) {
    %c0_i32 = arith.constant 0 : i32
    %c0_i32_0 = arith.constant 0 : i32
    return %c0_i32, %arg1 : i32, i32
  }
  func.func @transform_6(%arg0: i32, %arg1: i32) -> (i32, i32) {
    %c0_i32 = arith.constant 0 : i32
    return %arg0, %arg1 : i32, i32
  }
}

module attributes {stable_mosaic.version = 11 : i64} {
  func.func @kernel(%arg0: i32, %arg1: i32, %arg2: memref<32x384xbf16, #tpu.memory_space<vmem>>, %arg3: memref<384x128xbf16, #tpu.memory_space<vmem>>, %arg4: memref<1x128xf32, #tpu.memory_space<vmem>>, %arg5: memref<1x128xf32, #tpu.memory_space<vmem>>, %arg6: memref<32x128xbf16, #tpu.memory_space<vmem>>) attributes {dimension_semantics = [#tpu.dimension_semantics<parallel>, #tpu.dimension_semantics<parallel>], iteration_bounds = array<i64: 1, 1>, scalar_prefetch = 0 : i64, scratch_operands = 0 : i64, tpu.core_type = #tpu.core_type<tc>, window_params = [{transform_indices = @transform_0, window_bounds = array<i64: 32, 384>}, {transform_indices = @transform_1, window_bounds = array<i64: 384, 128>}, {transform_indices = @transform_2, window_bounds = array<i64: 1, 128>}, {transform_indices = @transform_3, window_bounds = array<i64: 1, 128>}, {transform_indices = @transform_4, window_bounds = array<i64: 32, 128>}]} {
    %c0 = arith.constant 0 : index
    %c0_0 = arith.constant 0 : index
    %0 = vector.load %arg2[%c0, %c0_0] : memref<32x384xbf16, #tpu.memory_space<vmem>>, vector<32x384xbf16>
    %c0_1 = arith.constant 0 : index
    %c0_2 = arith.constant 0 : index
    %1 = vector.load %arg3[%c0_1, %c0_2] : memref<384x128xbf16, #tpu.memory_space<vmem>>, vector<384x128xbf16>
    %cst = arith.constant dense<0.000000e+00> : vector<32x128xf32>
    %2 = tpu.matmul %0, %1, %cst {dimension_numbers = #tpu.dot_dimension_numbers<[1], [0], [0], [1], [0, 0, 1, 1], [], []>} : vector<32x384xbf16>, vector<384x128xbf16>, vector<32x128xf32> -> vector<32x128xf32>
    %c0_3 = arith.constant 0 : index
    %c0_4 = arith.constant 0 : index
    %3 = vector.load %arg4[%c0_3, %c0_4] : memref<1x128xf32, #tpu.memory_space<vmem>>, vector<1x128xf32>
    %4 = vector.broadcast %3 : vector<1x128xf32> to vector<32x128xf32>
    %5 = arith.mulf %2, %4 : vector<32x128xf32>
    %c0_5 = arith.constant 0 : index
    %c0_6 = arith.constant 0 : index
    %6 = vector.load %arg5[%c0_5, %c0_6] : memref<1x128xf32, #tpu.memory_space<vmem>>, vector<1x128xf32>
    %7 = vector.broadcast %6 : vector<1x128xf32> to vector<32x128xf32>
    %8 = arith.addf %5, %7 : vector<32x128xf32>
    %9 = arith.truncf %8 : vector<32x128xf32> to vector<32x128xbf16>
    %c0_7 = arith.constant 0 : index
    %c0_8 = arith.constant 0 : index
    %10 = vector.load %arg6[%c0_7, %c0_8] : memref<32x128xbf16, #tpu.memory_space<vmem>>, vector<32x128xbf16>
    tpu.vector_store %arg6[%c0_7, %c0_8], %9 {strides = array<i32>} : memref<32x128xbf16, #tpu.memory_space<vmem>>, vector<32x128xbf16>,
    return
  }
  func.func @transform_0(%arg0: i32, %arg1: i32) -> (i32, i32) {
    %c0_i32 = arith.constant 0 : i32
    %c0_i32_0 = arith.constant 0 : i32
    return %arg0, %c0_i32 : i32, i32
  }
  func.func @transform_1(%arg0: i32, %arg1: i32) -> (i32, i32) {
    %c0_i32 = arith.constant 0 : i32
    %c0_i32_0 = arith.constant 0 : i32
    return %c0_i32, %arg1 : i32, i32
  }
  func.func @transform_2(%arg0: i32, %arg1: i32) -> (i32, i32) {
    %c0_i32 = arith.constant 0 : i32
    %c0_i32_0 = arith.constant 0 : i32
    return %c0_i32, %arg1 : i32, i32
  }
  func.func @transform_3(%arg0: i32, %arg1: i32) -> (i32, i32) {
    %c0_i32 = arith.constant 0 : i32
    %c0_i32_0 = arith.constant 0 : i32
    return %c0_i32, %arg1 : i32, i32
  }
  func.func @transform_4(%arg0: i32, %arg1: i32) -> (i32, i32) {
    %c0_i32 = arith.constant 0 : i32
    return %arg0, %arg1 : i32, i32
  }
}

module attributes {stable_mosaic.version = 11 : i64} {
  func.func @_gap_kernel(%arg0: i32, %arg1: memref<16x8x128xbf16, #tpu.memory_space<vmem>>, %arg2: memref<1x1x128xf32, #tpu.memory_space<vmem>>, %arg3: memref<1x1x128xf32, #tpu.memory_space<vmem>>, %arg4: memref<8x128xf32, #tpu.memory_space<vmem>>) attributes {dimension_semantics = [#tpu.dimension_semantics<parallel>], iteration_bounds = array<i64: 1>, scalar_prefetch = 0 : i64, scratch_operands = 0 : i64, tpu.core_type = #tpu.core_type<tc>, window_params = [{transform_indices = @transform_0, window_bounds = array<i64: 16, 8, 128>}, {transform_indices = @transform_1, window_bounds = array<i64: 1, 1, 128>}, {transform_indices = @transform_2, window_bounds = array<i64: 1, 1, 128>}, {transform_indices = @transform_3, window_bounds = array<i64: 8, 128>}]} {
    %c0 = arith.constant 0 : index
    %c0_0 = arith.constant 0 : index
    %c0_1 = arith.constant 0 : index
    %0 = vector.load %arg1[%c0, %c0_0, %c0_1] : memref<16x8x128xbf16, #tpu.memory_space<vmem>>, vector<16x8x128xbf16>
    %1 = arith.extf %0 : vector<16x8x128xbf16> to vector<16x8x128xf32>
    %c0_2 = arith.constant 0 : index
    %c0_3 = arith.constant 0 : index
    %c0_4 = arith.constant 0 : index
    %2 = vector.load %arg2[%c0_2, %c0_3, %c0_4] : memref<1x1x128xf32, #tpu.memory_space<vmem>>, vector<1x1x128xf32>
    %3 = vector.broadcast %2 : vector<1x1x128xf32> to vector<16x8x128xf32>
    %4 = arith.mulf %1, %3 : vector<16x8x128xf32>
    %c0_5 = arith.constant 0 : index
    %c0_6 = arith.constant 0 : index
    %c0_7 = arith.constant 0 : index
    %5 = vector.load %arg3[%c0_5, %c0_6, %c0_7] : memref<1x1x128xf32, #tpu.memory_space<vmem>>, vector<1x1x128xf32>
    %6 = vector.broadcast %5 : vector<1x1x128xf32> to vector<16x8x128xf32>
    %7 = arith.addf %4, %6 : vector<16x8x128xf32>
    %cst = arith.constant 0.000000e+00 : f32
    %8 = vector.broadcast %cst : f32 to vector<16x8x128xf32>
    %9 = arith.maximumf %7, %8 : vector<16x8x128xf32>
    %cst_8 = arith.constant dense<0.000000e+00> : vector<8x128xf32>
    %10 = vector.multi_reduction <add>, %9, %cst_8 [0] : vector<16x8x128xf32> to vector<8x128xf32>
    %cst_9 = arith.constant 6.250000e-02 : f32
    %11 = vector.broadcast %cst_9 : f32 to vector<8x128xf32>
    %12 = arith.mulf %10, %11 : vector<8x128xf32>
    %c0_10 = arith.constant 0 : index
    %c0_11 = arith.constant 0 : index
    %13 = vector.load %arg4[%c0_10, %c0_11] : memref<8x128xf32, #tpu.memory_space<vmem>>, vector<8x128xf32>
    tpu.vector_store %arg4[%c0_10, %c0_11], %12 {strides = array<i32>} : memref<8x128xf32, #tpu.memory_space<vmem>>, vector<8x128xf32>,
    return
  }
  func.func @transform_0(%arg0: i32) -> (i32, i32, i32) {
    %c0_i32 = arith.constant 0 : i32
    %c0_i32_0 = arith.constant 0 : i32
    %c0_i32_1 = arith.constant 0 : i32
    return %c0_i32, %c0_i32_0, %arg0 : i32, i32, i32
  }
  func.func @transform_1(%arg0: i32) -> (i32, i32, i32) {
    %c0_i32 = arith.constant 0 : i32
    %c0_i32_0 = arith.constant 0 : i32
    %c0_i32_1 = arith.constant 0 : i32
    return %c0_i32, %c0_i32_0, %arg0 : i32, i32, i32
  }
  func.func @transform_2(%arg0: i32) -> (i32, i32, i32) {
    %c0_i32 = arith.constant 0 : i32
    %c0_i32_0 = arith.constant 0 : i32
    %c0_i32_1 = arith.constant 0 : i32
    return %c0_i32, %c0_i32_0, %arg0 : i32, i32, i32
  }
  func.func @transform_3(%arg0: i32) -> (i32, i32) {
    %c0_i32 = arith.constant 0 : i32
    %c0_i32_0 = arith.constant 0 : i32
    return %c0_i32, %arg0 : i32, i32
  }
}

module attributes {stable_mosaic.version = 11 : i64} {
  func.func @kernel(%arg0: i32, %arg1: i32, %arg2: memref<16x128xbf16, #tpu.memory_space<vmem>>, %arg3: memref<128x128xbf16, #tpu.memory_space<vmem>>, %arg4: memref<1x128xf32, #tpu.memory_space<vmem>>, %arg5: memref<1x128xf32, #tpu.memory_space<vmem>>, %arg6: memref<16x128xf32, #tpu.memory_space<vmem>>) attributes {dimension_semantics = [#tpu.dimension_semantics<parallel>, #tpu.dimension_semantics<parallel>], iteration_bounds = array<i64: 1, 1>, scalar_prefetch = 0 : i64, scratch_operands = 0 : i64, tpu.core_type = #tpu.core_type<tc>, window_params = [{transform_indices = @transform_0, window_bounds = array<i64: 16, 128>}, {transform_indices = @transform_1, window_bounds = array<i64: 128, 128>}, {transform_indices = @transform_2, window_bounds = array<i64: 1, 128>}, {transform_indices = @transform_3, window_bounds = array<i64: 1, 128>}, {transform_indices = @transform_4, window_bounds = array<i64: 16, 128>}]} {
    %c0 = arith.constant 0 : index
    %c0_0 = arith.constant 0 : index
    %0 = vector.load %arg2[%c0, %c0_0] : memref<16x128xbf16, #tpu.memory_space<vmem>>, vector<16x128xbf16>
    %c0_1 = arith.constant 0 : index
    %c0_2 = arith.constant 0 : index
    %1 = vector.load %arg3[%c0_1, %c0_2] : memref<128x128xbf16, #tpu.memory_space<vmem>>, vector<128x128xbf16>
    %cst = arith.constant dense<0.000000e+00> : vector<16x128xf32>
    %2 = tpu.matmul %0, %1, %cst {dimension_numbers = #tpu.dot_dimension_numbers<[1], [0], [0], [1], [0, 0, 1, 1], [], []>} : vector<16x128xbf16>, vector<128x128xbf16>, vector<16x128xf32> -> vector<16x128xf32>
    %c0_3 = arith.constant 0 : index
    %c0_4 = arith.constant 0 : index
    %3 = vector.load %arg4[%c0_3, %c0_4] : memref<1x128xf32, #tpu.memory_space<vmem>>, vector<1x128xf32>
    %4 = vector.broadcast %3 : vector<1x128xf32> to vector<16x128xf32>
    %5 = arith.mulf %2, %4 : vector<16x128xf32>
    %c0_5 = arith.constant 0 : index
    %c0_6 = arith.constant 0 : index
    %6 = vector.load %arg5[%c0_5, %c0_6] : memref<1x128xf32, #tpu.memory_space<vmem>>, vector<1x128xf32>
    %7 = vector.broadcast %6 : vector<1x128xf32> to vector<16x128xf32>
    %8 = arith.addf %5, %7 : vector<16x128xf32>
    %c0_7 = arith.constant 0 : index
    %c0_8 = arith.constant 0 : index
    %9 = vector.load %arg6[%c0_7, %c0_8] : memref<16x128xf32, #tpu.memory_space<vmem>>, vector<16x128xf32>
    tpu.vector_store %arg6[%c0_7, %c0_8], %8 {strides = array<i32>} : memref<16x128xf32, #tpu.memory_space<vmem>>, vector<16x128xf32>,
    return
  }
  func.func @transform_0(%arg0: i32, %arg1: i32) -> (i32, i32) {
    %c0_i32 = arith.constant 0 : i32
    %c0_i32_0 = arith.constant 0 : i32
    return %arg0, %c0_i32 : i32, i32
  }
  func.func @transform_1(%arg0: i32, %arg1: i32) -> (i32, i32) {
    %c0_i32 = arith.constant 0 : i32
    %c0_i32_0 = arith.constant 0 : i32
    return %c0_i32, %arg1 : i32, i32
  }
  func.func @transform_2(%arg0: i32, %arg1: i32) -> (i32, i32) {
    %c0_i32 = arith.constant 0 : i32
    %c0_i32_0 = arith.constant 0 : i32
    return %c0_i32, %arg1 : i32, i32
  }
  func.func @transform_3(%arg0: i32, %arg1: i32) -> (i32, i32) {
    %c0_i32 = arith.constant 0 : i32
    %c0_i32_0 = arith.constant 0 : i32
    return %c0_i32, %arg1 : i32, i32
  }
  func.func @transform_4(%arg0: i32, %arg1: i32) -> (i32, i32) {
    %c0_i32 = arith.constant 0 : i32
    return %arg0, %arg1 : i32, i32
  }
}

</mosaic_0001>

<bundles_post_ra>
// kernel: densenet_forward.14
= control target key start
LH: loop header
LB: loop body
LE: loop exit
PB: predicated region body
PF: predicated region fallthrough
CT: control target
= control target key end

     0   :  { %s1625_s15 = smov 0   ;;  %s1627_s16 = smov 0   ;;  %s1836_s0 = inlined_call_operand.vmem [shape: bf16[512,256], index: 0, kind: input, shape index: {}]   ;;  %s1837_s1 = inlined_call_operand.vmem [shape: bf16[256,128], index: 1, kind: input, shape index: {}]   ;;  %s1838_s2 = inlined_call_operand.vmem [shape: f32[1,128], index: 2, kind: input, shape index: {}]   ;;  %s1839_s3 = inlined_call_operand.vmem [shape: f32[1,128], index: 3, kind: input, shape index: {}]   ;;  %s1840_s4 = inlined_call_operand.vmem [shape: bf16[512,128], index: 4, kind: output, shape index: {}]  }
   0x1   :  { %s1629_s17 = smov 0  }
   0x2 LB: > { %s26_s18 = sadd.s32 1, %s1594_s16  ;;  %p1142_p0 = scmp.ge.s32.totalorder %s1598_s17, 1  ;;  %s1598_s17 = sphi %s1629_s17, %s14_s17   ;;  %s1594_s16 = sphi %s1627_s16, %s1842_s16   ;;  %s1590_s15 = sphi %s1625_s15, %s1841_s15  }
   0x3   : > { %p28_p1 = scmp.ge.s32.totalorder %s26_s18, 2  ;;  %p203_p2 = scmp.lt.s32.totalorder %s1598_s17, 3 }
   0x5   : > { %s1844_s18 = smov (%p28_p1, %s26_s18), 0  ;;  %p204_p3 = pnand %p1142_p0, %p203_p2 }
   0x6   : > { %v1512_v0 = vld [vmem:[%s1837_s1 + $0x40] sm:$0xff] (!%p204_p3)   ;;  %s1143_s21 = sshll.u32 (!%p204_p3), %s1590_s15, 5  ;;  %v1514_v2 = vld [vmem:[%s1837_s1 + $0x48] sm:$0xff] (!%p204_p3)   ;;  %v1516_v4 = vld [vmem:[%s1837_s1 + $0x50] sm:$0xff] (!%p204_p3)  }
   0x7   : > { %207 = sbr.rel (%p204_p3) target bundleno = 322 (0x142), region = 36  ;;  %v1513_v1 = vld [vmem:[%s1837_s1] sm:$0xff] (!%p204_p3)   ;;  %1360 = vmatprep.subr.bf16.mxu0 (!%p204_p3), %v1512_v0  ;;  %1472 = vmatprep.subr.bf16.mxu1 (!%p204_p3), %v1512_v0  ;;  %v1515_v3 = vld [vmem:[%s1837_s1 + $0x8] sm:$0xff] (!%p204_p3)   ;;  %p244_p4 = scmp.lt.s32.totalorder (!%p204_p3), %s1143_s21, 63  ;;  %v1517_v5 = vld [vmem:[%s1837_s1 + $0x10] sm:$0xff] (!%p204_p3)  }
   0x8   : > { %1361 = vmatpush3.bf16.msra.mxu0 (!%p204_p3), %v1513_v1  ;;  %1480 = vmatpush3.bf16.msra.mxu1 (!%p204_p3), %v1513_v1  ;;  %v1518_v6 = vld [vmem:[%s1837_s1 + $0x58] sm:$0xff] (!%p204_p3)   ;;  %v1520_v8 = vld [vmem:[%s1837_s1 + $0x60] sm:$0xff] (!%p204_p3)   ;;  %v1522_v10 = vld [vmem:[%s1837_s1 + $0x68] sm:$0xff] (!%p204_p3)  }
   0x9   : > { %1362 = vmatprep.subr.bf16.mxu0 (!%p204_p3), %v1514_v2  ;;  %1473 = vmatprep.subr.bf16.mxu1 (!%p204_p3), %v1514_v2  ;;  %v1519_v7 = vld [vmem:[%s1837_s1 + $0x18] sm:$0xff] (!%p204_p3)   ;;  %v1521_v9 = vld [vmem:[%s1837_s1 + $0x20] sm:$0xff] (!%p204_p3)   ;;  %v1523_v13 = vld [vmem:[%s1837_s1 + $0x28] sm:$0xff] (!%p204_p3)  }
   0xa   : > { %v1524_v14 = vld [vmem:[%s1837_s1 + $0x70] sm:$0xff] (!%p204_p3)   ;;  %v1526_v16 = vld [vmem:[%s1837_s1 + $0x78] sm:$0xff] (!%p204_p3)   ;;  %v1734_v51 = vld [vmem:[%s1838_s2] ss:$0 sm:$0xff] (!%p204_p3) }
   0xb   : > { %v1525_v15 = vld [vmem:[%s1837_s1 + $0x30] sm:$0xff] (!%p204_p3)   ;;  %v1527_v17 = vld [vmem:[%s1837_s1 + $0x38] sm:$0xff] (!%p204_p3)   ;;  %v1739_v57 = vld [vmem:[%s1839_s3] ss:$0 sm:$0xff] (!%p204_p3) }
   0xc   : > { %1363 = vmatpush3.bf16.msra.mxu0 (!%p204_p3), %v1515_v3  ;;  %1481 = vmatpush3.bf16.msra.mxu1 (!%p204_p3), %v1515_v3 }
   0xd   : > { %1364 = vmatprep.subr.bf16.mxu0 (!%p204_p3), %v1516_v4  ;;  %1474 = vmatprep.subr.bf16.mxu1 (!%p204_p3), %v1516_v4 }
   0xe   : > { %s1846_s21 = smov (!%p244_p4, %s1143_s21), 63 }
   0xf   : > { %s1232_s10 = sshll.u32 %s1846_s21, 3  ;;  %s1147_s12 = sshll.u32 %s1846_s21, 2 }
  0x10   : > { %1365 = vmatpush3.bf16.msra.mxu0 %v1517_v5  ;;  %1482 = vmatpush3.bf16.msra.mxu1 %v1517_v5  ;;  %s1676_s15 = scalar_lea.vmem %s1836_s0, %s1232_s10  ;;  %s1753_s21 = scalar_lea.vmem %s1840_s4, %s1147_s12 }
  0x11   : > { %1366 = vmatprep.subr.bf16.mxu0 %v1518_v6  ;;  %1475 = vmatprep.subr.bf16.mxu1 %v1518_v6  ;;  %v1530_v11 = vld [vmem:[%s1676_s15 + $0x4] ss:$8 sps:$4 sm:$0xff]   ;;  %v1528_v18 = vld [vmem:[%s1676_s15] ss:$8 sps:$4 sm:$0xff]   ;;  %v1534_v20 = vld [vmem:[%s1676_s15 + $0x14] ss:$8 sps:$4 sm:$0xff]  }
  0x12   : > { %v1533_v12 = vld [vmem:[%s1676_s15 + $0x84] ss:$8 sps:$4 sm:$0xff]   ;;  %622 = vmatprep.mubr.bf16.mxu0 %v1530_v11  ;;  %v1531_v19 = vld [vmem:[%s1676_s15 + $0x80] ss:$8 sps:$4 sm:$0xff]   ;;  %v1536_v21 = vld [vmem:[%s1676_s15 + $0x94] ss:$8 sps:$4 sm:$0xff]  }
  0x13   : > { %686 = vmatprep.mubr.bf16.mxu1 %v1533_v12  ;;  %v1538_v22 = vld [vmem:[%s1676_s15 + $0x10] ss:$8 sps:$4 sm:$0xff]   ;;  %v1540_v24 = vld [vmem:[%s1676_s15 + $0x24] ss:$8 sps:$4 sm:$0xff]   ;;  %v1544_v26 = vld [vmem:[%s1676_s15 + $0x20] ss:$8 sps:$4 sm:$0xff]  }
  0x14   : > { %1367 = vmatpush3.bf16.msra.mxu0 %v1519_v7  ;;  %1483 = vmatpush3.bf16.msra.mxu1 %v1519_v7  ;;  %v1539_v23 = vld [vmem:[%s1676_s15 + $0x90] ss:$8 sps:$4 sm:$0xff]   ;;  %v1542_v25 = vld [vmem:[%s1676_s15 + $0xa4] ss:$8 sps:$4 sm:$0xff]   ;;  %v1545_v27 = vld [vmem:[%s1676_s15 + $0xa0] ss:$8 sps:$4 sm:$0xff]  }
  0x15   : > { %1368 = vmatprep.subr.bf16.mxu0 %v1520_v8  ;;  %1476 = vmatprep.subr.bf16.mxu1 %v1520_v8  ;;  %v1546_v28 = vld [vmem:[%s1676_s15 + $0x34] ss:$8 sps:$4 sm:$0xff]   ;;  %v1550_v30 = vld [vmem:[%s1676_s15 + $0x30] ss:$8 sps:$4 sm:$0xff]   ;;  %v1552_v32 = vld [vmem:[%s1676_s15 + $0x44] ss:$8 sps:$4 sm:$0xff]  }
  0x16   : > { %v1548_v29 = vld [vmem:[%s1676_s15 + $0xb4] ss:$8 sps:$4 sm:$0xff]   ;;  %v1551_v31 = vld [vmem:[%s1676_s15 + $0xb0] ss:$8 sps:$4 sm:$0xff]   ;;  %v1554_v33 = vld [vmem:[%s1676_s15 + $0xc4] ss:$8 sps:$4 sm:$0xff]  }
  0x17   : > { %v1556_v34 = vld [vmem:[%s1676_s15 + $0x40] ss:$8 sps:$4 sm:$0xff]   ;;  %v1558_v36 = vld [vmem:[%s1676_s15 + $0x54] ss:$8 sps:$4 sm:$0xff]   ;;  %v1562_v38 = vld [vmem:[%s1676_s15 + $0x50] ss:$8 sps:$4 sm:$0xff]  }
  0x18   : > { %1369 = vmatpush3.bf16.msra.mxu0 %v1521_v9  ;;  %1484 = vmatpush3.bf16.msra.mxu1 %v1521_v9  ;;  %v1557_v35 = vld [vmem:[%s1676_s15 + $0xc0] ss:$8 sps:$4 sm:$0xff]   ;;  %v1560_v37 = vld [vmem:[%s1676_s15 + $0xd4] ss:$8 sps:$4 sm:$0xff]   ;;  %v1563_v39 = vld [vmem:[%s1676_s15 + $0xd0] ss:$8 sps:$4 sm:$0xff]  }
  0x19   : > { %1370 = vmatprep.subr.bf16.mxu0 %v1522_v10  ;;  %1477 = vmatprep.subr.bf16.mxu1 %v1522_v10  ;;  %v1564_v40 = vld [vmem:[%s1676_s15 + $0x64] ss:$8 sps:$4 sm:$0xff]   ;;  %v1568_v42 = vld [vmem:[%s1676_s15 + $0x60] ss:$8 sps:$4 sm:$0xff]   ;;  %v1570_v44 = vld [vmem:[%s1676_s15 + $0x74] ss:$8 sps:$4 sm:$0xff]  }
  0x1a   : > { %v1566_v41 = vld [vmem:[%s1676_s15 + $0xe4] ss:$8 sps:$4 sm:$0xff]   ;;  %v1569_v43 = vld [vmem:[%s1676_s15 + $0xe0] ss:$8 sps:$4 sm:$0xff]   ;;  %v1572_v45 = vld [vmem:[%s1676_s15 + $0xf4] ss:$8 sps:$4 sm:$0xff]  }
  0x1b   : > { %v1574_v46 = vld [vmem:[%s1676_s15 + $0x70] ss:$8 sps:$4 sm:$0xff]  }
  0x1c   : > { %1371 = vmatpush3.bf16.msra.mxu0 %v1523_v13  ;;  %1485 = vmatpush3.bf16.msra.mxu1 %v1523_v13  ;;  %v1575_v47 = vld [vmem:[%s1676_s15 + $0xf0] ss:$8 sps:$4 sm:$0xff]  }
  0x1d   : > { %1372 = vmatprep.subr.bf16.mxu0 %v1524_v14  ;;  %1478 = vmatprep.subr.bf16.mxu1 %v1524_v14 }
  0x20   : > { %1373 = vmatpush3.bf16.msra.mxu0 %v1525_v15  ;;  %1486 = vmatpush3.bf16.msra.mxu1 %v1525_v15 }
  0x21   : > { %1374 = vmatprep.subr.bf16.mxu0 %v1526_v16  ;;  %1479 = vmatprep.subr.bf16.mxu1 %v1526_v16 }
  0x24   : > { %1375 = vmatpush3.bf16.msra.mxu0 %v1527_v17  ;;  %1487 = vmatpush3.bf16.msra.mxu1 %v1527_v17 }
  0x27   : > { %623 = vmatmul.mubr.bf16.vlgmr.msra.gmra.mrb[0].mxu0 %v1528_v18  ;;  %687 = vmatmul.mubr.bf16.vlgmr.msra.gmra.mrb[0].mxu1 %v1531_v19 }
  0x28   : > { %630 = vmatprep.mubr.bf16.mxu0 %v1534_v20  ;;  %694 = vmatprep.mubr.bf16.mxu1 %v1536_v21 }
  0x2f   : > { %631 = vmatmul.mubr.bf16.gmra.mrb[4].mxu0 %v1538_v22  ;;  %695 = vmatmul.mubr.bf16.gmra.mrb[4].mxu1 %v1539_v23 }
  0x30   : > { %638 = vmatprep.mubr.bf16.mxu0 %v1540_v24  ;;  %702 = vmatprep.mubr.bf16.mxu1 %v1542_v25 }
  0x37   : > { %639 = vmatmul.mubr.bf16.gmra.mrb[8].mxu0 %v1544_v26  ;;  %703 = vmatmul.mubr.bf16.gmra.mrb[8].mxu1 %v1545_v27 }
  0x38   : > { %646 = vmatprep.mubr.bf16.mxu0 %v1546_v28  ;;  %710 = vmatprep.mubr.bf16.mxu1 %v1548_v29 }
  0x3f   : > { %647 = vmatmul.mubr.bf16.gmra.mrb[12].mxu0 %v1550_v30  ;;  %711 = vmatmul.mubr.bf16.gmra.mrb[12].mxu1 %v1551_v31 }
  0x40   : > { %654 = vmatprep.mubr.bf16.mxu0 %v1552_v32  ;;  %718 = vmatprep.mubr.bf16.mxu1 %v1554_v33 }
  0x47   : > { %655 = vmatmul.mubr.bf16.gmra.mrb[16].mxu0 %v1556_v34  ;;  %719 = vmatmul.mubr.bf16.gmra.mrb[16].mxu1 %v1557_v35 }
  0x48   : > { %662 = vmatprep.mubr.bf16.mxu0 %v1558_v36  ;;  %726 = vmatprep.mubr.bf16.mxu1 %v1560_v37 }
  0x4f   : > { %663 = vmatmul.mubr.bf16.gmra.mrb[20].mxu0 %v1562_v38  ;;  %727 = vmatmul.mubr.bf16.gmra.mrb[20].mxu1 %v1563_v39 }
  0x50   : > { %670 = vmatprep.mubr.bf16.mxu0 %v1564_v40  ;;  %734 = vmatprep.mubr.bf16.mxu1 %v1566_v41 }
  0x57   : > { %671 = vmatmul.mubr.bf16.gmra.mrb[24].mxu0 %v1568_v42  ;;  %735 = vmatmul.mubr.bf16.gmra.mrb[24].mxu1 %v1569_v43 }
  0x58   : > { %678 = vmatprep.mubr.bf16.mxu0 %v1570_v44  ;;  %742 = vmatprep.mubr.bf16.mxu1 %v1572_v45 }
  0x5f   : > { %679 = vmatmul.mubr.bf16.gmra.mrb[28].mxu0 %v1574_v46  ;;  %743 = vmatmul.mubr.bf16.gmra.mrb[28].mxu1 %v1575_v47 }
  0xfa   : > { %v1376_v48 = vpop.f32.mrb[0].mxu0  ;;  %v1424_v49 = vpop.f32.mrb[0].mxu1 }
  0xfb   : > { %v1377_v50 = vpop.f32.mrb[1].mxu0  ;;  %v1425_v52 = vpop.f32.mrb[1].mxu1 }
  0xfc   : > { %v1378_v53 = vadd.f32 %v1377_v50, %v1376_v48  ;;  %v1426_v54 = vadd.f32 %v1425_v52, %v1424_v49  ;;  %v1379_v55 = vpop.f32.mrb[2].mxu0  ;;  %v1427_v56 = vpop.f32.mrb[2].mxu1 }
  0xfd   : > { %v1380_v58 = vpop.f32.mrb[3].mxu0  ;;  %v1428_v59 = vpop.f32.mrb[3].mxu1 }
  0xfe   : > { %v758_v60 = vmul.f32 %v1378_v53, %v1734_v51  ;;  %v774_v61 = vmul.f32 %v1426_v54, %v1734_v51  ;;  %v1381_v62 = vadd.f32 %v1380_v58, %v1379_v55  ;;  %v1429_v63 = vadd.f32 %v1428_v59, %v1427_v56 }
 0x100   : > { %v797_v0 = vadd.f32 %v1739_v57, %v758_v60  ;;  %v813_v1 = vadd.f32 %v1739_v57, %v774_v61  ;;  %v759_v2 = vmul.f32 %v1381_v62, %v1734_v51  ;;  %v775_v3 = vmul.f32 %v1429_v63, %v1734_v51 }
 0x102   : > { %v798_v4 = vadd.f32 %v1739_v57, %v759_v2  ;;  %v814_v5 = vadd.f32 %v1739_v57, %v775_v3  ;;  %v1382_v6 = vpop.f32.mrb[4].mxu0  ;;  %v1430_v7 = vpop.f32.mrb[4].mxu1  ;;  %v829_v8 = vmax.f32 %v797_v0, 0.0  ;;  %v845_v9 = vmax.f32 %v813_v1, 0.0 }
 0x103   : > { %v1383_v10 = vpop.f32.mrb[5].mxu0  ;;  %v1431_v11 = vpop.f32.mrb[5].mxu1 }
 0x104   : > { %v830_v12 = vmax.f32 %v798_v4, 0.0  ;;  %v846_v13 = vmax.f32 %v814_v5, 0.0  ;;  %v1384_v14 = vadd.f32 %v1383_v10, %v1382_v6  ;;  %v1432_v15 = vadd.f32 %v1431_v11, %v1430_v7  ;;  %v1385_v16 = vpop.f32.mrb[6].mxu0  ;;  %v1433_v17 = vpop.f32.mrb[6].mxu1 }
 0x105   : > { %v1386_v18 = vpop.f32.mrb[7].mxu0  ;;  %v1434_v19 = vpop.f32.mrb[7].mxu1 }
 0x106   : > { %v1268_v20 = vpack.c.bf16 %v830_v12, %v829_v8  ;;  %v1308_v21 = vpack.c.bf16 %v846_v13, %v845_v9  ;;  %v760_v22 = vmul.f32 %v1384_v14, %v1734_v51  ;;  %v776_v23 = vmul.f32 %v1432_v15, %v1734_v51 }
 0x107   : > { %v1387_v24 = vadd.f32 %v1386_v18, %v1385_v16  ;;  %v1435_v25 = vadd.f32 %v1434_v19, %v1433_v17 }
 0x108   : > { %1269 = vst [vmem:[%s1753_s21] sm:$0xff] %v1268_v20   ;;  %1352 = vst [vmem:[%s1753_s21 + $0x40] sm:$0xff] %v1308_v21   ;;  %v799_v26 = vadd.f32 %v1739_v57, %v760_v22  ;;  %v815_v27 = vadd.f32 %v1739_v57, %v776_v23 }
 0x109   : > { %v761_v28 = vmul.f32 %v1387_v24, %v1734_v51  ;;  %v777_v29 = vmul.f32 %v1435_v25, %v1734_v51 }
 0x10a   : > { %v1388_v30 = vpop.f32.mrb[8].mxu0  ;;  %v1436_v31 = vpop.f32.mrb[8].mxu1  ;;  %v831_v40 = vmax.f32 %v799_v26, 0.0  ;;  %v847_v41 = vmax.f32 %v815_v27, 0.0 }
 0x10b   : > { %v800_v32 = vadd.f32 %v1739_v57, %v761_v28  ;;  %v816_v33 = vadd.f32 %v1739_v57, %v777_v29  ;;  %v1389_v34 = vpop.f32.mrb[9].mxu0  ;;  %v1437_v35 = vpop.f32.mrb[9].mxu1 }
 0x10c   : > { %v1390_v36 = vadd.f32 %v1389_v34, %v1388_v30  ;;  %v1438_v37 = vadd.f32 %v1437_v35, %v1436_v31  ;;  %v1391_v38 = vpop.f32.mrb[10].mxu0  ;;  %v1439_v39 = vpop.f32.mrb[10].mxu1 }
 0x10d   : > { %v832_v42 = vmax.f32 %v800_v32, 0.0  ;;  %v848_v43 = vmax.f32 %v816_v33, 0.0  ;;  %v1392_v44 = vpop.f32.mrb[11].mxu0  ;;  %v1440_v45 = vpop.f32.mrb[11].mxu1 }
 0x10e   : > { %v762_v46 = vmul.f32 %v1390_v36, %v1734_v51  ;;  %v778_v47 = vmul.f32 %v1438_v37, %v1734_v51  ;;  %v1393_v48 = vadd.f32 %v1392_v44, %v1391_v38  ;;  %v1441_v49 = vadd.f32 %v1440_v45, %v1439_v39 }
 0x10f   : > { %v1273_v50 = vpack.c.bf16 %v832_v42, %v831_v40  ;;  %v1313_v52 = vpack.c.bf16 %v848_v43, %v847_v41 }
 0x110   : > { %v801_v53 = vadd.f32 %v1739_v57, %v762_v46  ;;  %v817_v54 = vadd.f32 %v1739_v57, %v778_v47  ;;  %v763_v55 = vmul.f32 %v1393_v48, %v1734_v51  ;;  %v779_v56 = vmul.f32 %v1441_v49, %v1734_v51 }
 0x111   : > { %1345 = vst [vmem:[%s1753_s21 + $0x8] sm:$0xff] %v1273_v50   ;;  %1353 = vst [vmem:[%s1753_s21 + $0x48] sm:$0xff] %v1313_v52  }
 0x112   : > { %v802_v58 = vadd.f32 %v1739_v57, %v763_v55  ;;  %v818_v59 = vadd.f32 %v1739_v57, %v779_v56  ;;  %v1394_v60 = vpop.f32.mrb[12].mxu0  ;;  %v1442_v61 = vpop.f32.mrb[12].mxu1  ;;  %v833_v62 = vmax.f32 %v801_v53, 0.0  ;;  %v849_v63 = vmax.f32 %v817_v54, 0.0 }
 0x113   : > { %v1395_v0 = vpop.f32.mrb[13].mxu0  ;;  %v1443_v1 = vpop.f32.mrb[13].mxu1 }
 0x114   : > { %v834_v2 = vmax.f32 %v802_v58, 0.0  ;;  %v850_v3 = vmax.f32 %v818_v59, 0.0  ;;  %v1396_v4 = vadd.f32 %v1395_v0, %v1394_v60  ;;  %v1444_v5 = vadd.f32 %v1443_v1, %v1442_v61  ;;  %v1397_v6 = vpop.f32.mrb[14].mxu0  ;;  %v1445_v7 = vpop.f32.mrb[14].mxu1 }
 0x115   : > { %v1398_v8 = vpop.f32.mrb[15].mxu0  ;;  %v1446_v9 = vpop.f32.mrb[15].mxu1 }
 0x116   : > { %v1278_v10 = vpack.c.bf16 %v834_v2, %v833_v62  ;;  %v1318_v11 = vpack.c.bf16 %v850_v3, %v849_v63  ;;  %v764_v12 = vmul.f32 %v1396_v4, %v1734_v51  ;;  %v780_v13 = vmul.f32 %v1444_v5, %v1734_v51 }
 0x117   : > { %v1399_v14 = vadd.f32 %v1398_v8, %v1397_v6  ;;  %v1447_v15 = vadd.f32 %v1446_v9, %v1445_v7 }
 0x118   : > { %1346 = vst [vmem:[%s1753_s21 + $0x10] sm:$0xff] %v1278_v10   ;;  %1354 = vst [vmem:[%s1753_s21 + $0x50] sm:$0xff] %v1318_v11   ;;  %v803_v16 = vadd.f32 %v1739_v57, %v764_v12  ;;  %v819_v17 = vadd.f32 %v1739_v57, %v780_v13 }
 0x119   : > { %v765_v18 = vmul.f32 %v1399_v14, %v1734_v51  ;;  %v781_v19 = vmul.f32 %v1447_v15, %v1734_v51 }
 0x11a   : > { %v1400_v20 = vpop.f32.mrb[16].mxu0  ;;  %v1448_v21 = vpop.f32.mrb[16].mxu1  ;;  %v835_v30 = vmax.f32 %v803_v16, 0.0  ;;  %v851_v31 = vmax.f32 %v819_v17, 0.0 }
 0x11b   : > { %v804_v22 = vadd.f32 %v1739_v57, %v765_v18  ;;  %v820_v23 = vadd.f32 %v1739_v57, %v781_v19  ;;  %v1401_v24 = vpop.f32.mrb[17].mxu0  ;;  %v1449_v25 = vpop.f32.mrb[17].mxu1 }
 0x11c   : > { %v1402_v26 = vadd.f32 %v1401_v24, %v1400_v20  ;;  %v1450_v27 = vadd.f32 %v1449_v25, %v1448_v21  ;;  %v1403_v28 = vpop.f32.mrb[18].mxu0  ;;  %v1451_v29 = vpop.f32.mrb[18].mxu1 }
 0x11d   : > { %v836_v32 = vmax.f32 %v804_v22, 0.0  ;;  %v852_v33 = vmax.f32 %v820_v23, 0.0  ;;  %v1404_v34 = vpop.f32.mrb[19].mxu0  ;;  %v1452_v35 = vpop.f32.mrb[19].mxu1 }
 0x11e   : > { %v766_v36 = vmul.f32 %v1402_v26, %v1734_v51  ;;  %v782_v37 = vmul.f32 %v1450_v27, %v1734_v51  ;;  %v1405_v38 = vadd.f32 %v1404_v34, %v1403_v28  ;;  %v1453_v39 = vadd.f32 %v1452_v35, %v1451_v29 }
 0x11f   : > { %v1283_v40 = vpack.c.bf16 %v836_v32, %v835_v30  ;;  %v1323_v41 = vpack.c.bf16 %v852_v33, %v851_v31 }
 0x120   : > { %v805_v42 = vadd.f32 %v1739_v57, %v766_v36  ;;  %v821_v43 = vadd.f32 %v1739_v57, %v782_v37  ;;  %v767_v44 = vmul.f32 %v1405_v38, %v1734_v51  ;;  %v783_v45 = vmul.f32 %v1453_v39, %v1734_v51 }
 0x121   : > { %1347 = vst [vmem:[%s1753_s21 + $0x18] sm:$0xff] %v1283_v40   ;;  %1355 = vst [vmem:[%s1753_s21 + $0x58] sm:$0xff] %v1323_v41  }
 0x122   : > { %v806_v46 = vadd.f32 %v1739_v57, %v767_v44  ;;  %v822_v47 = vadd.f32 %v1739_v57, %v783_v45  ;;  %v1406_v48 = vpop.f32.mrb[20].mxu0  ;;  %v1454_v49 = vpop.f32.mrb[20].mxu1  ;;  %v837_v50 = vmax.f32 %v805_v42, 0.0  ;;  %v853_v52 = vmax.f32 %v821_v43, 0.0 }
 0x123   : > { %v1407_v53 = vpop.f32.mrb[21].mxu0  ;;  %v1455_v54 = vpop.f32.mrb[21].mxu1 }
 0x124   : > { %v838_v55 = vmax.f32 %v806_v46, 0.0  ;;  %v854_v56 = vmax.f32 %v822_v47, 0.0  ;;  %v1408_v58 = vadd.f32 %v1407_v53, %v1406_v48  ;;  %v1456_v59 = vadd.f32 %v1455_v54, %v1454_v49  ;;  %v1409_v60 = vpop.f32.mrb[22].mxu0  ;;  %v1457_v61 = vpop.f32.mrb[22].mxu1 }
 0x125   : > { %v1410_v62 = vpop.f32.mrb[23].mxu0  ;;  %v1458_v63 = vpop.f32.mrb[23].mxu1 }
 0x126   : > { %v1288_v0 = vpack.c.bf16 %v838_v55, %v837_v50  ;;  %v1328_v1 = vpack.c.bf16 %v854_v56, %v853_v52  ;;  %v768_v2 = vmul.f32 %v1408_v58, %v1734_v51  ;;  %v784_v3 = vmul.f32 %v1456_v59, %v1734_v51 }
 0x127   : > { %v1411_v4 = vadd.f32 %v1410_v62, %v1409_v60  ;;  %v1459_v5 = vadd.f32 %v1458_v63, %v1457_v61 }
 0x128   : > { %1348 = vst [vmem:[%s1753_s21 + $0x20] sm:$0xff] %v1288_v0   ;;  %1356 = vst [vmem:[%s1753_s21 + $0x60] sm:$0xff] %v1328_v1   ;;  %v807_v6 = vadd.f32 %v1739_v57, %v768_v2  ;;  %v823_v7 = vadd.f32 %v1739_v57, %v784_v3 }
 0x129   : > { %v769_v8 = vmul.f32 %v1411_v4, %v1734_v51  ;;  %v785_v9 = vmul.f32 %v1459_v5, %v1734_v51 }
 0x12a   : > { %v1412_v10 = vpop.f32.mrb[24].mxu0  ;;  %v1460_v11 = vpop.f32.mrb[24].mxu1  ;;  %v839_v20 = vmax.f32 %v807_v6, 0.0  ;;  %v855_v21 = vmax.f32 %v823_v7, 0.0 }
 0x12b   : > { %v808_v12 = vadd.f32 %v1739_v57, %v769_v8  ;;  %v824_v13 = vadd.f32 %v1739_v57, %v785_v9  ;;  %v1413_v14 = vpop.f32.mrb[25].mxu0  ;;  %v1461_v15 = vpop.f32.mrb[25].mxu1 }
 0x12c   : > { %v1414_v16 = vadd.f32 %v1413_v14, %v1412_v10  ;;  %v1462_v17 = vadd.f32 %v1461_v15, %v1460_v11  ;;  %v1415_v18 = vpop.f32.mrb[26].mxu0  ;;  %v1463_v19 = vpop.f32.mrb[26].mxu1 }
 0x12d   : > { %v840_v22 = vmax.f32 %v808_v12, 0.0  ;;  %v856_v23 = vmax.f32 %v824_v13, 0.0  ;;  %v1416_v24 = vpop.f32.mrb[27].mxu0  ;;  %v1464_v25 = vpop.f32.mrb[27].mxu1 }
 0x12e   : > { %v770_v26 = vmul.f32 %v1414_v16, %v1734_v51  ;;  %v786_v27 = vmul.f32 %v1462_v17, %v1734_v51  ;;  %v1417_v28 = vadd.f32 %v1416_v24, %v1415_v18  ;;  %v1465_v29 = vadd.f32 %v1464_v25, %v1463_v19 }
 0x12f   : > { %v1293_v30 = vpack.c.bf16 %v840_v22, %v839_v20  ;;  %v1333_v31 = vpack.c.bf16 %v856_v23, %v855_v21 }
 0x130   : > { %v809_v32 = vadd.f32 %v1739_v57, %v770_v26  ;;  %v825_v33 = vadd.f32 %v1739_v57, %v786_v27  ;;  %v771_v34 = vmul.f32 %v1417_v28, %v1734_v51  ;;  %v787_v35 = vmul.f32 %v1465_v29, %v1734_v51 }
 0x131   : > { %1349 = vst [vmem:[%s1753_s21 + $0x28] sm:$0xff] %v1293_v30   ;;  %1357 = vst [vmem:[%s1753_s21 + $0x68] sm:$0xff] %v1333_v31  }
 0x132   : > { %v810_v36 = vadd.f32 %v1739_v57, %v771_v34  ;;  %v826_v37 = vadd.f32 %v1739_v57, %v787_v35  ;;  %v1418_v38 = vpop.f32.mrb[28].mxu0  ;;  %v1466_v39 = vpop.f32.mrb[28].mxu1  ;;  %v841_v40 = vmax.f32 %v809_v32, 0.0  ;;  %v857_v41 = vmax.f32 %v825_v33, 0.0 }
 0x133   : > { %v1419_v42 = vpop.f32.mrb[29].mxu0  ;;  %v1467_v43 = vpop.f32.mrb[29].mxu1 }
 0x134   : > { %v842_v44 = vmax.f32 %v810_v36, 0.0  ;;  %v858_v45 = vmax.f32 %v826_v37, 0.0  ;;  %v1420_v46 = vadd.f32 %v1419_v42, %v1418_v38  ;;  %v1468_v47 = vadd.f32 %v1467_v43, %v1466_v39  ;;  %v1421_v48 = vpop.f32.mrb[30].mxu0  ;;  %v1469_v49 = vpop.f32.mrb[30].mxu1 }
 0x135   : > { %v1422_v50 = vpop.f32.mrb[31].mxu0  ;;  %v1470_v52 = vpop.f32.mrb[31].mxu1 }
 0x136   : > { %v1298_v53 = vpack.c.bf16 %v842_v44, %v841_v40  ;;  %v1338_v54 = vpack.c.bf16 %v858_v45, %v857_v41  ;;  %v772_v55 = vmul.f32 %v1420_v46, %v1734_v51  ;;  %v788_v56 = vmul.f32 %v1468_v47, %v1734_v51 }
 0x137   : > { %v1423_v58 = vadd.f32 %v1422_v50, %v1421_v48  ;;  %v1471_v59 = vadd.f32 %v1470_v52, %v1469_v49 }
 0x138   : > { %1350 = vst [vmem:[%s1753_s21 + $0x30] sm:$0xff] %v1298_v53   ;;  %1358 = vst [vmem:[%s1753_s21 + $0x70] sm:$0xff] %v1338_v54   ;;  %v811_v60 = vadd.f32 %v1739_v57, %v772_v55  ;;  %v827_v61 = vadd.f32 %v1739_v57, %v788_v56 }
 0x139   : > { %v773_v62 = vmul.f32 %v1423_v58, %v1734_v51  ;;  %v789_v63 = vmul.f32 %v1471_v59, %v1734_v51 }
 0x13a   : > { %v843_v2 = vmax.f32 %v811_v60, 0.0  ;;  %v859_v3 = vmax.f32 %v827_v61, 0.0 }
 0x13b   : > { %v812_v0 = vadd.f32 %v1739_v57, %v773_v62  ;;  %v828_v1 = vadd.f32 %v1739_v57, %v789_v63 }
 0x13d   : > { %v844_v4 = vmax.f32 %v812_v0, 0.0  ;;  %v860_v5 = vmax.f32 %v828_v1, 0.0 }
 0x13f   : > { %v1303_v6 = vpack.c.bf16 %v844_v4, %v843_v2  ;;  %v1343_v7 = vpack.c.bf16 %v860_v5, %v859_v3 }
 0x141   : > { %1351 = vst [vmem:[%s1753_s21 + $0x38] sm:$0xff] %v1303_v6   ;;  %1359 = vst [vmem:[%s1753_s21 + $0x78] sm:$0xff] %v1343_v7  }
 0x142 PF: > { %s14_s17 = sadd.s32 1, %s1598_s17   ;;  %s1841_s15 = smov %s1594_s16 }
 0x143   : > { %p11_p5 = scmp.ge.s32.totalorder %s14_s17, 4   ;;  %s1842_s16 = smov %s1844_s18 }
 0x145   :  { %13 = sbr.rel (!%p11_p5) target bundleno = 2 (0x2), region = 75 }

// kernel: densenet_forward.16
= control target key start
LH: loop header
LB: loop body
LE: loop exit
PB: predicated region body
PF: predicated region fallthrough
CT: control target
= control target key end

     0   :  { %s808_s1 = inlined_call_operand.vmem [shape: bf16[128,128], index: 1, kind: input, shape index: {}]   ;;  %s809_s0 = inlined_call_operand.vmem [shape: bf16[128,128], index: 0, kind: input, shape index: {}]   ;;  %s810_s2 = inlined_call_operand.vmem [shape: f32[1,128], index: 2, kind: input, shape index: {}]   ;;  %s811_s3 = inlined_call_operand.vmem [shape: f32[1,128], index: 3, kind: input, shape index: {}]   ;;  %s812_s4 = inlined_call_operand.vmem [shape: f32[1,128], index: 4, kind: input, shape index: {}]   ;;  %s813_s5 = inlined_call_operand.vmem [shape: f32[1,128], index: 5, kind: input, shape index: {}]   ;;  %s814_s6 = inlined_call_operand.vmem [shape: bf16[128,128], index: 6, kind: output, shape index: {}]  }
   0x1   :  { %v627_v0 = vld [vmem:[%s808_s1] sm:$0xff]   ;;  %v628_v1 = vld [vmem:[%s808_s1 + $0x8] sm:$0xff]   ;;  %v629_v2 = vld [vmem:[%s808_s1 + $0x10] sm:$0xff]  }
   0x2   :  { %579 = vmatprep.subr.bf16.mxu0 %v627_v0  ;;  %611 = vmatprep.subr.bf16.mxu1 %v627_v0  ;;  %v630_v3 = vld [vmem:[%s808_s1 + $0x18] sm:$0xff]   ;;  %v478_v4 = vld [vmem:[%s809_s0] sm:$0xff]   ;;  %v549_v9 = vld [vmem:[%s809_s0 + $0x8] sm:$0xff]  }
   0x3   :  { %580 = vmatpush3.bf16.msra.mxu0 %v627_v0  ;;  %619 = vmatpush3.bf16.msra.mxu1 %v627_v0  ;;  %v688_v5 = vld [vmem:[%s810_s2] ss:$0 sm:$0xff]  ;;  %v479_v6 = vunpack.c.l.bf16 %v478_v4  ;;  %v480_v7 = vunpack.c.h.bf16 %v478_v4  ;;  %v553_v13 = vld [vmem:[%s809_s0 + $0x28] sm:$0xff]   ;;  %v550_v16 = vld [vmem:[%s809_s0 + $0x10] sm:$0xff]   ;;  %v483_v20 = vunpack.c.l.bf16 %v549_v9  ;;  %v484_v21 = vunpack.c.h.bf16 %v549_v9 }
   0x4   :  { %581 = vmatprep.subr.bf16.mxu0 %v628_v1  ;;  %612 = vmatprep.subr.bf16.mxu1 %v628_v1  ;;  %v552_v8 = vld [vmem:[%s809_s0 + $0x20] sm:$0xff]   ;;  %v499_v24 = vunpack.c.l.bf16 %v553_v13  ;;  %v500_v25 = vunpack.c.h.bf16 %v553_v13  ;;  %v487_v28 = vunpack.c.l.bf16 %v550_v16  ;;  %v554_v31 = vld [vmem:[%s809_s0 + $0x30] sm:$0xff]   ;;  %v632_v32 = vld [vmem:[%s808_s1 + $0x28] sm:$0xff]   ;;  %v488_v40 = vunpack.c.h.bf16 %v550_v16 }
   0x5   :  { %v699_v10 = vld [vmem:[%s811_s3] ss:$0 sm:$0xff]  ;;  %v495_v11 = vunpack.c.l.bf16 %v552_v8  ;;  %v496_v12 = vunpack.c.h.bf16 %v552_v8  ;;  %v63_v14 = vmul.f32 %v479_v6, %v688_v5  ;;  %v64_v15 = vmul.f32 %v480_v7, %v688_v5  ;;  %v551_v44 = vld [vmem:[%s809_s0 + $0x18] sm:$0xff]   ;;  %v633_v48 = vld [vmem:[%s808_s1 + $0x30] sm:$0xff]  }
   0x6   :  { %v631_v17 = vld [vmem:[%s808_s1 + $0x20] sm:$0xff]   ;;  %v65_v35 = vmul.f32 %v483_v20, %v688_v5  ;;  %v66_v36 = vmul.f32 %v484_v21, %v688_v5  ;;  %v73_v38 = vmul.f32 %v499_v24, %v688_v5  ;;  %v74_v39 = vmul.f32 %v500_v25, %v688_v5  ;;  %v555_v47 = vld [vmem:[%s809_s0 + $0x38] sm:$0xff]  }
   0x7   :  { %582 = vmatpush3.bf16.msra.mxu0 %v628_v1  ;;  %620 = vmatpush3.bf16.msra.mxu1 %v628_v1  ;;  %v71_v18 = vmul.f32 %v495_v11, %v688_v5  ;;  %v72_v19 = vmul.f32 %v496_v12, %v688_v5  ;;  %v86_v22 = vadd.f32 %v699_v10, %v63_v14  ;;  %v503_v43 = vunpack.c.l.bf16 %v554_v31  ;;  %v634_v63 = vld [vmem:[%s808_s1 + $0x38] sm:$0xff]  }
   0x8   :  { %583 = vmatprep.subr.bf16.mxu0 %v629_v2  ;;  %613 = vmatprep.subr.bf16.mxu1 %v629_v2  ;;  %v87_v23 = vadd.f32 %v699_v10, %v64_v15  ;;  %v67_v42 = vmul.f32 %v487_v28, %v688_v5  ;;  %v68_v45 = vmul.f32 %v488_v40, %v688_v5  ;;  %v504_v46 = vunpack.c.h.bf16 %v554_v31  ;;  %v766_v28 = vld [vmem:[%s813_s5] ss:$0 sm:$0xff] }
   0x9   :  { %v94_v26 = vadd.f32 %v699_v10, %v71_v18  ;;  %v95_v27 = vadd.f32 %v699_v10, %v72_v19  ;;  %v102_v29 = vmax.f32 %v86_v22, 0.0  ;;  %v88_v49 = vadd.f32 %v699_v10, %v65_v35 }
   0xa   :  { %v103_v30 = vmax.f32 %v87_v23, 0.0  ;;  %v89_v50 = vadd.f32 %v699_v10, %v66_v36  ;;  %v75_v51 = vmul.f32 %v503_v43, %v688_v5  ;;  %v96_v52 = vadd.f32 %v699_v10, %v73_v38 }
   0xb   :  { %584 = vmatpush3.bf16.msra.mxu0 %v629_v2  ;;  %621 = vmatpush3.bf16.msra.mxu1 %v629_v2  ;;  %v110_v33 = vmax.f32 %v94_v26, 0.0  ;;  %v111_v34 = vmax.f32 %v95_v27, 0.0  ;;  %v97_v53 = vadd.f32 %v699_v10, %v74_v39  ;;  %v76_v54 = vmul.f32 %v504_v46, %v688_v5 }
   0xc   :  { %585 = vmatprep.subr.bf16.mxu0 %v630_v3  ;;  %614 = vmatprep.subr.bf16.mxu1 %v630_v3  ;;  %v118_v37 = vpack.c.bf16 %v103_v30, %v102_v29  ;;  %v491_v55 = vunpack.c.l.bf16 %v551_v44  ;;  %v90_v56 = vadd.f32 %v699_v10, %v67_v42  ;;  %v492_v57 = vunpack.c.h.bf16 %v551_v44 }
   0xd   :  { %v122_v41 = vpack.c.bf16 %v111_v34, %v110_v33  ;;  %v507_v58 = vunpack.c.l.bf16 %v555_v47  ;;  %v508_v59 = vunpack.c.h.bf16 %v555_v47  ;;  %v91_v60 = vadd.f32 %v699_v10, %v68_v45 }
   0xe   :  { %595 = vmatprep.mubr.bf16.mxu0 %v118_v37  ;;  %v98_v61 = vadd.f32 %v699_v10, %v75_v51  ;;  %v99_v62 = vadd.f32 %v699_v10, %v76_v54  ;;  %v104_v0 = vmax.f32 %v88_v49, 0.0  ;;  %v105_v1 = vmax.f32 %v89_v50, 0.0 }
   0xf   :  { %586 = vmatpush3.bf16.msra.mxu0 %v630_v3  ;;  %622 = vmatpush3.bf16.msra.mxu1 %v630_v3  ;;  %v112_v2 = vmax.f32 %v96_v52, 0.0  ;;  %v113_v3 = vmax.f32 %v97_v53, 0.0  ;;  %v69_v4 = vmul.f32 %v491_v55, %v688_v5  ;;  %v70_v6 = vmul.f32 %v492_v57, %v688_v5 }
  0x10   :  { %587 = vmatprep.subr.bf16.mxu0 %v631_v17  ;;  %615 = vmatprep.subr.bf16.mxu1 %v631_v17  ;;  %v77_v7 = vmul.f32 %v507_v58, %v688_v5  ;;  %v78_v8 = vmul.f32 %v508_v59, %v688_v5  ;;  %v106_v9 = vmax.f32 %v90_v56, 0.0  ;;  %v107_v11 = vmax.f32 %v91_v60, 0.0 }
  0x11   :  { %603 = vmatprep.mubr.bf16.mxu1 %v122_v41  ;;  %v114_v12 = vmax.f32 %v98_v61, 0.0  ;;  %v115_v13 = vmax.f32 %v99_v62, 0.0  ;;  %v119_v14 = vpack.c.bf16 %v105_v1, %v104_v0  ;;  %v123_v15 = vpack.c.bf16 %v113_v3, %v112_v2 }
  0x12   :  { %v92_v16 = vadd.f32 %v699_v10, %v69_v4  ;;  %v100_v18 = vadd.f32 %v699_v10, %v77_v7  ;;  %v101_v19 = vadd.f32 %v699_v10, %v78_v8  ;;  %v120_v5 = vpack.c.bf16 %v107_v11, %v106_v9 }
  0x13   :  { %588 = vmatpush3.bf16.msra.mxu0 %v631_v17  ;;  %623 = vmatpush3.bf16.msra.mxu1 %v631_v17  ;;  %v93_v17 = vadd.f32 %v699_v10, %v70_v6  ;;  %v124_v20 = vpack.c.bf16 %v115_v13, %v114_v12  ;;  %v443_v10 = vld [vmem:[%s812_s4] ss:$0 sm:$0xff] }
  0x14   :  { %589 = vmatprep.subr.bf16.mxu0 %v632_v32  ;;  %616 = vmatprep.subr.bf16.mxu1 %v632_v32  ;;  %v108_v21 = vmax.f32 %v92_v16, 0.0  ;;  %v116_v23 = vmax.f32 %v100_v18, 0.0  ;;  %v117_v24 = vmax.f32 %v101_v19, 0.0 }
  0x15   :  { %v109_v22 = vmax.f32 %v93_v17, 0.0 }
  0x16   :  { %v125_v26 = vpack.c.bf16 %v117_v24, %v116_v23 }
  0x17   :  { %590 = vmatpush3.bf16.msra.mxu0 %v632_v32  ;;  %624 = vmatpush3.bf16.msra.mxu1 %v632_v32  ;;  %v121_v25 = vpack.c.bf16 %v109_v22, %v108_v21 }
  0x18   :  { %591 = vmatprep.subr.bf16.mxu0 %v633_v48  ;;  %617 = vmatprep.subr.bf16.mxu1 %v633_v48 }
  0x1b   :  { %592 = vmatpush3.bf16.msra.mxu0 %v633_v48  ;;  %625 = vmatpush3.bf16.msra.mxu1 %v633_v48 }
  0x1c   :  { %593 = vmatprep.subr.bf16.mxu0 %v634_v63  ;;  %618 = vmatprep.subr.bf16.mxu1 %v634_v63 }
  0x1f   :  { %594 = vmatpush3.bf16.msra.mxu0 %v634_v63  ;;  %626 = vmatpush3.bf16.msra.mxu1 %v634_v63 }
  0x22   :  { %596 = vmatmul.mubr.bf16.vlgmr.msra.gmra.mrb[0].mxu0 %v119_v14  ;;  %604 = vmatmul.mubr.bf16.vlgmr.msra.gmra.mrb[0].mxu1 %v123_v15 }
  0x23   :  { %599 = vmatprep.mubr.bf16.mxu0 %v120_v5  ;;  %607 = vmatprep.mubr.bf16.mxu1 %v124_v20 }
  0x2a   :  { %600 = vmatmul.mubr.bf16.gmra.mrb[4].mxu0 %v121_v25  ;;  %608 = vmatmul.mubr.bf16.gmra.mrb[4].mxu1 %v125_v26 }
  0xf5   :  { %v597_v27 = vpop.f32.mrb[0].mxu0  ;;  %v605_v29 = vpop.f32.mrb[0].mxu1 }
  0xf6   :  { %v296_v30 = vmul.f32 %v597_v27, %v443_v10  ;;  %v304_v31 = vmul.f32 %v605_v29, %v443_v10  ;;  %v224_v32 = vpop.f32.mrb[1].mxu0  ;;  %v256_v33 = vpop.f32.mrb[1].mxu1 }
  0xf7   :  { %v294_v34 = vmul.f32 %v443_v10, %v224_v32  ;;  %v302_v35 = vmul.f32 %v443_v10, %v256_v33  ;;  %v598_v36 = vpop.f32.mrb[2].mxu0  ;;  %v606_v37 = vpop.f32.mrb[2].mxu1 }
  0xf8   :  { %v319_v38 = vadd.f32 %v766_v28, %v296_v30  ;;  %v327_v39 = vadd.f32 %v766_v28, %v304_v31  ;;  %v297_v40 = vmul.f32 %v598_v36, %v443_v10  ;;  %v305_v41 = vmul.f32 %v606_v37, %v443_v10  ;;  %v227_v42 = vpop.f32.mrb[3].mxu0  ;;  %v259_v43 = vpop.f32.mrb[3].mxu1 }
  0xf9   :  { %v317_v44 = vadd.f32 %v766_v28, %v294_v34  ;;  %v325_v45 = vadd.f32 %v766_v28, %v302_v35  ;;  %v295_v46 = vmul.f32 %v443_v10, %v227_v42  ;;  %v303_v47 = vmul.f32 %v443_v10, %v259_v43 }
  0xfa   :  { %v320_v48 = vadd.f32 %v766_v28, %v297_v40  ;;  %v328_v49 = vadd.f32 %v766_v28, %v305_v41  ;;  %v335_v52 = vmax.f32 %v319_v38, 0.0  ;;  %v343_v53 = vmax.f32 %v327_v39, 0.0 }
  0xfb   :  { %v318_v50 = vadd.f32 %v766_v28, %v295_v46  ;;  %v326_v51 = vadd.f32 %v766_v28, %v303_v47  ;;  %v333_v56 = vmax.f32 %v317_v44, 0.0  ;;  %v341_v57 = vmax.f32 %v325_v45, 0.0 }
  0xfc   :  { %v336_v54 = vmax.f32 %v320_v48, 0.0  ;;  %v344_v55 = vmax.f32 %v328_v49, 0.0 }
  0xfd   :  { %v334_v58 = vmax.f32 %v318_v50, 0.0  ;;  %v342_v59 = vmax.f32 %v326_v51, 0.0  ;;  %v601_v60 = vpop.f32.mrb[4].mxu0  ;;  %v609_v61 = vpop.f32.mrb[4].mxu1 }
  0xfe   :  { %v517_v62 = vpack.c.bf16 %v336_v54, %v335_v52  ;;  %v537_v63 = vpack.c.bf16 %v344_v55, %v343_v53  ;;  %v300_v0 = vmul.f32 %v601_v60, %v443_v10  ;;  %v308_v1 = vmul.f32 %v609_v61, %v443_v10  ;;  %v240_v2 = vpop.f32.mrb[5].mxu0  ;;  %v272_v3 = vpop.f32.mrb[5].mxu1 }
  0xff   :  { %v512_v4 = vpack.c.bf16 %v334_v58, %v333_v56  ;;  %v532_v6 = vpack.c.bf16 %v342_v59, %v341_v57  ;;  %v298_v7 = vmul.f32 %v443_v10, %v240_v2  ;;  %v306_v8 = vmul.f32 %v443_v10, %v272_v3  ;;  %v602_v9 = vpop.f32.mrb[6].mxu0  ;;  %v610_v11 = vpop.f32.mrb[6].mxu1 }
 0x100   :  { %556 = vst [vmem:[%s814_s6 + $0x8] sm:$0xff] %v517_v62   ;;  %560 = vst [vmem:[%s814_s6 + $0x28] sm:$0xff] %v537_v63   ;;  %v323_v12 = vadd.f32 %v766_v28, %v300_v0  ;;  %v331_v13 = vadd.f32 %v766_v28, %v308_v1  ;;  %v301_v14 = vmul.f32 %v602_v9, %v443_v10  ;;  %v243_v16 = vpop.f32.mrb[7].mxu0  ;;  %v275_v17 = vpop.f32.mrb[7].mxu1 }
 0x101   :  { %v309_v15 = vmul.f32 %v610_v11, %v443_v10  ;;  %513 = vst [vmem:[%s814_s6] sm:$0xff] %v512_v4   ;;  %559 = vst [vmem:[%s814_s6 + $0x20] sm:$0xff] %v532_v6   ;;  %v321_v18 = vadd.f32 %v766_v28, %v298_v7  ;;  %v329_v19 = vadd.f32 %v766_v28, %v306_v8 }
 0x102   :  { %v299_v5 = vmul.f32 %v443_v10, %v243_v16  ;;  %v307_v20 = vmul.f32 %v443_v10, %v275_v17  ;;  %v324_v21 = vadd.f32 %v766_v28, %v301_v14  ;;  %v339_v25 = vmax.f32 %v323_v12, 0.0 }
 0x103   :  { %v332_v22 = vadd.f32 %v766_v28, %v309_v15  ;;  %v347_v26 = vmax.f32 %v331_v13, 0.0  ;;  %v337_v30 = vmax.f32 %v321_v18, 0.0  ;;  %v345_v31 = vmax.f32 %v329_v19, 0.0 }
 0x104   :  { %v322_v23 = vadd.f32 %v766_v28, %v299_v5  ;;  %v330_v24 = vadd.f32 %v766_v28, %v307_v20  ;;  %v340_v27 = vmax.f32 %v324_v21, 0.0 }
 0x105   :  { %v348_v29 = vmax.f32 %v332_v22, 0.0 }
 0x106   :  { %v338_v32 = vmax.f32 %v322_v23, 0.0  ;;  %v346_v33 = vmax.f32 %v330_v24, 0.0  ;;  %v527_v34 = vpack.c.bf16 %v340_v27, %v339_v25 }
 0x107   :  { %v547_v35 = vpack.c.bf16 %v348_v29, %v347_v26 }
 0x108   :  { %v522_v36 = vpack.c.bf16 %v338_v32, %v337_v30  ;;  %v542_v10 = vpack.c.bf16 %v346_v33, %v345_v31  ;;  %558 = vst [vmem:[%s814_s6 + $0x18] sm:$0xff] %v527_v34  }
 0x109   :  { %562 = vst [vmem:[%s814_s6 + $0x38] sm:$0xff] %v547_v35  }
 0x10a   :  { %557 = vst [vmem:[%s814_s6 + $0x10] sm:$0xff] %v522_v36   ;;  %561 = vst [vmem:[%s814_s6 + $0x30] sm:$0xff] %v542_v10  }

// kernel: densenet_forward.15
= control target key start
LH: loop header
LB: loop body
LE: loop exit
PB: predicated region body
PF: predicated region fallthrough
CT: control target
= control target key end

     0   :  { %vm153_vm0 = vcmask 125952   ;;  %s1385_s0 = inlined_call_operand.vmem [shape: bf16[9,128,16], index: 0, kind: input, shape index: {}]   ;;  %s1386_s1 = inlined_call_operand.vmem [shape: bf16[128,16], index: 1, kind: output, shape index: {}]  }
   0x1   :  { %v9_v0 = vld [vmem:[%s1385_s0] sm:$0xf]  ;;  %v10_v12 = vld [vmem:[%s1385_s0 + $0x4] sm:$0xf]  ;;  %v11_v33 = vld [vmem:[%s1385_s0 + $0x8] sm:$0xf] }
   0x2   :  { %v25_v1 = vld [vmem:[%s1385_s0 + $0x40] sm:$0xf]  ;;  %v156_v4 = vsel %vm153_vm0, %v9_v0, 4286644096  ;;  %v26_v13 = vld [vmem:[%s1385_s0 + $0x44] sm:$0xf] }
   0x3   :  { %v41_v2 = vld [vmem:[%s1385_s0 + $0x80] sm:$0xf]  ;;  %v159_v5 = vsel %vm153_vm0, %v25_v1, 4286644096  ;;  %v42_v14 = vld [vmem:[%s1385_s0 + $0x84] sm:$0xf] }
   0x4   :  { %v57_v3 = vld [vmem:[%s1385_s0 + $0xc0] sm:$0xf]  ;;  %v163_v6 = vsel %vm153_vm0, %v41_v2, 4286644096  ;;  %v161_v8 = vmax.bf16 %v159_v5, %v156_v4  ;;  %v58_v19 = vld [vmem:[%s1385_s0 + $0xc4] sm:$0xf] }
   0x5   :  { %v73_v7 = vld [vmem:[%s1385_s0 + $0x100] sm:$0xf]  ;;  %v167_v10 = vsel %vm153_vm0, %v57_v3, 4286644096  ;;  %v191_v20 = vsel %vm153_vm0, %v10_v12, 4286644096 }
   0x6   :  { %v89_v9 = vld [vmem:[%s1385_s0 + $0x140] sm:$0xf]  ;;  %v165_v11 = vmax.bf16 %v163_v6, %v161_v8  ;;  %v171_v15 = vsel %vm153_vm0, %v73_v7, 4286644096  ;;  %v194_v21 = vsel %vm153_vm0, %v26_v13, 4286644096 }
   0x7   :  { %v105_v16 = vld [vmem:[%s1385_s0 + $0x180] sm:$0xf]  ;;  %v175_v18 = vsel %vm153_vm0, %v89_v9, 4286644096  ;;  %v198_v22 = vsel %vm153_vm0, %v42_v14, 4286644096  ;;  %v196_v27 = vmax.bf16 %v194_v21, %v191_v20 }
   0x8   :  { %v169_v17 = vmax.bf16 %v167_v10, %v165_v11  ;;  %v121_v23 = vld [vmem:[%s1385_s0 + $0x1c0] sm:$0xf]  ;;  %v74_v26 = vld [vmem:[%s1385_s0 + $0x104] sm:$0xf]  ;;  %v179_v28 = vsel %vm153_vm0, %v105_v16, 4286644096 }
   0x9   :  { %v137_v24 = vld [vmem:[%s1385_s0 + $0x200] sm:$0xf]  ;;  %v90_v29 = vld [vmem:[%s1385_s0 + $0x144] sm:$0xf]  ;;  %v202_v30 = vsel %vm153_vm0, %v58_v19, 4286644096  ;;  %v200_v32 = vmax.bf16 %v198_v22, %v196_v27 }
   0xa   :  { %v173_v25 = vmax.bf16 %v171_v15, %v169_v17  ;;  %v27_v34 = vld [vmem:[%s1385_s0 + $0x48] sm:$0xf]  ;;  %v183_v36 = vsel %vm153_vm0, %v121_v23, 4286644096  ;;  %v187_v37 = vsel %vm153_vm0, %v137_v24, 4286644096 }
   0xb   :  { %v43_v35 = vld [vmem:[%s1385_s0 + $0x88] sm:$0xf]  ;;  %v206_v38 = vsel %vm153_vm0, %v74_v26, 4286644096  ;;  %v106_v40 = vld [vmem:[%s1385_s0 + $0x184] sm:$0xf]  ;;  %v204_v41 = vmax.bf16 %v202_v30, %v200_v32 }
   0xc   :  { %v177_v31 = vmax.bf16 %v175_v18, %v173_v25  ;;  %v210_v42 = vsel %vm153_vm0, %v90_v29, 4286644096  ;;  %v59_v43 = vld [vmem:[%s1385_s0 + $0xc8] sm:$0xf]  ;;  %v226_v44 = vsel %vm153_vm0, %v11_v33, 4286644096 }
   0xd   :  { %v229_v45 = vsel %vm153_vm0, %v27_v34, 4286644096  ;;  %v233_v46 = vsel %vm153_vm0, %v43_v35, 4286644096  ;;  %v122_v48 = vld [vmem:[%s1385_s0 + $0x1c4] sm:$0xf]  ;;  %v208_v50 = vmax.bf16 %v206_v38, %v204_v41 }
   0xe   :  { %v181_v39 = vmax.bf16 %v179_v28, %v177_v31  ;;  %v138_v49 = vld [vmem:[%s1385_s0 + $0x204] sm:$0xf]  ;;  %v75_v51 = vld [vmem:[%s1385_s0 + $0x108] sm:$0xf]  ;;  %v231_v52 = vmax.bf16 %v229_v45, %v226_v44  ;;  %v214_v53 = vsel %vm153_vm0, %v106_v40, 4286644096 }
   0xf   :  { %v91_v54 = vld [vmem:[%s1385_s0 + $0x148] sm:$0xf]  ;;  %v237_v55 = vsel %vm153_vm0, %v59_v43, 4286644096  ;;  %v212_v57 = vmax.bf16 %v210_v42, %v208_v50  ;;  %v12_v59 = vld [vmem:[%s1385_s0 + $0xc] sm:$0xf] }
  0x10   :  { %v185_v47 = vmax.bf16 %v183_v36, %v181_v39  ;;  %v235_v58 = vmax.bf16 %v233_v46, %v231_v52  ;;  %v28_v60 = vld [vmem:[%s1385_s0 + $0x4c] sm:$0xf]  ;;  %v218_v62 = vsel %vm153_vm0, %v122_v48, 4286644096  ;;  %v222_v63 = vsel %vm153_vm0, %v138_v49, 4286644096 }
  0x11   :  { %v44_v61 = vld [vmem:[%s1385_s0 + $0x8c] sm:$0xf]  ;;  %v241_v0 = vsel %vm153_vm0, %v75_v51, 4286644096  ;;  %v216_v1 = vmax.bf16 %v214_v53, %v212_v57  ;;  %v107_v2 = vld [vmem:[%s1385_s0 + $0x188] sm:$0xf] }
  0x12   :  { %v189_v56 = vmax.bf16 %v187_v37, %v185_v47  ;;  %v239_v3 = vmax.bf16 %v237_v55, %v235_v58  ;;  %v245_v4 = vsel %vm153_vm0, %v91_v54, 4286644096  ;;  %v60_v5 = vld [vmem:[%s1385_s0 + $0xcc] sm:$0xf]  ;;  %v261_v6 = vsel %vm153_vm0, %v12_v59, 4286644096 }
  0x13   :  { %v264_v7 = vsel %vm153_vm0, %v28_v60, 4286644096  ;;  %v268_v8 = vsel %vm153_vm0, %v44_v61, 4286644096  ;;  %v220_v9 = vmax.bf16 %v218_v62, %v216_v1  ;;  %v123_v10 = vld [vmem:[%s1385_s0 + $0x1c8] sm:$0xf] }
  0x14   :  { %715 = vst.msk [vmem:[%s1386_s1] sm:$0xf] %vm153_vm0, %v189_v56  ;;  %v139_v11 = vld [vmem:[%s1385_s0 + $0x208] sm:$0xf]  ;;  %v243_v12 = vmax.bf16 %v241_v0, %v239_v3  ;;  %v76_v13 = vld [vmem:[%s1385_s0 + $0x10c] sm:$0xf]  ;;  %v266_v14 = vmax.bf16 %v264_v7, %v261_v6 }
  0x15   :  { %v249_v15 = vsel %vm153_vm0, %v107_v2, 4286644096  ;;  %v92_v16 = vld [vmem:[%s1385_s0 + $0x14c] sm:$0xf]  ;;  %v272_v17 = vsel %vm153_vm0, %v60_v5, 4286644096  ;;  %v224_v18 = vmax.bf16 %v222_v63, %v220_v9 }
  0x16   :  { %v247_v19 = vmax.bf16 %v245_v4, %v243_v12  ;;  %v270_v20 = vmax.bf16 %v268_v8, %v266_v14  ;;  %v13_v21 = vld [vmem:[%s1385_s0 + $0x10] sm:$0xf]  ;;  %v253_v24 = vsel %vm153_vm0, %v123_v10, 4286644096  ;;  %v257_v25 = vsel %vm153_vm0, %v139_v11, 4286644096 }
  0x17   :  { %v29_v22 = vld [vmem:[%s1385_s0 + $0x50] sm:$0xf]  ;;  %v276_v26 = vsel %vm153_vm0, %v76_v13, 4286644096  ;;  %716 = vst.msk [vmem:[%s1386_s1 + $0x4] sm:$0xf] %vm153_vm0, %v224_v18 }
  0x18   :  { %v45_v23 = vld [vmem:[%s1385_s0 + $0x90] sm:$0xf]  ;;  %v251_v27 = vmax.bf16 %v249_v15, %v247_v19  ;;  %v108_v28 = vld [vmem:[%s1385_s0 + $0x18c] sm:$0xf]  ;;  %v274_v29 = vmax.bf16 %v272_v17, %v270_v20  ;;  %v280_v30 = vsel %vm153_vm0, %v92_v16, 4286644096 }
  0x19   :  { %v61_v31 = vld [vmem:[%s1385_s0 + $0xd0] sm:$0xf]  ;;  %v296_v32 = vsel %vm153_vm0, %v13_v21, 4286644096  ;;  %v299_v33 = vsel %vm153_vm0, %v29_v22, 4286644096 }
  0x1a   :  { %v303_v34 = vsel %vm153_vm0, %v45_v23, 4286644096  ;;  %v255_v35 = vmax.bf16 %v253_v24, %v251_v27  ;;  %v124_v36 = vld [vmem:[%s1385_s0 + $0x1cc] sm:$0xf]  ;;  %v278_v38 = vmax.bf16 %v276_v26, %v274_v29  ;;  %v77_v39 = vld [vmem:[%s1385_s0 + $0x110] sm:$0xf]  ;;  %v301_v40 = vmax.bf16 %v299_v33, %v296_v32 }
  0x1b   :  { %v140_v37 = vld [vmem:[%s1385_s0 + $0x20c] sm:$0xf]  ;;  %v284_v41 = vsel %vm153_vm0, %v108_v28, 4286644096  ;;  %v93_v42 = vld [vmem:[%s1385_s0 + $0x150] sm:$0xf] }
  0x1c   :  { %v307_v43 = vsel %vm153_vm0, %v61_v31, 4286644096  ;;  %v259_v44 = vmax.bf16 %v257_v25, %v255_v35  ;;  %v282_v45 = vmax.bf16 %v280_v30, %v278_v38  ;;  %v305_v46 = vmax.bf16 %v303_v34, %v301_v40  ;;  %v14_v47 = vld [vmem:[%s1385_s0 + $0x14] sm:$0xf]  ;;  %v109_v54 = vld [vmem:[%s1385_s0 + $0x190] sm:$0xf] }
  0x1d   :  { %v30_v48 = vld [vmem:[%s1385_s0 + $0x54] sm:$0xf]  ;;  %v288_v50 = vsel %vm153_vm0, %v124_v36, 4286644096  ;;  %v292_v51 = vsel %vm153_vm0, %v140_v37, 4286644096 }
  0x1e   :  { %v46_v49 = vld [vmem:[%s1385_s0 + $0x94] sm:$0xf]  ;;  %v311_v52 = vsel %vm153_vm0, %v77_v39, 4286644096  ;;  %717 = vst.msk [vmem:[%s1386_s1 + $0x8] sm:$0xf] %vm153_vm0, %v259_v44  ;;  %v286_v53 = vmax.bf16 %v284_v41, %v282_v45  ;;  %v309_v55 = vmax.bf16 %v307_v43, %v305_v46 }
  0x1f   :  { %v315_v56 = vsel %vm153_vm0, %v93_v42, 4286644096  ;;  %v62_v57 = vld [vmem:[%s1385_s0 + $0xd4] sm:$0xf]  ;;  %v331_v58 = vsel %vm153_vm0, %v14_v47, 4286644096 }
  0x20   :  { %v334_v59 = vsel %vm153_vm0, %v30_v48, 4286644096  ;;  %v338_v60 = vsel %vm153_vm0, %v46_v49, 4286644096  ;;  %v290_v61 = vmax.bf16 %v288_v50, %v286_v53  ;;  %v125_v62 = vld [vmem:[%s1385_s0 + $0x1d0] sm:$0xf]  ;;  %v313_v0 = vmax.bf16 %v311_v52, %v309_v55 }
  0x21   :  { %v141_v63 = vld [vmem:[%s1385_s0 + $0x210] sm:$0xf]  ;;  %v78_v1 = vld [vmem:[%s1385_s0 + $0x114] sm:$0xf]  ;;  %v336_v2 = vmax.bf16 %v334_v59, %v331_v58  ;;  %v319_v3 = vsel %vm153_vm0, %v109_v54, 4286644096 }
  0x22   :  { %v94_v4 = vld [vmem:[%s1385_s0 + $0x154] sm:$0xf]  ;;  %v342_v5 = vsel %vm153_vm0, %v62_v57, 4286644096  ;;  %v294_v6 = vmax.bf16 %v292_v51, %v290_v61  ;;  %v317_v7 = vmax.bf16 %v315_v56, %v313_v0  ;;  %v15_v9 = vld [vmem:[%s1385_s0 + $0x18] sm:$0xf] }
  0x23   :  { %v340_v8 = vmax.bf16 %v338_v60, %v336_v2  ;;  %v31_v10 = vld [vmem:[%s1385_s0 + $0x58] sm:$0xf]  ;;  %v323_v12 = vsel %vm153_vm0, %v125_v62, 4286644096  ;;  %v327_v13 = vsel %vm153_vm0, %v141_v63, 4286644096 }
  0x24   :  { %v47_v11 = vld [vmem:[%s1385_s0 + $0x98] sm:$0xf]  ;;  %v346_v14 = vsel %vm153_vm0, %v78_v1, 4286644096  ;;  %718 = vst.msk [vmem:[%s1386_s1 + $0xc] sm:$0xf] %vm153_vm0, %v294_v6  ;;  %v321_v15 = vmax.bf16 %v319_v3, %v317_v7 }
  0x25   :  { %v110_v16 = vld [vmem:[%s1385_s0 + $0x194] sm:$0xf]  ;;  %v344_v17 = vmax.bf16 %v342_v5, %v340_v8  ;;  %v350_v18 = vsel %vm153_vm0, %v94_v4, 4286644096  ;;  %v63_v19 = vld [vmem:[%s1385_s0 + $0xd8] sm:$0xf] }
  0x26   :  { %v366_v20 = vsel %vm153_vm0, %v15_v9, 4286644096  ;;  %v369_v21 = vsel %vm153_vm0, %v31_v10, 4286644096  ;;  %v373_v22 = vsel %vm153_vm0, %v47_v11, 4286644096  ;;  %v325_v23 = vmax.bf16 %v323_v12, %v321_v15 }
  0x27   :  { %v126_v24 = vld [vmem:[%s1385_s0 + $0x1d4] sm:$0xf]  ;;  %v348_v26 = vmax.bf16 %v346_v14, %v344_v17  ;;  %v79_v27 = vld [vmem:[%s1385_s0 + $0x118] sm:$0xf]  ;;  %v371_v28 = vmax.bf16 %v369_v21, %v366_v20  ;;  %v354_v29 = vsel %vm153_vm0, %v110_v16, 4286644096 }
  0x28   :  { %v142_v25 = vld [vmem:[%s1385_s0 + $0x214] sm:$0xf]  ;;  %v95_v30 = vld [vmem:[%s1385_s0 + $0x158] sm:$0xf]  ;;  %v377_v31 = vsel %vm153_vm0, %v63_v19, 4286644096  ;;  %v329_v32 = vmax.bf16 %v327_v13, %v325_v23 }
  0x29   :  { %v352_v33 = vmax.bf16 %v350_v18, %v348_v26  ;;  %v375_v34 = vmax.bf16 %v373_v22, %v371_v28  ;;  %v16_v35 = vld [vmem:[%s1385_s0 + $0x1c] sm:$0xf]  ;;  %v358_v38 = vsel %vm153_vm0, %v126_v24, 4286644096  ;;  %v362_v39 = vsel %vm153_vm0, %v142_v25, 4286644096 }
  0x2a   :  { %v32_v36 = vld [vmem:[%s1385_s0 + $0x5c] sm:$0xf]  ;;  %v381_v40 = vsel %vm153_vm0, %v79_v27, 4286644096  ;;  %719 = vst.msk [vmem:[%s1386_s1 + $0x10] sm:$0xf] %vm153_vm0, %v329_v32 }
  0x2b   :  { %v48_v37 = vld [vmem:[%s1385_s0 + $0x9c] sm:$0xf]  ;;  %v356_v41 = vmax.bf16 %v354_v29, %v352_v33  ;;  %v111_v42 = vld [vmem:[%s1385_s0 + $0x198] sm:$0xf]  ;;  %v379_v43 = vmax.bf16 %v377_v31, %v375_v34  ;;  %v385_v44 = vsel %vm153_vm0, %v95_v30, 4286644096 }
  0x2c   :  { %v64_v45 = vld [vmem:[%s1385_s0 + $0xdc] sm:$0xf]  ;;  %v401_v46 = vsel %vm153_vm0, %v16_v35, 4286644096  ;;  %v404_v47 = vsel %vm153_vm0, %v32_v36, 4286644096 }
  0x2d   :  { %v408_v48 = vsel %vm153_vm0, %v48_v37, 4286644096  ;;  %v360_v49 = vmax.bf16 %v358_v38, %v356_v41  ;;  %v127_v50 = vld [vmem:[%s1385_s0 + $0x1d8] sm:$0xf]  ;;  %v383_v52 = vmax.bf16 %v381_v40, %v379_v43  ;;  %v80_v53 = vld [vmem:[%s1385_s0 + $0x11c] sm:$0xf]  ;;  %v406_v54 = vmax.bf16 %v404_v47, %v401_v46 }
  0x2e   :  { %v143_v51 = vld [vmem:[%s1385_s0 + $0x218] sm:$0xf]  ;;  %v389_v55 = vsel %vm153_vm0, %v111_v42, 4286644096  ;;  %v96_v56 = vld [vmem:[%s1385_s0 + $0x15c] sm:$0xf] }
  0x2f   :  { %v412_v57 = vsel %vm153_vm0, %v64_v45, 4286644096  ;;  %v364_v58 = vmax.bf16 %v362_v39, %v360_v49  ;;  %v387_v59 = vmax.bf16 %v385_v44, %v383_v52  ;;  %v410_v60 = vmax.bf16 %v408_v48, %v406_v54  ;;  %v17_v61 = vld [vmem:[%s1385_s0 + $0x20] sm:$0xf]  ;;  %v112_v4 = vld [vmem:[%s1385_s0 + $0x19c] sm:$0xf] }
  0x30   :  { %v33_v62 = vld [vmem:[%s1385_s0 + $0x60] sm:$0xf]  ;;  %v393_v0 = vsel %vm153_vm0, %v127_v50, 4286644096  ;;  %v397_v1 = vsel %vm153_vm0, %v143_v51, 4286644096 }
  0x31   :  { %v49_v63 = vld [vmem:[%s1385_s0 + $0xa0] sm:$0xf]  ;;  %v416_v2 = vsel %vm153_vm0, %v80_v53, 4286644096  ;;  %720 = vst.msk [vmem:[%s1386_s1 + $0x14] sm:$0xf] %vm153_vm0, %v364_v58  ;;  %v391_v3 = vmax.bf16 %v389_v55, %v387_v59  ;;  %v414_v5 = vmax.bf16 %v412_v57, %v410_v60 }
  0x32   :  { %v420_v6 = vsel %vm153_vm0, %v96_v56, 4286644096  ;;  %v65_v7 = vld [vmem:[%s1385_s0 + $0xe0] sm:$0xf]  ;;  %v436_v8 = vsel %vm153_vm0, %v17_v61, 4286644096 }
  0x33   :  { %v439_v9 = vsel %vm153_vm0, %v33_v62, 4286644096  ;;  %v443_v10 = vsel %vm153_vm0, %v49_v63, 4286644096  ;;  %v395_v11 = vmax.bf16 %v393_v0, %v391_v3  ;;  %v128_v12 = vld [vmem:[%s1385_s0 + $0x1dc] sm:$0xf]  ;;  %v418_v14 = vmax.bf16 %v416_v2, %v414_v5 }
  0x34   :  { %v144_v13 = vld [vmem:[%s1385_s0 + $0x21c] sm:$0xf]  ;;  %v81_v15 = vld [vmem:[%s1385_s0 + $0x120] sm:$0xf]  ;;  %v441_v16 = vmax.bf16 %v439_v9, %v436_v8  ;;  %v424_v17 = vsel %vm153_vm0, %v112_v4, 4286644096 }
  0x35   :  { %v97_v18 = vld [vmem:[%s1385_s0 + $0x160] sm:$0xf]  ;;  %v447_v19 = vsel %vm153_vm0, %v65_v7, 4286644096  ;;  %v399_v20 = vmax.bf16 %v397_v1, %v395_v11  ;;  %v422_v21 = vmax.bf16 %v420_v6, %v418_v14  ;;  %v18_v23 = vld [vmem:[%s1385_s0 + $0x24] sm:$0xf] }
  0x36   :  { %v445_v22 = vmax.bf16 %v443_v10, %v441_v16  ;;  %v34_v24 = vld [vmem:[%s1385_s0 + $0x64] sm:$0xf]  ;;  %v428_v26 = vsel %vm153_vm0, %v128_v12, 4286644096  ;;  %v432_v27 = vsel %vm153_vm0, %v144_v13, 4286644096 }
  0x37   :  { %v50_v25 = vld [vmem:[%s1385_s0 + $0xa4] sm:$0xf]  ;;  %v451_v28 = vsel %vm153_vm0, %v81_v15, 4286644096  ;;  %721 = vst.msk [vmem:[%s1386_s1 + $0x18] sm:$0xf] %vm153_vm0, %v399_v20  ;;  %v426_v29 = vmax.bf16 %v424_v17, %v422_v21 }
  0x38   :  { %v113_v30 = vld [vmem:[%s1385_s0 + $0x1a0] sm:$0xf]  ;;  %v449_v31 = vmax.bf16 %v447_v19, %v445_v22  ;;  %v455_v32 = vsel %vm153_vm0, %v97_v18, 4286644096  ;;  %v66_v33 = vld [vmem:[%s1385_s0 + $0xe4] sm:$0xf] }
  0x39   :  { %v471_v34 = vsel %vm153_vm0, %v18_v23, 4286644096  ;;  %v474_v35 = vsel %vm153_vm0, %v34_v24, 4286644096  ;;  %v478_v36 = vsel %vm153_vm0, %v50_v25, 4286644096  ;;  %v430_v37 = vmax.bf16 %v428_v26, %v426_v29 }
  0x3a   :  { %v129_v38 = vld [vmem:[%s1385_s0 + $0x1e0] sm:$0xf]  ;;  %v453_v40 = vmax.bf16 %v451_v28, %v449_v31  ;;  %v82_v41 = vld [vmem:[%s1385_s0 + $0x124] sm:$0xf]  ;;  %v476_v42 = vmax.bf16 %v474_v35, %v471_v34  ;;  %v459_v43 = vsel %vm153_vm0, %v113_v30, 4286644096 }
  0x3b   :  { %v145_v39 = vld [vmem:[%s1385_s0 + $0x220] sm:$0xf]  ;;  %v98_v44 = vld [vmem:[%s1385_s0 + $0x164] sm:$0xf]  ;;  %v482_v45 = vsel %vm153_vm0, %v66_v33, 4286644096  ;;  %v434_v46 = vmax.bf16 %v432_v27, %v430_v37 }
  0x3c   :  { %v457_v47 = vmax.bf16 %v455_v32, %v453_v40  ;;  %v480_v48 = vmax.bf16 %v478_v36, %v476_v42  ;;  %v19_v49 = vld [vmem:[%s1385_s0 + $0x28] sm:$0xf]  ;;  %v463_v52 = vsel %vm153_vm0, %v129_v38, 4286644096  ;;  %v467_v53 = vsel %vm153_vm0, %v145_v39, 4286644096 }
  0x3d   :  { %v35_v50 = vld [vmem:[%s1385_s0 + $0x68] sm:$0xf]  ;;  %v486_v54 = vsel %vm153_vm0, %v82_v41, 4286644096  ;;  %722 = vst.msk [vmem:[%s1386_s1 + $0x1c] sm:$0xf] %vm153_vm0, %v434_v46 }
  0x3e   :  { %v51_v51 = vld [vmem:[%s1385_s0 + $0xa8] sm:$0xf]  ;;  %v461_v55 = vmax.bf16 %v459_v43, %v457_v47  ;;  %v114_v56 = vld [vmem:[%s1385_s0 + $0x1a4] sm:$0xf]  ;;  %v484_v57 = vmax.bf16 %v482_v45, %v480_v48  ;;  %v490_v58 = vsel %vm153_vm0, %v98_v44, 4286644096 }
  0x3f   :  { %v67_v59 = vld [vmem:[%s1385_s0 + $0xe8] sm:$0xf]  ;;  %v506_v60 = vsel %vm153_vm0, %v19_v49, 4286644096  ;;  %v509_v61 = vsel %vm153_vm0, %v35_v50, 4286644096 }
  0x40   :  { %v513_v62 = vsel %vm153_vm0, %v51_v51, 4286644096  ;;  %v465_v63 = vmax.bf16 %v463_v52, %v461_v55  ;;  %v130_v0 = vld [vmem:[%s1385_s0 + $0x1e4] sm:$0xf]  ;;  %v488_v2 = vmax.bf16 %v486_v54, %v484_v57  ;;  %v83_v3 = vld [vmem:[%s1385_s0 + $0x128] sm:$0xf]  ;;  %v511_v4 = vmax.bf16 %v509_v61, %v506_v60 }
  0x41   :  { %v146_v1 = vld [vmem:[%s1385_s0 + $0x224] sm:$0xf]  ;;  %v494_v5 = vsel %vm153_vm0, %v114_v56, 4286644096  ;;  %v99_v6 = vld [vmem:[%s1385_s0 + $0x168] sm:$0xf] }
  0x42   :  { %v517_v7 = vsel %vm153_vm0, %v67_v59, 4286644096  ;;  %v469_v8 = vmax.bf16 %v467_v53, %v465_v63  ;;  %v492_v9 = vmax.bf16 %v490_v58, %v488_v2  ;;  %v515_v10 = vmax.bf16 %v513_v62, %v511_v4  ;;  %v20_v11 = vld [vmem:[%s1385_s0 + $0x2c] sm:$0xf]  ;;  %v115_v18 = vld [vmem:[%s1385_s0 + $0x1a8] sm:$0xf] }
  0x43   :  { %v36_v12 = vld [vmem:[%s1385_s0 + $0x6c] sm:$0xf]  ;;  %v498_v14 = vsel %vm153_vm0, %v130_v0, 4286644096  ;;  %v502_v15 = vsel %vm153_vm0, %v146_v1, 4286644096 }
  0x44   :  { %v52_v13 = vld [vmem:[%s1385_s0 + $0xac] sm:$0xf]  ;;  %v521_v16 = vsel %vm153_vm0, %v83_v3, 4286644096  ;;  %723 = vst.msk [vmem:[%s1386_s1 + $0x20] sm:$0xf] %vm153_vm0, %v469_v8  ;;  %v496_v17 = vmax.bf16 %v494_v5, %v492_v9  ;;  %v519_v19 = vmax.bf16 %v517_v7, %v515_v10 }
  0x45   :  { %v525_v20 = vsel %vm153_vm0, %v99_v6, 4286644096  ;;  %v68_v21 = vld [vmem:[%s1385_s0 + $0xec] sm:$0xf]  ;;  %v541_v22 = vsel %vm153_vm0, %v20_v11, 4286644096 }
  0x46   :  { %v544_v23 = vsel %vm153_vm0, %v36_v12, 4286644096  ;;  %v548_v24 = vsel %vm153_vm0, %v52_v13, 4286644096  ;;  %v500_v25 = vmax.bf16 %v498_v14, %v496_v17  ;;  %v131_v26 = vld [vmem:[%s1385_s0 + $0x1e8] sm:$0xf]  ;;  %v523_v28 = vmax.bf16 %v521_v16, %v519_v19 }
  0x47   :  { %v147_v27 = vld [vmem:[%s1385_s0 + $0x228] sm:$0xf]  ;;  %v84_v29 = vld [vmem:[%s1385_s0 + $0x12c] sm:$0xf]  ;;  %v546_v30 = vmax.bf16 %v544_v23, %v541_v22  ;;  %v529_v31 = vsel %vm153_vm0, %v115_v18, 4286644096 }
  0x48   :  { %v100_v32 = vld [vmem:[%s1385_s0 + $0x16c] sm:$0xf]  ;;  %v552_v33 = vsel %vm153_vm0, %v68_v21, 4286644096  ;;  %v504_v34 = vmax.bf16 %v502_v15, %v500_v25  ;;  %v527_v35 = vmax.bf16 %v525_v20, %v523_v28  ;;  %v21_v37 = vld [vmem:[%s1385_s0 + $0x30] sm:$0xf] }
  0x49   :  { %v550_v36 = vmax.bf16 %v548_v24, %v546_v30  ;;  %v37_v38 = vld [vmem:[%s1385_s0 + $0x70] sm:$0xf]  ;;  %v533_v40 = vsel %vm153_vm0, %v131_v26, 4286644096  ;;  %v537_v41 = vsel %vm153_vm0, %v147_v27, 4286644096 }
  0x4a   :  { %v53_v39 = vld [vmem:[%s1385_s0 + $0xb0] sm:$0xf]  ;;  %v556_v42 = vsel %vm153_vm0, %v84_v29, 4286644096  ;;  %724 = vst.msk [vmem:[%s1386_s1 + $0x24] sm:$0xf] %vm153_vm0, %v504_v34  ;;  %v531_v43 = vmax.bf16 %v529_v31, %v527_v35 }
  0x4b   :  { %v116_v44 = vld [vmem:[%s1385_s0 + $0x1ac] sm:$0xf]  ;;  %v554_v45 = vmax.bf16 %v552_v33, %v550_v36  ;;  %v560_v46 = vsel %vm153_vm0, %v100_v32, 4286644096  ;;  %v69_v47 = vld [vmem:[%s1385_s0 + $0xf0] sm:$0xf] }
  0x4c   :  { %v576_v48 = vsel %vm153_vm0, %v21_v37, 4286644096  ;;  %v579_v49 = vsel %vm153_vm0, %v37_v38, 4286644096  ;;  %v583_v50 = vsel %vm153_vm0, %v53_v39, 4286644096  ;;  %v535_v51 = vmax.bf16 %v533_v40, %v531_v43 }
  0x4d   :  { %v132_v52 = vld [vmem:[%s1385_s0 + $0x1ec] sm:$0xf]  ;;  %v558_v54 = vmax.bf16 %v556_v42, %v554_v45  ;;  %v85_v55 = vld [vmem:[%s1385_s0 + $0x130] sm:$0xf]  ;;  %v581_v56 = vmax.bf16 %v579_v49, %v576_v48  ;;  %v564_v57 = vsel %vm153_vm0, %v116_v44, 4286644096 }
  0x4e   :  { %v148_v53 = vld [vmem:[%s1385_s0 + $0x22c] sm:$0xf]  ;;  %v101_v58 = vld [vmem:[%s1385_s0 + $0x170] sm:$0xf]  ;;  %v587_v59 = vsel %vm153_vm0, %v69_v47, 4286644096  ;;  %v539_v60 = vmax.bf16 %v537_v41, %v535_v51 }
  0x4f   :  { %v562_v61 = vmax.bf16 %v560_v46, %v558_v54  ;;  %v585_v62 = vmax.bf16 %v583_v50, %v581_v56  ;;  %v22_v63 = vld [vmem:[%s1385_s0 + $0x34] sm:$0xf]  ;;  %v568_v2 = vsel %vm153_vm0, %v132_v52, 4286644096  ;;  %v572_v3 = vsel %vm153_vm0, %v148_v53, 4286644096 }
  0x50   :  { %v38_v0 = vld [vmem:[%s1385_s0 + $0x74] sm:$0xf]  ;;  %v591_v4 = vsel %vm153_vm0, %v85_v55, 4286644096  ;;  %725 = vst.msk [vmem:[%s1386_s1 + $0x28] sm:$0xf] %vm153_vm0, %v539_v60 }
  0x51   :  { %v54_v1 = vld [vmem:[%s1385_s0 + $0xb4] sm:$0xf]  ;;  %v566_v5 = vmax.bf16 %v564_v57, %v562_v61  ;;  %v117_v6 = vld [vmem:[%s1385_s0 + $0x1b0] sm:$0xf]  ;;  %v589_v7 = vmax.bf16 %v587_v59, %v585_v62  ;;  %v595_v8 = vsel %vm153_vm0, %v101_v58, 4286644096 }
  0x52   :  { %v70_v9 = vld [vmem:[%s1385_s0 + $0xf4] sm:$0xf]  ;;  %v611_v10 = vsel %vm153_vm0, %v22_v63, 4286644096  ;;  %v614_v11 = vsel %vm153_vm0, %v38_v0, 4286644096 }
  0x53   :  { %v618_v12 = vsel %vm153_vm0, %v54_v1, 4286644096  ;;  %v570_v13 = vmax.bf16 %v568_v2, %v566_v5  ;;  %v133_v14 = vld [vmem:[%s1385_s0 + $0x1f0] sm:$0xf]  ;;  %v593_v16 = vmax.bf16 %v591_v4, %v589_v7  ;;  %v86_v17 = vld [vmem:[%s1385_s0 + $0x134] sm:$0xf]  ;;  %v616_v18 = vmax.bf16 %v614_v11, %v611_v10 }
  0x54   :  { %v149_v15 = vld [vmem:[%s1385_s0 + $0x230] sm:$0xf]  ;;  %v599_v19 = vsel %vm153_vm0, %v117_v6, 4286644096  ;;  %v102_v20 = vld [vmem:[%s1385_s0 + $0x174] sm:$0xf] }
  0x55   :  { %v622_v21 = vsel %vm153_vm0, %v70_v9, 4286644096  ;;  %v574_v22 = vmax.bf16 %v572_v3, %v570_v13  ;;  %v597_v23 = vmax.bf16 %v595_v8, %v593_v16  ;;  %v620_v24 = vmax.bf16 %v618_v12, %v616_v18  ;;  %v23_v25 = vld [vmem:[%s1385_s0 + $0x38] sm:$0xf]  ;;  %v118_v32 = vld [vmem:[%s1385_s0 + $0x1b4] sm:$0xf] }
  0x56   :  { %v39_v26 = vld [vmem:[%s1385_s0 + $0x78] sm:$0xf]  ;;  %v603_v28 = vsel %vm153_vm0, %v133_v14, 4286644096  ;;  %v607_v29 = vsel %vm153_vm0, %v149_v15, 4286644096 }
  0x57   :  { %v55_v27 = vld [vmem:[%s1385_s0 + $0xb8] sm:$0xf]  ;;  %v626_v30 = vsel %vm153_vm0, %v86_v17, 4286644096  ;;  %726 = vst.msk [vmem:[%s1386_s1 + $0x2c] sm:$0xf] %vm153_vm0, %v574_v22  ;;  %v601_v31 = vmax.bf16 %v599_v19, %v597_v23  ;;  %v624_v33 = vmax.bf16 %v622_v21, %v620_v24 }
  0x58   :  { %v630_v34 = vsel %vm153_vm0, %v102_v20, 4286644096  ;;  %v71_v35 = vld [vmem:[%s1385_s0 + $0xf8] sm:$0xf]  ;;  %v646_v36 = vsel %vm153_vm0, %v23_v25, 4286644096 }
  0x59   :  { %v649_v37 = vsel %vm153_vm0, %v39_v26, 4286644096  ;;  %v653_v38 = vsel %vm153_vm0, %v55_v27, 4286644096  ;;  %v605_v39 = vmax.bf16 %v603_v28, %v601_v31  ;;  %v134_v40 = vld [vmem:[%s1385_s0 + $0x1f4] sm:$0xf]  ;;  %v628_v42 = vmax.bf16 %v626_v30, %v624_v33 }
  0x5a   :  { %v150_v41 = vld [vmem:[%s1385_s0 + $0x234] sm:$0xf]  ;;  %v87_v43 = vld [vmem:[%s1385_s0 + $0x138] sm:$0xf]  ;;  %v651_v44 = vmax.bf16 %v649_v37, %v646_v36  ;;  %v634_v45 = vsel %vm153_vm0, %v118_v32, 4286644096 }
  0x5b   :  { %v103_v46 = vld [vmem:[%s1385_s0 + $0x178] sm:$0xf]  ;;  %v657_v47 = vsel %vm153_vm0, %v71_v35, 4286644096  ;;  %v609_v48 = vmax.bf16 %v607_v29, %v605_v39  ;;  %v632_v49 = vmax.bf16 %v630_v34, %v628_v42  ;;  %v24_v51 = vld [vmem:[%s1385_s0 + $0x3c] sm:$0xf] }
  0x5c   :  { %v655_v50 = vmax.bf16 %v653_v38, %v651_v44  ;;  %v40_v52 = vld [vmem:[%s1385_s0 + $0x7c] sm:$0xf]  ;;  %v638_v54 = vsel %vm153_vm0, %v134_v40, 4286644096  ;;  %v642_v55 = vsel %vm153_vm0, %v150_v41, 4286644096 }
  0x5d   :  { %v56_v53 = vld [vmem:[%s1385_s0 + $0xbc] sm:$0xf]  ;;  %v661_v56 = vsel %vm153_vm0, %v87_v43, 4286644096  ;;  %727 = vst.msk [vmem:[%s1386_s1 + $0x30] sm:$0xf] %vm153_vm0, %v609_v48  ;;  %v636_v57 = vmax.bf16 %v634_v45, %v632_v49 }
  0x5e   :  { %v119_v58 = vld [vmem:[%s1385_s0 + $0x1b8] sm:$0xf]  ;;  %v659_v59 = vmax.bf16 %v657_v47, %v655_v50  ;;  %v665_v60 = vsel %vm153_vm0, %v103_v46, 4286644096  ;;  %v72_v61 = vld [vmem:[%s1385_s0 + $0xfc] sm:$0xf] }
  0x5f   :  { %v681_v62 = vsel %vm153_vm0, %v24_v51, 4286644096  ;;  %v684_v63 = vsel %vm153_vm0, %v40_v52, 4286644096  ;;  %v688_v0 = vsel %vm153_vm0, %v56_v53, 4286644096  ;;  %v640_v1 = vmax.bf16 %v638_v54, %v636_v57 }
  0x60   :  { %v135_v2 = vld [vmem:[%s1385_s0 + $0x1f8] sm:$0xf]  ;;  %v663_v3 = vmax.bf16 %v661_v56, %v659_v59  ;;  %v88_v4 = vld [vmem:[%s1385_s0 + $0x13c] sm:$0xf]  ;;  %v686_v5 = vmax.bf16 %v684_v63, %v681_v62  ;;  %v669_v6 = vsel %vm153_vm0, %v119_v58, 4286644096 }
  0x61   :  { %v692_v7 = vsel %vm153_vm0, %v72_v61, 4286644096  ;;  %v644_v8 = vmax.bf16 %v642_v55, %v640_v1  ;;  %v151_v9 = vld [vmem:[%s1385_s0 + $0x238] sm:$0xf]  ;;  %v104_v11 = vld [vmem:[%s1385_s0 + $0x17c] sm:$0xf] }
  0x62   :  { %v667_v10 = vmax.bf16 %v665_v60, %v663_v3  ;;  %v690_v12 = vmax.bf16 %v688_v0, %v686_v5  ;;  %v673_v13 = vsel %vm153_vm0, %v135_v2, 4286644096  ;;  %v696_v14 = vsel %vm153_vm0, %v88_v4, 4286644096  ;;  %v120_v16 = vld [vmem:[%s1385_s0 + $0x1bc] sm:$0xf] }
  0x63   :  { %728 = vst.msk [vmem:[%s1386_s1 + $0x34] sm:$0xf] %vm153_vm0, %v644_v8  ;;  %v677_v18 = vsel %vm153_vm0, %v151_v9, 4286644096  ;;  %v700_v19 = vsel %vm153_vm0, %v104_v11, 4286644096 }
  0x64   :  { %v671_v15 = vmax.bf16 %v669_v6, %v667_v10  ;;  %v694_v17 = vmax.bf16 %v692_v7, %v690_v12  ;;  %v136_v21 = vld [vmem:[%s1385_s0 + $0x1fc] sm:$0xf]  ;;  %v704_v23 = vsel %vm153_vm0, %v120_v16, 4286644096 }
  0x65   :  { %v152_v25 = vld [vmem:[%s1385_s0 + $0x23c] sm:$0xf]  ;;  %v708_v27 = vsel %vm153_vm0, %v136_v21, 4286644096 }
  0x66   :  { %v675_v20 = vmax.bf16 %v673_v13, %v671_v15  ;;  %v698_v22 = vmax.bf16 %v696_v14, %v694_v17  ;;  %v712_v29 = vsel %vm153_vm0, %v152_v25, 4286644096 }
  0x68   :  { %v679_v24 = vmax.bf16 %v677_v18, %v675_v20  ;;  %v702_v26 = vmax.bf16 %v700_v19, %v698_v22 }
  0x6a   :  { %729 = vst.msk [vmem:[%s1386_s1 + $0x38] sm:$0xf] %vm153_vm0, %v679_v24  ;;  %v706_v28 = vmax.bf16 %v704_v23, %v702_v26 }
  0x6c   :  { %v710_v30 = vmax.bf16 %v708_v27, %v706_v28 }
  0x6e   :  { %v714_v31 = vmax.bf16 %v712_v29, %v710_v30 }
  0x70   :  { %730 = vst.msk [vmem:[%s1386_s1 + $0x3c] sm:$0xf] %vm153_vm0, %v714_v31 }

// kernel: densenet_forward.17
= control target key start
LH: loop header
LB: loop body
LE: loop exit
PB: predicated region body
PF: predicated region fallthrough
CT: control target
= control target key end

     0   :  { %s1226_s1 = inlined_call_operand.vmem [shape: bf16[384,128], index: 1, kind: input, shape index: {}]   ;;  %s1227_s0 = inlined_call_operand.vmem [shape: bf16[128,384], index: 0, kind: input, shape index: {}]   ;;  %s1228_s2 = inlined_call_operand.vmem [shape: f32[1,128], index: 2, kind: input, shape index: {}]   ;;  %s1229_s3 = inlined_call_operand.vmem [shape: f32[1,128], index: 3, kind: input, shape index: {}]   ;;  %s1230_s4 = inlined_call_operand.vmem [shape: bf16[128,128], index: 4, kind: output, shape index: {}]  }
   0x1   :  { %v935_v0 = vld [vmem:[%s1226_s1 + $0x40] sm:$0xff]   ;;  %v938_v3 = vld [vmem:[%s1226_s1 + $0x48] sm:$0xff]   ;;  %v941_v6 = vld [vmem:[%s1226_s1 + $0x50] sm:$0xff]  }
   0x2   :  { %v936_v1 = vld [vmem:[%s1226_s1] sm:$0xff]   ;;  %823 = vmatprep.subr.bf16.mxu0 %v935_v0  ;;  %v939_v4 = vld [vmem:[%s1226_s1 + $0x8] sm:$0xff]   ;;  %v942_v7 = vld [vmem:[%s1226_s1 + $0x10] sm:$0xff]  }
   0x3   :  { %v937_v2 = vld [vmem:[%s1226_s1 + $0x80] sm:$0xff]   ;;  %824 = vmatpush3.bf16.msra.mxu0 %v936_v1  ;;  %v940_v5 = vld [vmem:[%s1226_s1 + $0x88] sm:$0xff]   ;;  %v943_v8 = vld [vmem:[%s1226_s1 + $0x90] sm:$0xff]  }
   0x4   :  { %903 = vmatprep.subr.bf16.mxu1 %v937_v2  ;;  %825 = vmatprep.subr.bf16.mxu0 %v938_v3  ;;  %v944_v9 = vld [vmem:[%s1226_s1 + $0x58] sm:$0xff]   ;;  %v947_v12 = vld [vmem:[%s1226_s1 + $0x60] sm:$0xff]   ;;  %v950_v15 = vld [vmem:[%s1226_s1 + $0x68] sm:$0xff]  }
   0x5   :  { %904 = vmatpush3.bf16.msra.mxu1 %v937_v2  ;;  %v945_v10 = vld [vmem:[%s1226_s1 + $0x18] sm:$0xff]   ;;  %v949_v13 = vld [vmem:[%s1226_s1 + $0xa0] sm:$0xff]   ;;  %v952_v16 = vld [vmem:[%s1226_s1 + $0xa8] sm:$0xff]  }
   0x6   :  { %905 = vmatprep.subr.bf16.mxu1 %v940_v5  ;;  %v946_v11 = vld [vmem:[%s1226_s1 + $0x98] sm:$0xff]   ;;  %v948_v14 = vld [vmem:[%s1226_s1 + $0x20] sm:$0xff]   ;;  %v951_v17 = vld [vmem:[%s1226_s1 + $0x28] sm:$0xff]  }
   0x7   :  { %826 = vmatpush3.bf16.msra.mxu0 %v939_v4  ;;  %v953_v18 = vld [vmem:[%s1226_s1 + $0x70] sm:$0xff]   ;;  %v956_v21 = vld [vmem:[%s1226_s1 + $0x78] sm:$0xff]   ;;  %v959_v26 = vld [vmem:[%s1227_s0] ss:$12 sps:$4 sm:$0xff]  }
   0x8   :  { %827 = vmatprep.subr.bf16.mxu0 %v941_v6  ;;  %v954_v19 = vld [vmem:[%s1226_s1 + $0x30] sm:$0xff]   ;;  %v958_v22 = vld [vmem:[%s1226_s1 + $0xb8] sm:$0xff]   ;;  %v963_v28 = vld [vmem:[%s1227_s0 + $0x20] ss:$12 sps:$4 sm:$0xff]  }
   0x9   :  { %906 = vmatpush3.bf16.msra.mxu1 %v940_v5  ;;  %v955_v20 = vld [vmem:[%s1226_s1 + $0xb0] sm:$0xff]   ;;  %v957_v25 = vld [vmem:[%s1226_s1 + $0x38] sm:$0xff]   ;;  %v979_v36 = vld [vmem:[%s1227_s0 + $0x80] ss:$12 sps:$4 sm:$0xff]  }
   0xa   :  { %907 = vmatprep.subr.bf16.mxu1 %v943_v8  ;;  %v961_v23 = vld [vmem:[%s1227_s0 + $0x4] ss:$12 sps:$4 sm:$0xff]   ;;  %v962_v24 = vld [vmem:[%s1227_s0 + $0x8] ss:$12 sps:$4 sm:$0xff]   ;;  %v972_v35 = vld [vmem:[%s1227_s0 + $0x4c] ss:$12 sps:$4 sm:$0xff]  }
   0xb   :  { %828 = vmatpush3.bf16.msra.mxu0 %v942_v7  ;;  %402 = vmatprep.mubr.bf16.mxu0 %v961_v23  ;;  %v964_v27 = vld [vmem:[%s1227_s0 + $0x1c] ss:$12 sps:$4 sm:$0xff]   ;;  %v970_v29 = vld [vmem:[%s1227_s0 + $0x38] ss:$12 sps:$4 sm:$0xff]   ;;  %v967_v31 = vld [vmem:[%s1227_s0 + $0x34] ss:$12 sps:$4 sm:$0xff]  }
   0xc   :  { %829 = vmatprep.subr.bf16.mxu0 %v944_v9  ;;  %919 = vmatprep.mubr.bf16.mxu1 %v962_v24  ;;  %v966_v30 = vld [vmem:[%s1227_s0 + $0x18] ss:$12 sps:$4 sm:$0xff]   ;;  %v971_v32 = vld [vmem:[%s1227_s0 + $0x50] ss:$12 sps:$4 sm:$0xff]   ;;  %v978_v33 = vld [vmem:[%s1227_s0 + $0x68] ss:$12 sps:$4 sm:$0xff]  }
   0xd   :  { %908 = vmatpush3.bf16.msra.mxu1 %v943_v8  ;;  %v969_v34 = vld [vmem:[%s1227_s0 + $0x30] ss:$12 sps:$4 sm:$0xff]   ;;  %v986_v37 = vld [vmem:[%s1227_s0 + $0x98] ss:$12 sps:$4 sm:$0xff]   ;;  %v974_v38 = vld [vmem:[%s1227_s0 + $0x48] ss:$12 sps:$4 sm:$0xff]  }
   0xe   :  { %909 = vmatprep.subr.bf16.mxu1 %v946_v11  ;;  %v975_v39 = vld [vmem:[%s1227_s0 + $0x64] ss:$12 sps:$4 sm:$0xff]   ;;  %v977_v41 = vld [vmem:[%s1227_s0 + $0x60] ss:$12 sps:$4 sm:$0xff]   ;;  %v980_v42 = vld [vmem:[%s1227_s0 + $0x7c] ss:$12 sps:$4 sm:$0xff]  }
   0xf   :  { %830 = vmatpush3.bf16.msra.mxu0 %v945_v10  ;;  %v987_v40 = vld [vmem:[%s1227_s0 + $0xb0] ss:$12 sps:$4 sm:$0xff]   ;;  %v982_v43 = vld [vmem:[%s1227_s0 + $0x78] ss:$12 sps:$4 sm:$0xff]   ;;  %v983_v44 = vld [vmem:[%s1227_s0 + $0x94] ss:$12 sps:$4 sm:$0xff]  }
  0x10   :  { %831 = vmatprep.subr.bf16.mxu0 %v947_v12  ;;  %v985_v45 = vld [vmem:[%s1227_s0 + $0x90] ss:$12 sps:$4 sm:$0xff]   ;;  %v988_v46 = vld [vmem:[%s1227_s0 + $0xac] ss:$12 sps:$4 sm:$0xff]   ;;  %v990_v47 = vld [vmem:[%s1227_s0 + $0xa8] ss:$12 sps:$4 sm:$0xff]  }
  0x11   :  { %910 = vmatpush3.bf16.msra.mxu1 %v946_v11  ;;  %v1163_v55 = vld [vmem:[%s1228_s2] ss:$0 sm:$0xff] }
  0x12   :  { %911 = vmatprep.subr.bf16.mxu1 %v949_v13  ;;  %v1169_v62 = vld [vmem:[%s1229_s3] ss:$0 sm:$0xff] }
  0x13   :  { %832 = vmatpush3.bf16.msra.mxu0 %v948_v14 }
  0x14   :  { %833 = vmatprep.subr.bf16.mxu0 %v950_v15 }
  0x15   :  { %912 = vmatpush3.bf16.msra.mxu1 %v949_v13 }
  0x16   :  { %913 = vmatprep.subr.bf16.mxu1 %v952_v16 }
  0x17   :  { %834 = vmatpush3.bf16.msra.mxu0 %v951_v17 }
  0x18   :  { %835 = vmatprep.subr.bf16.mxu0 %v953_v18 }
  0x19   :  { %914 = vmatpush3.bf16.msra.mxu1 %v952_v16 }
  0x1a   :  { %915 = vmatprep.subr.bf16.mxu1 %v955_v20 }
  0x1b   :  { %836 = vmatpush3.bf16.msra.mxu0 %v954_v19 }
  0x1c   :  { %837 = vmatprep.subr.bf16.mxu0 %v956_v21 }
  0x1d   :  { %916 = vmatpush3.bf16.msra.mxu1 %v955_v20 }
  0x1e   :  { %917 = vmatprep.subr.bf16.mxu1 %v958_v22 }
  0x1f   :  { %838 = vmatpush3.bf16.msra.mxu0 %v957_v25 }
  0x21   :  { %918 = vmatpush3.bf16.msra.mxu1 %v958_v22 }
  0x22   :  { %403 = vmatmul.mubr.bf16.vlgmr.msra.gmra.mrb[0].mxu0 %v959_v26 }
  0x23   :  { %410 = vmatprep.mubr.bf16.mxu0 %v964_v27 }
  0x24   :  { %920 = vmatmul.mubr.bf16.vlgmr.msra.gmra.mrb[0].mxu1 %v963_v28 }
  0x25   :  { %923 = vmatprep.mubr.bf16.mxu1 %v970_v29 }
  0x2a   :  { %411 = vmatmul.mubr.bf16.gmra.mrb[4].mxu0 %v966_v30 }
  0x2b   :  { %418 = vmatprep.mubr.bf16.mxu0 %v967_v31 }
  0x2c   :  { %924 = vmatmul.mubr.bf16.gmra.mrb[4].mxu1 %v971_v32 }
  0x2d   :  { %927 = vmatprep.mubr.bf16.mxu1 %v978_v33 }
  0x32   :  { %419 = vmatmul.mubr.bf16.gmra.mrb[8].mxu0 %v969_v34 }
  0x33   :  { %426 = vmatprep.mubr.bf16.mxu0 %v972_v35 }
  0x34   :  { %928 = vmatmul.mubr.bf16.gmra.mrb[8].mxu1 %v979_v36 }
  0x35   :  { %931 = vmatprep.mubr.bf16.mxu1 %v986_v37 }
  0x3a   :  { %427 = vmatmul.mubr.bf16.gmra.mrb[12].mxu0 %v974_v38 }
  0x3b   :  { %434 = vmatprep.mubr.bf16.mxu0 %v975_v39 }
  0x3c   :  { %932 = vmatmul.mubr.bf16.gmra.mrb[12].mxu1 %v987_v40 }
  0x42   :  { %435 = vmatmul.mubr.bf16.gmra.mrb[16].mxu0 %v977_v41 }
  0x43   :  { %442 = vmatprep.mubr.bf16.mxu0 %v980_v42 }
  0x4a   :  { %443 = vmatmul.mubr.bf16.gmra.mrb[20].mxu0 %v982_v43 }
  0x4b   :  { %450 = vmatprep.mubr.bf16.mxu0 %v983_v44 }
  0x52   :  { %451 = vmatmul.mubr.bf16.gmra.mrb[24].mxu0 %v985_v45 }
  0x53   :  { %458 = vmatprep.mubr.bf16.mxu0 %v988_v46 }
  0x5a   :  { %459 = vmatmul.mubr.bf16.gmra.mrb[28].mxu0 %v990_v47 }
  0xf5   :  { %v839_v48 = vpop.f32.mrb[0].mxu0 }
  0xf6   :  { %v840_v49 = vpop.f32.mrb[1].mxu0 }
  0xf7   :  { %v841_v50 = vadd.f32 %v840_v49, %v839_v48  ;;  %v842_v51 = vpop.f32.mrb[2].mxu0  ;;  %v921_v52 = vpop.f32.mrb[0].mxu1 }
  0xf8   :  { %v843_v53 = vpop.f32.mrb[3].mxu0  ;;  %v501_v54 = vpop.f32.mrb[1].mxu1 }
  0xf9   :  { %v844_v56 = vadd.f32 %v843_v53, %v842_v51  ;;  %v502_v57 = vadd.f32 %v841_v50, %v501_v54  ;;  %v922_v58 = vpop.f32.mrb[2].mxu1 }
  0xfa   :  { %v504_v59 = vpop.f32.mrb[3].mxu1 }
  0xfb   :  { %v571_v60 = vmul.f32 %v1163_v55, %v502_v57  ;;  %v505_v61 = vadd.f32 %v844_v56, %v504_v59 }
  0xfd   :  { %v572_v63 = vmul.f32 %v1163_v55, %v505_v61  ;;  %v845_v0 = vpop.f32.mrb[4].mxu0  ;;  %v594_v2 = vadd.f32 %v1169_v62, %v571_v60 }
  0xfe   :  { %v846_v1 = vpop.f32.mrb[5].mxu0 }
  0xff   :  { %v595_v3 = vadd.f32 %v1169_v62, %v572_v63  ;;  %v847_v4 = vadd.f32 %v846_v1, %v845_v0  ;;  %v848_v5 = vpop.f32.mrb[6].mxu0  ;;  %v925_v6 = vpop.f32.mrb[4].mxu1 }
 0x100   :  { %v849_v7 = vpop.f32.mrb[7].mxu0  ;;  %v517_v8 = vpop.f32.mrb[5].mxu1 }
 0x101   :  { %v779_v9 = vpack.c.bf16 %v595_v3, %v594_v2  ;;  %v510_v10 = vadd.f32 %v921_v52, %v847_v4  ;;  %v850_v11 = vadd.f32 %v849_v7, %v848_v5  ;;  %v926_v12 = vpop.f32.mrb[6].mxu1 }
 0x102   :  { %v520_v13 = vpop.f32.mrb[7].mxu1 }
 0x103   :  { %780 = vst [vmem:[%s1230_s4] sm:$0xff] %v779_v9   ;;  %v573_v14 = vmul.f32 %v1163_v55, %v510_v10  ;;  %v513_v15 = vadd.f32 %v922_v58, %v850_v11 }
 0x105   :  { %v574_v16 = vmul.f32 %v1163_v55, %v513_v15  ;;  %v851_v17 = vpop.f32.mrb[8].mxu0  ;;  %v596_v19 = vadd.f32 %v1169_v62, %v573_v14 }
 0x106   :  { %v852_v18 = vpop.f32.mrb[9].mxu0 }
 0x107   :  { %v597_v20 = vadd.f32 %v1169_v62, %v574_v16  ;;  %v853_v21 = vadd.f32 %v852_v18, %v851_v17  ;;  %v854_v22 = vpop.f32.mrb[10].mxu0  ;;  %v929_v23 = vpop.f32.mrb[8].mxu1 }
 0x108   :  { %v855_v24 = vpop.f32.mrb[11].mxu0  ;;  %v533_v25 = vpop.f32.mrb[9].mxu1 }
 0x109   :  { %v784_v26 = vpack.c.bf16 %v597_v20, %v596_v19  ;;  %v856_v27 = vadd.f32 %v855_v24, %v854_v22  ;;  %v518_v28 = vadd.f32 %v853_v21, %v517_v8  ;;  %v930_v29 = vpop.f32.mrb[10].mxu1 }
 0x10a   :  { %v536_v30 = vpop.f32.mrb[11].mxu1 }
 0x10b   :  { %816 = vst [vmem:[%s1230_s4 + $0x8] sm:$0xff] %v784_v26   ;;  %v575_v31 = vmul.f32 %v1163_v55, %v518_v28  ;;  %v521_v32 = vadd.f32 %v856_v27, %v520_v13 }
 0x10d   :  { %v576_v33 = vmul.f32 %v1163_v55, %v521_v32  ;;  %v857_v34 = vpop.f32.mrb[12].mxu0  ;;  %v598_v36 = vadd.f32 %v1169_v62, %v575_v31 }
 0x10e   :  { %v858_v35 = vpop.f32.mrb[13].mxu0 }
 0x10f   :  { %v599_v37 = vadd.f32 %v1169_v62, %v576_v33  ;;  %v859_v38 = vadd.f32 %v858_v35, %v857_v34  ;;  %v860_v39 = vpop.f32.mrb[14].mxu0  ;;  %v933_v40 = vpop.f32.mrb[12].mxu1 }
 0x110   :  { %v861_v41 = vpop.f32.mrb[15].mxu0  ;;  %v549_v42 = vpop.f32.mrb[13].mxu1 }
 0x111   :  { %v789_v43 = vpack.c.bf16 %v599_v37, %v598_v36  ;;  %v526_v44 = vadd.f32 %v925_v6, %v859_v38  ;;  %v862_v45 = vadd.f32 %v861_v41, %v860_v39  ;;  %v934_v46 = vpop.f32.mrb[14].mxu1 }
 0x112   :  { %v552_v47 = vpop.f32.mrb[15].mxu1 }
 0x113   :  { %817 = vst [vmem:[%s1230_s4 + $0x10] sm:$0xff] %v789_v43   ;;  %v577_v48 = vmul.f32 %v1163_v55, %v526_v44  ;;  %v529_v49 = vadd.f32 %v926_v12, %v862_v45 }
 0x115   :  { %v578_v50 = vmul.f32 %v1163_v55, %v529_v49  ;;  %v863_v51 = vpop.f32.mrb[16].mxu0  ;;  %v600_v53 = vadd.f32 %v1169_v62, %v577_v48 }
 0x116   :  { %v864_v52 = vpop.f32.mrb[17].mxu0 }
 0x117   :  { %v601_v54 = vadd.f32 %v1169_v62, %v578_v50  ;;  %v865_v56 = vadd.f32 %v864_v52, %v863_v51  ;;  %v866_v57 = vpop.f32.mrb[18].mxu0 }
 0x118   :  { %v867_v58 = vpop.f32.mrb[19].mxu0 }
 0x119   :  { %v794_v59 = vpack.c.bf16 %v601_v54, %v600_v53  ;;  %v868_v60 = vadd.f32 %v867_v58, %v866_v57  ;;  %v534_v61 = vadd.f32 %v865_v56, %v533_v25 }
 0x11b   :  { %818 = vst [vmem:[%s1230_s4 + $0x18] sm:$0xff] %v794_v59   ;;  %v579_v63 = vmul.f32 %v1163_v55, %v534_v61  ;;  %v537_v0 = vadd.f32 %v868_v60, %v536_v30 }
 0x11d   :  { %v580_v1 = vmul.f32 %v1163_v55, %v537_v0  ;;  %v869_v2 = vpop.f32.mrb[20].mxu0  ;;  %v602_v4 = vadd.f32 %v1169_v62, %v579_v63 }
 0x11e   :  { %v870_v3 = vpop.f32.mrb[21].mxu0 }
 0x11f   :  { %v603_v5 = vadd.f32 %v1169_v62, %v580_v1  ;;  %v871_v6 = vadd.f32 %v870_v3, %v869_v2  ;;  %v872_v7 = vpop.f32.mrb[22].mxu0 }
 0x120   :  { %v873_v8 = vpop.f32.mrb[23].mxu0 }
 0x121   :  { %v799_v9 = vpack.c.bf16 %v603_v5, %v602_v4  ;;  %v542_v10 = vadd.f32 %v929_v23, %v871_v6  ;;  %v874_v11 = vadd.f32 %v873_v8, %v872_v7 }
 0x123   :  { %819 = vst [vmem:[%s1230_s4 + $0x20] sm:$0xff] %v799_v9   ;;  %v581_v12 = vmul.f32 %v1163_v55, %v542_v10  ;;  %v545_v13 = vadd.f32 %v930_v29, %v874_v11 }
 0x125   :  { %v582_v14 = vmul.f32 %v1163_v55, %v545_v13  ;;  %v875_v15 = vpop.f32.mrb[24].mxu0  ;;  %v604_v17 = vadd.f32 %v1169_v62, %v581_v12 }
 0x126   :  { %v876_v16 = vpop.f32.mrb[25].mxu0 }
 0x127   :  { %v605_v18 = vadd.f32 %v1169_v62, %v582_v14  ;;  %v877_v19 = vadd.f32 %v876_v16, %v875_v15  ;;  %v878_v20 = vpop.f32.mrb[26].mxu0 }
 0x128   :  { %v879_v21 = vpop.f32.mrb[27].mxu0 }
 0x129   :  { %v804_v22 = vpack.c.bf16 %v605_v18, %v604_v17  ;;  %v880_v23 = vadd.f32 %v879_v21, %v878_v20  ;;  %v550_v24 = vadd.f32 %v877_v19, %v549_v42 }
 0x12b   :  { %820 = vst [vmem:[%s1230_s4 + $0x28] sm:$0xff] %v804_v22   ;;  %v583_v25 = vmul.f32 %v1163_v55, %v550_v24  ;;  %v553_v26 = vadd.f32 %v880_v23, %v552_v47 }
 0x12d   :  { %v584_v27 = vmul.f32 %v1163_v55, %v553_v26  ;;  %v881_v28 = vpop.f32.mrb[28].mxu0  ;;  %v606_v30 = vadd.f32 %v1169_v62, %v583_v25 }
 0x12e   :  { %v882_v29 = vpop.f32.mrb[29].mxu0 }
 0x12f   :  { %v607_v31 = vadd.f32 %v1169_v62, %v584_v27  ;;  %v883_v32 = vadd.f32 %v882_v29, %v881_v28  ;;  %v884_v33 = vpop.f32.mrb[30].mxu0 }
 0x130   :  { %v885_v34 = vpop.f32.mrb[31].mxu0 }
 0x131   :  { %v809_v35 = vpack.c.bf16 %v607_v31, %v606_v30  ;;  %v558_v36 = vadd.f32 %v933_v40, %v883_v32  ;;  %v886_v37 = vadd.f32 %v885_v34, %v884_v33 }
 0x133   :  { %821 = vst [vmem:[%s1230_s4 + $0x30] sm:$0xff] %v809_v35   ;;  %v585_v38 = vmul.f32 %v1163_v55, %v558_v36  ;;  %v561_v39 = vadd.f32 %v934_v46, %v886_v37 }
 0x135   :  { %v586_v41 = vmul.f32 %v1163_v55, %v561_v39  ;;  %v608_v42 = vadd.f32 %v1169_v62, %v585_v38 }
 0x137   :  { %v609_v43 = vadd.f32 %v1169_v62, %v586_v41 }
 0x139   :  { %v814_v44 = vpack.c.bf16 %v609_v43, %v608_v42 }
 0x13b   :  { %822 = vst [vmem:[%s1230_s4 + $0x38] sm:$0xff] %v814_v44  }

// kernel: densenet_forward.20
= control target key start
LH: loop header
LB: loop body
LE: loop exit
PB: predicated region body
PF: predicated region fallthrough
CT: control target
= control target key end

     0   :  { %s774_s1 = inlined_call_operand.vmem [shape: bf16[128,128], index: 1, kind: input, shape index: {}]   ;;  %s775_s0 = inlined_call_operand.vmem [shape: bf16[128,128], index: 0, kind: input, shape index: {}]   ;;  %s776_s2 = inlined_call_operand.vmem [shape: f32[1,128], index: 2, kind: input, shape index: {}]   ;;  %s777_s3 = inlined_call_operand.vmem [shape: f32[1,128], index: 3, kind: input, shape index: {}]   ;;  %s778_s4 = inlined_call_operand.vmem [shape: f32[1,128], index: 4, kind: input, shape index: {}]   ;;  %s779_s5 = inlined_call_operand.vmem [shape: f32[1,128], index: 5, kind: input, shape index: {}]   ;;  %s780_s6 = inlined_call_operand.vmem [shape: bf16[128,128], index: 6, kind: output, shape index: {}]  }
   0x1   :  { %v611_v0 = vld [vmem:[%s774_s1] sm:$0xff]   ;;  %v612_v1 = vld [vmem:[%s774_s1 + $0x8] sm:$0xff]   ;;  %v613_v2 = vld [vmem:[%s774_s1 + $0x10] sm:$0xff]  }
   0x2   :  { %563 = vmatprep.subr.bf16.mxu0 %v611_v0  ;;  %595 = vmatprep.subr.bf16.mxu1 %v611_v0  ;;  %v614_v3 = vld [vmem:[%s774_s1 + $0x18] sm:$0xff]   ;;  %v462_v4 = vld [vmem:[%s775_s0] sm:$0xff]   ;;  %v533_v9 = vld [vmem:[%s775_s0 + $0x8] sm:$0xff]  }
   0x3   :  { %564 = vmatpush3.bf16.msra.mxu0 %v611_v0  ;;  %603 = vmatpush3.bf16.msra.mxu1 %v611_v0  ;;  %v672_v5 = vld [vmem:[%s776_s2] ss:$0 sm:$0xff]  ;;  %v463_v6 = vunpack.c.l.bf16 %v462_v4  ;;  %v464_v7 = vunpack.c.h.bf16 %v462_v4  ;;  %v537_v13 = vld [vmem:[%s775_s0 + $0x28] sm:$0xff]   ;;  %v534_v16 = vld [vmem:[%s775_s0 + $0x10] sm:$0xff]   ;;  %v467_v20 = vunpack.c.l.bf16 %v533_v9  ;;  %v468_v21 = vunpack.c.h.bf16 %v533_v9 }
   0x4   :  { %565 = vmatprep.subr.bf16.mxu0 %v612_v1  ;;  %596 = vmatprep.subr.bf16.mxu1 %v612_v1  ;;  %v536_v8 = vld [vmem:[%s775_s0 + $0x20] sm:$0xff]   ;;  %v483_v24 = vunpack.c.l.bf16 %v537_v13  ;;  %v484_v25 = vunpack.c.h.bf16 %v537_v13  ;;  %v471_v28 = vunpack.c.l.bf16 %v534_v16  ;;  %v538_v31 = vld [vmem:[%s775_s0 + $0x30] sm:$0xff]   ;;  %v616_v32 = vld [vmem:[%s774_s1 + $0x28] sm:$0xff]   ;;  %v472_v40 = vunpack.c.h.bf16 %v534_v16 }
   0x5   :  { %v683_v10 = vld [vmem:[%s777_s3] ss:$0 sm:$0xff]  ;;  %v479_v11 = vunpack.c.l.bf16 %v536_v8  ;;  %v480_v12 = vunpack.c.h.bf16 %v536_v8  ;;  %v63_v14 = vmul.f32 %v463_v6, %v672_v5  ;;  %v64_v15 = vmul.f32 %v464_v7, %v672_v5  ;;  %v535_v44 = vld [vmem:[%s775_s0 + $0x18] sm:$0xff]   ;;  %v617_v48 = vld [vmem:[%s774_s1 + $0x30] sm:$0xff]  }
   0x6   :  { %v615_v17 = vld [vmem:[%s774_s1 + $0x20] sm:$0xff]   ;;  %v65_v35 = vmul.f32 %v467_v20, %v672_v5  ;;  %v66_v36 = vmul.f32 %v468_v21, %v672_v5  ;;  %v73_v38 = vmul.f32 %v483_v24, %v672_v5  ;;  %v74_v39 = vmul.f32 %v484_v25, %v672_v5  ;;  %v539_v47 = vld [vmem:[%s775_s0 + $0x38] sm:$0xff]  }
   0x7   :  { %566 = vmatpush3.bf16.msra.mxu0 %v612_v1  ;;  %604 = vmatpush3.bf16.msra.mxu1 %v612_v1  ;;  %v71_v18 = vmul.f32 %v479_v11, %v672_v5  ;;  %v72_v19 = vmul.f32 %v480_v12, %v672_v5  ;;  %v86_v22 = vadd.f32 %v683_v10, %v63_v14  ;;  %v487_v43 = vunpack.c.l.bf16 %v538_v31  ;;  %v618_v63 = vld [vmem:[%s774_s1 + $0x38] sm:$0xff]  }
   0x8   :  { %567 = vmatprep.subr.bf16.mxu0 %v613_v2  ;;  %597 = vmatprep.subr.bf16.mxu1 %v613_v2  ;;  %v87_v23 = vadd.f32 %v683_v10, %v64_v15  ;;  %v67_v42 = vmul.f32 %v471_v28, %v672_v5  ;;  %v68_v45 = vmul.f32 %v472_v40, %v672_v5  ;;  %v488_v46 = vunpack.c.h.bf16 %v538_v31 }
   0x9   :  { %v94_v26 = vadd.f32 %v683_v10, %v71_v18  ;;  %v95_v27 = vadd.f32 %v683_v10, %v72_v19  ;;  %v102_v29 = vmax.f32 %v86_v22, 0.0  ;;  %v88_v49 = vadd.f32 %v683_v10, %v65_v35 }
   0xa   :  { %v103_v30 = vmax.f32 %v87_v23, 0.0  ;;  %v89_v50 = vadd.f32 %v683_v10, %v66_v36  ;;  %v75_v51 = vmul.f32 %v487_v43, %v672_v5  ;;  %v96_v52 = vadd.f32 %v683_v10, %v73_v38 }
   0xb   :  { %568 = vmatpush3.bf16.msra.mxu0 %v613_v2  ;;  %605 = vmatpush3.bf16.msra.mxu1 %v613_v2  ;;  %v110_v33 = vmax.f32 %v94_v26, 0.0  ;;  %v111_v34 = vmax.f32 %v95_v27, 0.0  ;;  %v97_v53 = vadd.f32 %v683_v10, %v74_v39  ;;  %v76_v54 = vmul.f32 %v488_v46, %v672_v5 }
   0xc   :  { %569 = vmatprep.subr.bf16.mxu0 %v614_v3  ;;  %598 = vmatprep.subr.bf16.mxu1 %v614_v3  ;;  %v118_v37 = vpack.c.bf16 %v103_v30, %v102_v29  ;;  %v475_v55 = vunpack.c.l.bf16 %v535_v44  ;;  %v90_v56 = vadd.f32 %v683_v10, %v67_v42  ;;  %v476_v57 = vunpack.c.h.bf16 %v535_v44 }
   0xd   :  { %v122_v41 = vpack.c.bf16 %v111_v34, %v110_v33  ;;  %v491_v58 = vunpack.c.l.bf16 %v539_v47  ;;  %v492_v59 = vunpack.c.h.bf16 %v539_v47  ;;  %v91_v60 = vadd.f32 %v683_v10, %v68_v45  ;;  %v428_v33 = vld [vmem:[%s779_s5] ss:$0 sm:$0xff] }
   0xe   :  { %579 = vmatprep.mubr.bf16.mxu0 %v118_v37  ;;  %v98_v61 = vadd.f32 %v683_v10, %v75_v51  ;;  %v99_v62 = vadd.f32 %v683_v10, %v76_v54  ;;  %v104_v0 = vmax.f32 %v88_v49, 0.0  ;;  %v105_v1 = vmax.f32 %v89_v50, 0.0 }
   0xf   :  { %570 = vmatpush3.bf16.msra.mxu0 %v614_v3  ;;  %606 = vmatpush3.bf16.msra.mxu1 %v614_v3  ;;  %v112_v2 = vmax.f32 %v96_v52, 0.0  ;;  %v113_v3 = vmax.f32 %v97_v53, 0.0  ;;  %v69_v4 = vmul.f32 %v475_v55, %v672_v5  ;;  %v70_v6 = vmul.f32 %v476_v57, %v672_v5 }
  0x10   :  { %571 = vmatprep.subr.bf16.mxu0 %v615_v17  ;;  %599 = vmatprep.subr.bf16.mxu1 %v615_v17  ;;  %v77_v7 = vmul.f32 %v491_v58, %v672_v5  ;;  %v78_v8 = vmul.f32 %v492_v59, %v672_v5  ;;  %v106_v9 = vmax.f32 %v90_v56, 0.0  ;;  %v107_v11 = vmax.f32 %v91_v60, 0.0 }
  0x11   :  { %587 = vmatprep.mubr.bf16.mxu1 %v122_v41  ;;  %v114_v12 = vmax.f32 %v98_v61, 0.0  ;;  %v115_v13 = vmax.f32 %v99_v62, 0.0  ;;  %v119_v14 = vpack.c.bf16 %v105_v1, %v104_v0  ;;  %v123_v15 = vpack.c.bf16 %v113_v3, %v112_v2 }
  0x12   :  { %v92_v16 = vadd.f32 %v683_v10, %v69_v4  ;;  %v100_v18 = vadd.f32 %v683_v10, %v77_v7  ;;  %v101_v19 = vadd.f32 %v683_v10, %v78_v8  ;;  %v120_v5 = vpack.c.bf16 %v107_v11, %v106_v9 }
  0x13   :  { %572 = vmatpush3.bf16.msra.mxu0 %v615_v17  ;;  %607 = vmatpush3.bf16.msra.mxu1 %v615_v17  ;;  %v93_v17 = vadd.f32 %v683_v10, %v70_v6  ;;  %v124_v20 = vpack.c.bf16 %v115_v13, %v114_v12  ;;  %v427_v10 = vld [vmem:[%s778_s4] ss:$0 sm:$0xff] }
  0x14   :  { %573 = vmatprep.subr.bf16.mxu0 %v616_v32  ;;  %600 = vmatprep.subr.bf16.mxu1 %v616_v32  ;;  %v108_v21 = vmax.f32 %v92_v16, 0.0  ;;  %v116_v23 = vmax.f32 %v100_v18, 0.0  ;;  %v117_v24 = vmax.f32 %v101_v19, 0.0 }
  0x15   :  { %v109_v22 = vmax.f32 %v93_v17, 0.0 }
  0x16   :  { %v125_v26 = vpack.c.bf16 %v117_v24, %v116_v23 }
  0x17   :  { %574 = vmatpush3.bf16.msra.mxu0 %v616_v32  ;;  %608 = vmatpush3.bf16.msra.mxu1 %v616_v32  ;;  %v121_v25 = vpack.c.bf16 %v109_v22, %v108_v21 }
  0x18   :  { %575 = vmatprep.subr.bf16.mxu0 %v617_v48  ;;  %601 = vmatprep.subr.bf16.mxu1 %v617_v48 }
  0x1b   :  { %576 = vmatpush3.bf16.msra.mxu0 %v617_v48  ;;  %609 = vmatpush3.bf16.msra.mxu1 %v617_v48 }
  0x1c   :  { %577 = vmatprep.subr.bf16.mxu0 %v618_v63  ;;  %602 = vmatprep.subr.bf16.mxu1 %v618_v63 }
  0x1f   :  { %578 = vmatpush3.bf16.msra.mxu0 %v618_v63  ;;  %610 = vmatpush3.bf16.msra.mxu1 %v618_v63 }
  0x22   :  { %580 = vmatmul.mubr.bf16.vlgmr.msra.gmra.mrb[0].mxu0 %v119_v14  ;;  %588 = vmatmul.mubr.bf16.vlgmr.msra.gmra.mrb[0].mxu1 %v123_v15 }
  0x23   :  { %583 = vmatprep.mubr.bf16.mxu0 %v120_v5  ;;  %591 = vmatprep.mubr.bf16.mxu1 %v124_v20 }
  0x2a   :  { %584 = vmatmul.mubr.bf16.gmra.mrb[4].mxu0 %v121_v25  ;;  %592 = vmatmul.mubr.bf16.gmra.mrb[4].mxu1 %v125_v26 }
  0xf5   :  { %v581_v27 = vpop.f32.mrb[0].mxu0  ;;  %v589_v28 = vpop.f32.mrb[0].mxu1 }
  0xf6   :  { %v296_v29 = vmul.f32 %v581_v27, %v427_v10  ;;  %v304_v30 = vmul.f32 %v589_v28, %v427_v10  ;;  %v224_v31 = vpop.f32.mrb[1].mxu0  ;;  %v256_v32 = vpop.f32.mrb[1].mxu1 }
  0xf7   :  { %v294_v34 = vmul.f32 %v427_v10, %v224_v31  ;;  %v302_v35 = vmul.f32 %v427_v10, %v256_v32  ;;  %v582_v36 = vpop.f32.mrb[2].mxu0  ;;  %v590_v37 = vpop.f32.mrb[2].mxu1 }
  0xf8   :  { %v297_v38 = vmul.f32 %v582_v36, %v427_v10  ;;  %v305_v39 = vmul.f32 %v590_v37, %v427_v10  ;;  %v227_v40 = vpop.f32.mrb[3].mxu0  ;;  %v259_v41 = vpop.f32.mrb[3].mxu1  ;;  %v319_v44 = vadd.f32 %v428_v33, %v296_v29  ;;  %v327_v45 = vadd.f32 %v428_v33, %v304_v30 }
  0xf9   :  { %v295_v42 = vmul.f32 %v427_v10, %v227_v40  ;;  %v303_v43 = vmul.f32 %v427_v10, %v259_v41  ;;  %v317_v48 = vadd.f32 %v428_v33, %v294_v34  ;;  %v325_v49 = vadd.f32 %v428_v33, %v302_v35 }
  0xfa   :  { %v320_v46 = vadd.f32 %v428_v33, %v297_v38  ;;  %v328_v47 = vadd.f32 %v428_v33, %v305_v39 }
  0xfb   :  { %v318_v50 = vadd.f32 %v428_v33, %v295_v42  ;;  %v326_v51 = vadd.f32 %v428_v33, %v303_v43 }
  0xfc   :  { %v501_v52 = vpack.c.bf16 %v320_v46, %v319_v44  ;;  %v521_v53 = vpack.c.bf16 %v328_v47, %v327_v45 }
  0xfd   :  { %v496_v54 = vpack.c.bf16 %v318_v50, %v317_v48  ;;  %v516_v55 = vpack.c.bf16 %v326_v51, %v325_v49  ;;  %v585_v56 = vpop.f32.mrb[4].mxu0  ;;  %v593_v57 = vpop.f32.mrb[4].mxu1 }
  0xfe   :  { %540 = vst [vmem:[%s780_s6 + $0x8] sm:$0xff] %v501_v52   ;;  %544 = vst [vmem:[%s780_s6 + $0x28] sm:$0xff] %v521_v53   ;;  %v300_v58 = vmul.f32 %v585_v56, %v427_v10  ;;  %v308_v59 = vmul.f32 %v593_v57, %v427_v10  ;;  %v240_v60 = vpop.f32.mrb[5].mxu0  ;;  %v272_v61 = vpop.f32.mrb[5].mxu1 }
  0xff   :  { %497 = vst [vmem:[%s780_s6] sm:$0xff] %v496_v54   ;;  %543 = vst [vmem:[%s780_s6 + $0x20] sm:$0xff] %v516_v55   ;;  %v298_v62 = vmul.f32 %v427_v10, %v240_v60  ;;  %v306_v63 = vmul.f32 %v427_v10, %v272_v61  ;;  %v586_v0 = vpop.f32.mrb[6].mxu0  ;;  %v594_v1 = vpop.f32.mrb[6].mxu1 }
 0x100   :  { %v301_v2 = vmul.f32 %v586_v0, %v427_v10  ;;  %v309_v3 = vmul.f32 %v594_v1, %v427_v10  ;;  %v243_v4 = vpop.f32.mrb[7].mxu0  ;;  %v275_v6 = vpop.f32.mrb[7].mxu1  ;;  %v323_v9 = vadd.f32 %v428_v33, %v300_v58  ;;  %v331_v11 = vadd.f32 %v428_v33, %v308_v59 }
 0x101   :  { %v299_v7 = vmul.f32 %v427_v10, %v243_v4  ;;  %v307_v8 = vmul.f32 %v427_v10, %v275_v6  ;;  %v321_v14 = vadd.f32 %v428_v33, %v298_v62  ;;  %v329_v15 = vadd.f32 %v428_v33, %v306_v63 }
 0x102   :  { %v324_v12 = vadd.f32 %v428_v33, %v301_v2  ;;  %v332_v13 = vadd.f32 %v428_v33, %v309_v3 }
 0x103   :  { %v322_v16 = vadd.f32 %v428_v33, %v299_v7  ;;  %v330_v17 = vadd.f32 %v428_v33, %v307_v8 }
 0x104   :  { %v511_v18 = vpack.c.bf16 %v324_v12, %v323_v9  ;;  %v531_v19 = vpack.c.bf16 %v332_v13, %v331_v11 }
 0x105   :  { %v506_v5 = vpack.c.bf16 %v322_v16, %v321_v14  ;;  %v526_v20 = vpack.c.bf16 %v330_v17, %v329_v15 }
 0x106   :  { %542 = vst [vmem:[%s780_s6 + $0x18] sm:$0xff] %v511_v18   ;;  %546 = vst [vmem:[%s780_s6 + $0x38] sm:$0xff] %v531_v19  }
 0x107   :  { %541 = vst [vmem:[%s780_s6 + $0x10] sm:$0xff] %v506_v5   ;;  %545 = vst [vmem:[%s780_s6 + $0x30] sm:$0xff] %v526_v20  }

// kernel: densenet_forward.21
= control target key start
LH: loop header
LB: loop body
LE: loop exit
PB: predicated region body
PF: predicated region fallthrough
CT: control target
= control target key end

     0   :  { %vm40_vm0 = vcmask 130048   ;;  %vm89_vm1 = vcmask 125952   ;;  %s211_s0 = inlined_call_operand.vmem [shape: bf16[4,32,16], index: 0, kind: input, shape index: {}]   ;;  %s212_s1 = inlined_call_operand.vmem [shape: bf16[32,16], index: 1, kind: output, shape index: {}]  }
   0x1   :  { %v107_v0 = vld [vmem:[%s211_s0] sm:$0xff]   ;;  %v139_v1 = vld [vmem:[%s211_s0 + $0x10] sm:$0xff]   ;;  %v138_v12 = vld [vmem:[%s211_s0 + $0x8] sm:$0xff]  }
   0x2   :  { %v141_v2 = vld [vmem:[%s211_s0 + $0x20] sm:$0xff]   ;;  %v108_v3 = vunpack.c.l.bf16 %v107_v0  ;;  %v116_v4 = vunpack.c.l.bf16 %v139_v1  ;;  %v143_v6 = vld [vmem:[%s211_s0 + $0x30] sm:$0xff]   ;;  %v109_v7 = vunpack.c.h.bf16 %v107_v0  ;;  %v117_v9 = vunpack.c.h.bf16 %v139_v1  ;;  %v140_v13 = vld [vmem:[%s211_s0 + $0x18] sm:$0xff]  }
   0x3   :  { %v124_v5 = vunpack.c.l.bf16 %v141_v2  ;;  %v132_v8 = vunpack.c.l.bf16 %v143_v6  ;;  %v125_v10 = vunpack.c.h.bf16 %v141_v2  ;;  %v133_v11 = vunpack.c.h.bf16 %v143_v6  ;;  %v142_v18 = vld [vmem:[%s211_s0 + $0x28] sm:$0xff]   ;;  %v144_v19 = vld [vmem:[%s211_s0 + $0x38] sm:$0xff]  }
   0x4   :  { %v41_v14 = vsel %vm40_vm0, %v108_v3, 0.0  ;;  %v42_v15 = vsel %vm40_vm0, %v116_v4, 0.0  ;;  %v48_v17 = vsel %vm40_vm0, %v109_v7, 0.0  ;;  %v49_v22 = vsel %vm40_vm0, %v117_v9, 0.0 }
   0x5   :  { %v44_v16 = vsel %vm40_vm0, %v124_v5, 0.0  ;;  %v43_v20 = vadd.f32 %v42_v15, %v41_v14  ;;  %v46_v21 = vsel %vm40_vm0, %v132_v8, 0.0  ;;  %v51_v23 = vsel %vm40_vm0, %v125_v10, 0.0 }
   0x6   :  { %v50_v24 = vadd.f32 %v49_v22, %v48_v17  ;;  %v53_v25 = vsel %vm40_vm0, %v133_v11, 0.0  ;;  %v112_v26 = vunpack.c.l.bf16 %v138_v12  ;;  %v120_v27 = vunpack.c.l.bf16 %v140_v13 }
   0x7   :  { %v45_v28 = vadd.f32 %v44_v16, %v43_v20  ;;  %v128_v29 = vunpack.c.l.bf16 %v142_v18  ;;  %v136_v30 = vunpack.c.l.bf16 %v144_v19  ;;  %v113_v31 = vunpack.c.h.bf16 %v138_v12 }
   0x8   :  { %v52_v32 = vadd.f32 %v51_v23, %v50_v24  ;;  %v55_v33 = vsel %vm40_vm0, %v112_v26, 0.0  ;;  %v56_v34 = vsel %vm40_vm0, %v120_v27, 0.0  ;;  %v121_v35 = vunpack.c.h.bf16 %v140_v13 }
   0x9   :  { %v47_v36 = vadd.f32 %v46_v21, %v45_v28  ;;  %v57_v37 = vadd.f32 %v56_v34, %v55_v33  ;;  %v58_v38 = vsel %vm40_vm0, %v128_v29, 0.0  ;;  %v60_v39 = vsel %vm40_vm0, %v136_v30, 0.0 }
   0xa   :  { %v54_v40 = vadd.f32 %v53_v25, %v52_v32  ;;  %v129_v41 = vunpack.c.h.bf16 %v142_v18  ;;  %v137_v42 = vunpack.c.h.bf16 %v144_v19  ;;  %v62_v43 = vsel %vm40_vm0, %v113_v31, 0.0 }
   0xb   :  { %v69_v44 = vmul.f32 0.25, %v47_v36  ;;  %v59_v45 = vadd.f32 %v58_v38, %v57_v37  ;;  %v63_v46 = vsel %vm40_vm0, %v121_v35, 0.0 }
   0xc   :  { %v70_v47 = vmul.f32 0.25, %v54_v40  ;;  %v64_v48 = vadd.f32 %v63_v46, %v62_v43  ;;  %v65_v49 = vsel %vm40_vm0, %v129_v41, 0.0  ;;  %v67_v52 = vsel %vm40_vm0, %v137_v42, 0.0 }
   0xd   :  { %v102_v50 = vpack.c.bf16 %v69_v44, %v69_v44  ;;  %v61_v51 = vadd.f32 %v60_v39, %v59_v45 }
   0xe   :  { %v103_v53 = vpack.c.bf16 %v70_v47, %v70_v47  ;;  %v66_v54 = vadd.f32 %v65_v49, %v64_v48 }
   0xf   :  { %90 = vst.msk [vmem:[%s212_s1] sm:$0xf] %vm89_vm1, %v102_v50  ;;  %v71_v55 = vmul.f32 0.25, %v61_v51 }
  0x10   :  { %91 = vst.msk [vmem:[%s212_s1 + $0x4] sm:$0xf] %vm89_vm1, %v103_v53  ;;  %v68_v56 = vadd.f32 %v67_v52, %v66_v54 }
  0x11   :  { %v104_v57 = vpack.c.bf16 %v71_v55, %v71_v55 }
  0x12   :  { %v72_v58 = vmul.f32 0.25, %v68_v56 }
  0x13   :  { %92 = vst.msk [vmem:[%s212_s1 + $0x8] sm:$0xf] %vm89_vm1, %v104_v57 }
  0x14   :  { %v105_v59 = vpack.c.bf16 %v72_v58, %v72_v58 }
  0x16   :  { %93 = vst.msk [vmem:[%s212_s1 + $0xc] sm:$0xf] %vm89_vm1, %v105_v59 }

// kernel: densenet_forward.22
= control target key start
LH: loop header
LB: loop body
LE: loop exit
PB: predicated region body
PF: predicated region fallthrough
CT: control target
= control target key end

     0   :  { %s384_s1 = inlined_call_operand.vmem [shape: bf16[128,128], index: 1, kind: input, shape index: {}]   ;;  %s385_s0 = inlined_call_operand.vmem [shape: bf16[32,128], index: 0, kind: input, shape index: {}]   ;;  %s386_s2 = inlined_call_operand.vmem [shape: f32[1,128], index: 2, kind: input, shape index: {}]   ;;  %s387_s3 = inlined_call_operand.vmem [shape: f32[1,128], index: 3, kind: input, shape index: {}]   ;;  %s388_s4 = inlined_call_operand.vmem [shape: f32[1,128], index: 4, kind: input, shape index: {}]   ;;  %s389_s5 = inlined_call_operand.vmem [shape: f32[1,128], index: 5, kind: input, shape index: {}]   ;;  %s390_s6 = inlined_call_operand.vmem [shape: bf16[32,128], index: 6, kind: output, shape index: {}]  }
   0x1   :  { %v293_v0 = vld [vmem:[%s384_s1] sm:$0xff]   ;;  %v294_v1 = vld [vmem:[%s384_s1 + $0x8] sm:$0xff]   ;;  %v295_v2 = vld [vmem:[%s384_s1 + $0x10] sm:$0xff]  }
   0x2   :  { %273 = vmatprep.subr.bf16.mxu0 %v293_v0  ;;  %v296_v3 = vld [vmem:[%s384_s1 + $0x18] sm:$0xff]   ;;  %v244_v4 = vld [vmem:[%s385_s0] sm:$0xff]   ;;  %v261_v9 = vld [vmem:[%s385_s0 + $0x8] sm:$0xff]  }
   0x3   :  { %274 = vmatpush3.bf16.msra.mxu0 %v293_v0  ;;  %v223_v5 = vld [vmem:[%s386_s2] ss:$0 sm:$0xff]  ;;  %v245_v6 = vunpack.c.l.bf16 %v244_v4  ;;  %v246_v7 = vunpack.c.h.bf16 %v244_v4  ;;  %v249_v15 = vunpack.c.l.bf16 %v261_v9  ;;  %v250_v16 = vunpack.c.h.bf16 %v261_v9  ;;  %v298_v19 = vld [vmem:[%s384_s1 + $0x28] sm:$0xff]   ;;  %v299_v23 = vld [vmem:[%s384_s1 + $0x30] sm:$0xff]  }
   0x4   :  { %275 = vmatprep.subr.bf16.mxu0 %v294_v1  ;;  %v224_v8 = vld [vmem:[%s387_s3] ss:$0 sm:$0xff]  ;;  %v300_v26 = vld [vmem:[%s384_s1 + $0x38] sm:$0xff]  }
   0x5   :  { %v39_v10 = vmul.f32 %v245_v6, %v223_v5  ;;  %v40_v11 = vmul.f32 %v246_v7, %v223_v5  ;;  %v297_v12 = vld [vmem:[%s384_s1 + $0x20] sm:$0xff]   ;;  %v41_v21 = vmul.f32 %v249_v15, %v223_v5  ;;  %v42_v22 = vmul.f32 %v250_v16, %v223_v5 }
   0x6   :  { %v233_v30 = vld [vmem:[%s388_s4] ss:$0 sm:$0xff] }
   0x7   :  { %276 = vmatpush3.bf16.msra.mxu0 %v294_v1  ;;  %v50_v13 = vadd.f32 %v224_v8, %v39_v10  ;;  %v51_v14 = vadd.f32 %v224_v8, %v40_v11  ;;  %v52_v24 = vadd.f32 %v224_v8, %v41_v21  ;;  %v53_v25 = vadd.f32 %v224_v8, %v42_v22  ;;  %v234_v32 = vld [vmem:[%s389_s5] ss:$0 sm:$0xff] }
   0x8   :  { %277 = vmatprep.subr.bf16.mxu0 %v295_v2 }
   0x9   :  { %v54_v17 = vmax.f32 %v50_v13, 0.0  ;;  %v55_v18 = vmax.f32 %v51_v14, 0.0  ;;  %v56_v27 = vmax.f32 %v52_v24, 0.0  ;;  %v57_v28 = vmax.f32 %v53_v25, 0.0 }
   0xb   :  { %278 = vmatpush3.bf16.msra.mxu0 %v295_v2  ;;  %v58_v20 = vpack.c.bf16 %v55_v18, %v54_v17  ;;  %v59_v29 = vpack.c.bf16 %v57_v28, %v56_v27 }
   0xc   :  { %279 = vmatprep.subr.bf16.mxu0 %v296_v3 }
   0xd   :  { %289 = vmatprep.mubr.bf16.mxu0 %v58_v20 }
   0xf   :  { %280 = vmatpush3.bf16.msra.mxu0 %v296_v3 }
  0x10   :  { %281 = vmatprep.subr.bf16.mxu0 %v297_v12 }
  0x13   :  { %282 = vmatpush3.bf16.msra.mxu0 %v297_v12 }
  0x14   :  { %283 = vmatprep.subr.bf16.mxu0 %v298_v19 }
  0x17   :  { %284 = vmatpush3.bf16.msra.mxu0 %v298_v19 }
  0x18   :  { %285 = vmatprep.subr.bf16.mxu0 %v299_v23 }
  0x1b   :  { %286 = vmatpush3.bf16.msra.mxu0 %v299_v23 }
  0x1c   :  { %287 = vmatprep.subr.bf16.mxu0 %v300_v26 }
  0x1f   :  { %288 = vmatpush3.bf16.msra.mxu0 %v300_v26 }
  0x22   :  { %290 = vmatmul.mubr.bf16.vlgmr.msra.gmra.mrb[0].mxu0 %v59_v29 }
  0xf5   :  { %v291_v31 = vpop.f32.mrb[0].mxu0 }
  0xf6   :  { %v182_v33 = vmul.f32 %v291_v31, %v233_v30  ;;  %v158_v34 = vpop.f32.mrb[1].mxu0 }
  0xf7   :  { %v180_v35 = vmul.f32 %v233_v30, %v158_v34  ;;  %v292_v36 = vpop.f32.mrb[2].mxu0 }
  0xf8   :  { %v193_v37 = vadd.f32 %v234_v32, %v182_v33  ;;  %v183_v38 = vmul.f32 %v292_v36, %v233_v30  ;;  %v161_v39 = vpop.f32.mrb[3].mxu0 }
  0xf9   :  { %v191_v40 = vadd.f32 %v234_v32, %v180_v35  ;;  %v181_v41 = vmul.f32 %v233_v30, %v161_v39 }
  0xfa   :  { %v194_v42 = vadd.f32 %v234_v32, %v183_v38  ;;  %v197_v44 = vmax.f32 %v193_v37, 0.0 }
  0xfb   :  { %v192_v43 = vadd.f32 %v234_v32, %v181_v41  ;;  %v195_v46 = vmax.f32 %v191_v40, 0.0 }
  0xfc   :  { %v198_v45 = vmax.f32 %v194_v42, 0.0 }
  0xfd   :  { %v196_v47 = vmax.f32 %v192_v43, 0.0 }
  0xfe   :  { %v259_v48 = vpack.c.bf16 %v198_v45, %v197_v44 }
  0xff   :  { %v254_v49 = vpack.c.bf16 %v196_v47, %v195_v46 }
 0x100   :  { %262 = vst [vmem:[%s390_s6 + $0x8] sm:$0xff] %v259_v48  }
 0x101   :  { %255 = vst [vmem:[%s390_s6] sm:$0xff] %v254_v49  }

// kernel: densenet_forward.23
= control target key start
LH: loop header
LB: loop body
LE: loop exit
PB: predicated region body
PF: predicated region fallthrough
CT: control target
= control target key end

     0   :  { %s662_s1 = inlined_call_operand.vmem [shape: bf16[384,128], index: 1, kind: input, shape index: {}]   ;;  %s663_s0 = inlined_call_operand.vmem [shape: bf16[32,384], index: 0, kind: input, shape index: {}]   ;;  %s664_s2 = inlined_call_operand.vmem [shape: f32[1,128], index: 2, kind: input, shape index: {}]   ;;  %s665_s3 = inlined_call_operand.vmem [shape: f32[1,128], index: 3, kind: input, shape index: {}]   ;;  %s666_s4 = inlined_call_operand.vmem [shape: bf16[32,128], index: 4, kind: output, shape index: {}]  }
   0x1   :  { %v503_v0 = vld [vmem:[%s662_s1 + $0x40] sm:$0xff]   ;;  %v506_v3 = vld [vmem:[%s662_s1 + $0x48] sm:$0xff]   ;;  %v509_v6 = vld [vmem:[%s662_s1 + $0x50] sm:$0xff]  }
   0x2   :  { %v504_v1 = vld [vmem:[%s662_s1] sm:$0xff]   ;;  %445 = vmatprep.subr.bf16.mxu0 %v503_v0  ;;  %v507_v4 = vld [vmem:[%s662_s1 + $0x8] sm:$0xff]   ;;  %v510_v7 = vld [vmem:[%s662_s1 + $0x10] sm:$0xff]  }
   0x3   :  { %v505_v2 = vld [vmem:[%s662_s1 + $0x80] sm:$0xff]   ;;  %446 = vmatpush3.bf16.msra.mxu0 %v504_v1  ;;  %v508_v5 = vld [vmem:[%s662_s1 + $0x88] sm:$0xff]   ;;  %v511_v8 = vld [vmem:[%s662_s1 + $0x90] sm:$0xff]  }
   0x4   :  { %483 = vmatprep.subr.bf16.mxu1 %v505_v2  ;;  %447 = vmatprep.subr.bf16.mxu0 %v506_v3  ;;  %v512_v9 = vld [vmem:[%s662_s1 + $0x58] sm:$0xff]   ;;  %v515_v12 = vld [vmem:[%s662_s1 + $0x60] sm:$0xff]   ;;  %v518_v15 = vld [vmem:[%s662_s1 + $0x68] sm:$0xff]  }
   0x5   :  { %484 = vmatpush3.bf16.msra.mxu1 %v505_v2  ;;  %v513_v10 = vld [vmem:[%s662_s1 + $0x18] sm:$0xff]   ;;  %v517_v13 = vld [vmem:[%s662_s1 + $0xa0] sm:$0xff]   ;;  %v520_v16 = vld [vmem:[%s662_s1 + $0xa8] sm:$0xff]  }
   0x6   :  { %485 = vmatprep.subr.bf16.mxu1 %v508_v5  ;;  %v514_v11 = vld [vmem:[%s662_s1 + $0x98] sm:$0xff]   ;;  %v516_v14 = vld [vmem:[%s662_s1 + $0x20] sm:$0xff]   ;;  %v519_v17 = vld [vmem:[%s662_s1 + $0x28] sm:$0xff]  }
   0x7   :  { %448 = vmatpush3.bf16.msra.mxu0 %v507_v4  ;;  %v521_v18 = vld [vmem:[%s662_s1 + $0x70] sm:$0xff]   ;;  %v524_v21 = vld [vmem:[%s662_s1 + $0x78] sm:$0xff]   ;;  %v527_v26 = vld [vmem:[%s663_s0] ss:$12 sps:$4 sm:$0xff]  }
   0x8   :  { %449 = vmatprep.subr.bf16.mxu0 %v509_v6  ;;  %v522_v19 = vld [vmem:[%s662_s1 + $0x30] sm:$0xff]   ;;  %v526_v22 = vld [vmem:[%s662_s1 + $0xb8] sm:$0xff]   ;;  %v531_v28 = vld [vmem:[%s663_s0 + $0x20] ss:$12 sps:$4 sm:$0xff]  }
   0x9   :  { %486 = vmatpush3.bf16.msra.mxu1 %v508_v5  ;;  %v523_v20 = vld [vmem:[%s662_s1 + $0xb0] sm:$0xff]   ;;  %v525_v25 = vld [vmem:[%s662_s1 + $0x38] sm:$0xff]   ;;  %v424_v37 = vld [vmem:[%s664_s2] ss:$0 sm:$0xff] }
   0xa   :  { %487 = vmatprep.subr.bf16.mxu1 %v511_v8  ;;  %v529_v23 = vld [vmem:[%s663_s0 + $0x4] ss:$12 sps:$4 sm:$0xff]   ;;  %v530_v24 = vld [vmem:[%s663_s0 + $0x8] ss:$12 sps:$4 sm:$0xff]   ;;  %v425_v44 = vld [vmem:[%s665_s3] ss:$0 sm:$0xff] }
   0xb   :  { %450 = vmatpush3.bf16.msra.mxu0 %v510_v7  ;;  %282 = vmatprep.mubr.bf16.mxu0 %v529_v23  ;;  %v532_v27 = vld [vmem:[%s663_s0 + $0x1c] ss:$12 sps:$4 sm:$0xff]   ;;  %v534_v29 = vld [vmem:[%s663_s0 + $0x18] ss:$12 sps:$4 sm:$0xff]  }
   0xc   :  { %451 = vmatprep.subr.bf16.mxu0 %v512_v9  ;;  %499 = vmatprep.mubr.bf16.mxu1 %v530_v24 }
   0xd   :  { %488 = vmatpush3.bf16.msra.mxu1 %v511_v8 }
   0xe   :  { %489 = vmatprep.subr.bf16.mxu1 %v514_v11 }
   0xf   :  { %452 = vmatpush3.bf16.msra.mxu0 %v513_v10 }
  0x10   :  { %453 = vmatprep.subr.bf16.mxu0 %v515_v12 }
  0x11   :  { %490 = vmatpush3.bf16.msra.mxu1 %v514_v11 }
  0x12   :  { %491 = vmatprep.subr.bf16.mxu1 %v517_v13 }
  0x13   :  { %454 = vmatpush3.bf16.msra.mxu0 %v516_v14 }
  0x14   :  { %455 = vmatprep.subr.bf16.mxu0 %v518_v15 }
  0x15   :  { %492 = vmatpush3.bf16.msra.mxu1 %v517_v13 }
  0x16   :  { %493 = vmatprep.subr.bf16.mxu1 %v520_v16 }
  0x17   :  { %456 = vmatpush3.bf16.msra.mxu0 %v519_v17 }
  0x18   :  { %457 = vmatprep.subr.bf16.mxu0 %v521_v18 }
  0x19   :  { %494 = vmatpush3.bf16.msra.mxu1 %v520_v16 }
  0x1a   :  { %495 = vmatprep.subr.bf16.mxu1 %v523_v20 }
  0x1b   :  { %458 = vmatpush3.bf16.msra.mxu0 %v522_v19 }
  0x1c   :  { %459 = vmatprep.subr.bf16.mxu0 %v524_v21 }
  0x1d   :  { %496 = vmatpush3.bf16.msra.mxu1 %v523_v20 }
  0x1e   :  { %497 = vmatprep.subr.bf16.mxu1 %v526_v22 }
  0x1f   :  { %460 = vmatpush3.bf16.msra.mxu0 %v525_v25 }
  0x21   :  { %498 = vmatpush3.bf16.msra.mxu1 %v526_v22 }
  0x22   :  { %283 = vmatmul.mubr.bf16.vlgmr.msra.gmra.mrb[0].mxu0 %v527_v26 }
  0x23   :  { %290 = vmatprep.mubr.bf16.mxu0 %v532_v27 }
  0x24   :  { %500 = vmatmul.mubr.bf16.vlgmr.msra.gmra.mrb[0].mxu1 %v531_v28 }
  0x2a   :  { %291 = vmatmul.mubr.bf16.gmra.mrb[4].mxu0 %v534_v29 }
  0xf5   :  { %v461_v30 = vpop.f32.mrb[0].mxu0 }
  0xf6   :  { %v462_v31 = vpop.f32.mrb[1].mxu0 }
  0xf7   :  { %v463_v32 = vadd.f32 %v462_v31, %v461_v30  ;;  %v464_v33 = vpop.f32.mrb[2].mxu0  ;;  %v501_v34 = vpop.f32.mrb[0].mxu1 }
  0xf8   :  { %v465_v35 = vpop.f32.mrb[3].mxu0  ;;  %v333_v36 = vpop.f32.mrb[1].mxu1 }
  0xf9   :  { %v466_v38 = vadd.f32 %v465_v35, %v464_v33  ;;  %v334_v39 = vadd.f32 %v463_v32, %v333_v36  ;;  %v502_v40 = vpop.f32.mrb[2].mxu1 }
  0xfa   :  { %v336_v41 = vpop.f32.mrb[3].mxu1 }
  0xfb   :  { %v355_v42 = vmul.f32 %v424_v37, %v334_v39  ;;  %v337_v43 = vadd.f32 %v466_v38, %v336_v41 }
  0xfd   :  { %v356_v45 = vmul.f32 %v424_v37, %v337_v43  ;;  %v467_v46 = vpop.f32.mrb[4].mxu0  ;;  %v366_v48 = vadd.f32 %v425_v44, %v355_v42 }
  0xfe   :  { %v468_v47 = vpop.f32.mrb[5].mxu0 }
  0xff   :  { %v367_v49 = vadd.f32 %v425_v44, %v356_v45  ;;  %v469_v50 = vadd.f32 %v468_v47, %v467_v46  ;;  %v470_v51 = vpop.f32.mrb[6].mxu0 }
 0x100   :  { %v471_v52 = vpop.f32.mrb[7].mxu0 }
 0x101   :  { %v437_v53 = vpack.c.bf16 %v367_v49, %v366_v48  ;;  %v342_v54 = vadd.f32 %v501_v34, %v469_v50  ;;  %v472_v55 = vadd.f32 %v471_v52, %v470_v51 }
 0x103   :  { %438 = vst [vmem:[%s666_s4] sm:$0xff] %v437_v53   ;;  %v357_v56 = vmul.f32 %v424_v37, %v342_v54  ;;  %v345_v57 = vadd.f32 %v502_v40, %v472_v55 }
 0x105   :  { %v358_v58 = vmul.f32 %v424_v37, %v345_v57  ;;  %v368_v59 = vadd.f32 %v425_v44, %v357_v56 }
 0x107   :  { %v369_v60 = vadd.f32 %v425_v44, %v358_v58 }
 0x109   :  { %v442_v61 = vpack.c.bf16 %v369_v60, %v368_v59 }
 0x10b   :  { %444 = vst [vmem:[%s666_s4 + $0x8] sm:$0xff] %v442_v61  }

// kernel: densenet_forward.26
= control target key start
LH: loop header
LB: loop body
LE: loop exit
PB: predicated region body
PF: predicated region fallthrough
CT: control target
= control target key end

     0   :  { %s259_s0 = inlined_call_operand.vmem [shape: bf16[16,8,128], index: 0, kind: input, shape index: {}]   ;;  %s260_s1 = inlined_call_operand.vmem [shape: f32[1,1,128], index: 1, kind: input, shape index: {}]   ;;  %s261_s2 = inlined_call_operand.vmem [shape: f32[1,1,128], index: 2, kind: input, shape index: {}]   ;;  %s262_s3 = inlined_call_operand.vmem [shape: f32[8,128], index: 3, kind: output, shape index: {}]  }
   0x1   :  { %v132_v0 = vld [vmem:[%s259_s0] sm:$0xff]   ;;  %v163_v1 = vld [vmem:[%s259_s0 + $0x8] sm:$0xff]   ;;  %v164_v6 = vld [vmem:[%s259_s0 + $0x10] sm:$0xff]  }
   0x2   :  { %v133_v2 = vunpack.c.l.bf16 %v132_v0  ;;  %v134_v3 = vunpack.c.h.bf16 %v132_v0  ;;  %v199_v4 = vld [vmem:[%s260_s1] ss:$0 sm:$0xff]  ;;  %v137_v5 = vunpack.c.l.bf16 %v163_v1  ;;  %v138_v7 = vunpack.c.h.bf16 %v163_v1  ;;  %v165_v13 = vld [vmem:[%s259_s0 + $0x18] sm:$0xff]   ;;  %v167_v28 = vld [vmem:[%s259_s0 + $0x28] sm:$0xff]  }
   0x3   :  { %v209_v10 = vld [vmem:[%s261_s2] ss:$0 sm:$0xff]  ;;  %v141_v11 = vunpack.c.l.bf16 %v164_v6  ;;  %v142_v14 = vunpack.c.h.bf16 %v164_v6  ;;  %v145_v18 = vunpack.c.l.bf16 %v165_v13  ;;  %v146_v21 = vunpack.c.h.bf16 %v165_v13  ;;  %v168_v38 = vld [vmem:[%s259_s0 + $0x30] sm:$0xff]   ;;  %v169_v49 = vld [vmem:[%s259_s0 + $0x38] sm:$0xff]  }
   0x4   :  { %v53_v8 = vmul.f32 %v133_v2, %v199_v4  ;;  %v54_v9 = vmul.f32 %v134_v3, %v199_v4  ;;  %v55_v12 = vmul.f32 %v137_v5, %v199_v4  ;;  %v56_v15 = vmul.f32 %v138_v7, %v199_v4  ;;  %v166_v22 = vld [vmem:[%s259_s0 + $0x20] sm:$0xff]  }
   0x5   :  { %v57_v19 = vmul.f32 %v141_v11, %v199_v4  ;;  %v58_v23 = vmul.f32 %v142_v14, %v199_v4  ;;  %v149_v27 = vunpack.c.l.bf16 %v166_v22  ;;  %v59_v29 = vmul.f32 %v145_v18, %v199_v4 }
   0x6   :  { %v76_v16 = vadd.f32 %v209_v10, %v53_v8  ;;  %v77_v17 = vadd.f32 %v209_v10, %v54_v9  ;;  %v78_v20 = vadd.f32 %v209_v10, %v55_v12  ;;  %v79_v24 = vadd.f32 %v209_v10, %v56_v15 }
   0x7   :  { %v80_v30 = vadd.f32 %v209_v10, %v57_v19  ;;  %v150_v32 = vunpack.c.h.bf16 %v166_v22  ;;  %v60_v33 = vmul.f32 %v146_v21, %v199_v4  ;;  %v81_v34 = vadd.f32 %v209_v10, %v58_v23 }
   0x8   :  { %v92_v25 = vmax.f32 %v76_v16, 0.0  ;;  %v93_v26 = vmax.f32 %v77_v17, 0.0  ;;  %v94_v31 = vmax.f32 %v78_v20, 0.0  ;;  %v95_v35 = vmax.f32 %v79_v24, 0.0 }
   0x9   :  { %v153_v37 = vunpack.c.l.bf16 %v167_v28  ;;  %v61_v39 = vmul.f32 %v149_v27, %v199_v4  ;;  %v82_v40 = vadd.f32 %v209_v10, %v59_v29  ;;  %v96_v41 = vmax.f32 %v80_v30, 0.0 }
   0xa   :  { %v108_v36 = vadd.f32 %v93_v26, %v92_v25  ;;  %v154_v43 = vunpack.c.h.bf16 %v167_v28  ;;  %v62_v44 = vmul.f32 %v150_v32, %v199_v4  ;;  %v83_v45 = vadd.f32 %v209_v10, %v60_v33 }
   0xb   :  { %v97_v46 = vmax.f32 %v81_v34, 0.0  ;;  %v157_v48 = vunpack.c.l.bf16 %v168_v38  ;;  %v63_v50 = vmul.f32 %v153_v37, %v199_v4  ;;  %v84_v51 = vadd.f32 %v209_v10, %v61_v39 }
   0xc   :  { %v109_v42 = vadd.f32 %v108_v36, %v94_v31  ;;  %v98_v52 = vmax.f32 %v82_v40, 0.0  ;;  %v158_v54 = vunpack.c.h.bf16 %v168_v38  ;;  %v64_v55 = vmul.f32 %v154_v43, %v199_v4 }
   0xd   :  { %v85_v56 = vadd.f32 %v209_v10, %v62_v44  ;;  %v99_v57 = vmax.f32 %v83_v45, 0.0  ;;  %v161_v59 = vunpack.c.l.bf16 %v169_v49  ;;  %v65_v60 = vmul.f32 %v157_v48, %v199_v4 }
   0xe   :  { %v110_v47 = vadd.f32 %v109_v42, %v95_v35  ;;  %v86_v61 = vadd.f32 %v209_v10, %v63_v50  ;;  %v100_v62 = vmax.f32 %v84_v51, 0.0  ;;  %v162_v0 = vunpack.c.h.bf16 %v169_v49 }
   0xf   :  { %v66_v1 = vmul.f32 %v158_v54, %v199_v4  ;;  %v87_v2 = vadd.f32 %v209_v10, %v64_v55  ;;  %v101_v3 = vmax.f32 %v85_v56, 0.0  ;;  %v67_v6 = vmul.f32 %v161_v59, %v199_v4 }
  0x10   :  { %v111_v53 = vadd.f32 %v110_v47, %v96_v41  ;;  %v88_v7 = vadd.f32 %v209_v10, %v65_v60  ;;  %v102_v8 = vmax.f32 %v86_v61, 0.0  ;;  %v68_v11 = vmul.f32 %v162_v0, %v199_v4 }
  0x11   :  { %v89_v12 = vadd.f32 %v209_v10, %v66_v1  ;;  %v103_v13 = vmax.f32 %v87_v2, 0.0  ;;  %v90_v15 = vadd.f32 %v209_v10, %v67_v6 }
  0x12   :  { %v112_v58 = vadd.f32 %v111_v53, %v97_v46  ;;  %v104_v16 = vmax.f32 %v88_v7, 0.0  ;;  %v91_v18 = vadd.f32 %v209_v10, %v68_v11 }
  0x13   :  { %v105_v19 = vmax.f32 %v89_v12, 0.0  ;;  %v106_v21 = vmax.f32 %v90_v15, 0.0 }
  0x14   :  { %v113_v63 = vadd.f32 %v112_v58, %v98_v52  ;;  %v107_v23 = vmax.f32 %v91_v18, 0.0 }
  0x16   :  { %v114_v5 = vadd.f32 %v113_v63, %v99_v57 }
  0x18   :  { %v115_v9 = vadd.f32 %v114_v5, %v100_v62 }
  0x1a   :  { %v116_v14 = vadd.f32 %v115_v9, %v101_v3 }
  0x1c   :  { %v117_v17 = vadd.f32 %v116_v14, %v102_v8 }
  0x1e   :  { %v118_v20 = vadd.f32 %v117_v17, %v103_v13 }
  0x20   :  { %v119_v22 = vadd.f32 %v118_v20, %v104_v16 }
  0x22   :  { %v120_v24 = vadd.f32 %v119_v22, %v105_v19 }
  0x24   :  { %v121_v25 = vadd.f32 %v120_v24, %v106_v21 }
  0x26   :  { %v122_v26 = vadd.f32 %v121_v25, %v107_v23 }
  0x28   :  { %v123_v27 = vmul.f32 0.0625, %v122_v26 }
  0x2a   :  { %124 = vst [vmem:[%s262_s3] sm:$0xff] %v123_v27 }

// kernel: densenet_forward.27
= control target key start
LH: loop header
LB: loop body
LE: loop exit
PB: predicated region body
PF: predicated region fallthrough
CT: control target
= control target key end

     0   :  { %v206_v0 = vmov 0.0   ;;  %vm207_vm0 = vmmov 0   ;;  %s272_s1 = inlined_call_operand.vmem [shape: bf16[128,128], index: 1, kind: input, shape index: {}]   ;;  %s273_s0 = inlined_call_operand.vmem [shape: bf16[16,128], index: 0, kind: input, shape index: {}]   ;;  %s274_s2 = inlined_call_operand.vmem [shape: f32[1,128], index: 2, kind: input, shape index: {}]   ;;  %s275_s3 = inlined_call_operand.vmem [shape: f32[1,128], index: 3, kind: input, shape index: {}]   ;;  %s276_s4 = inlined_call_operand.vmem [shape: f32[16,128], index: 4, kind: output, shape index: {}]  }
   0x1   :  { %175 = vmatprep.subr.bf16.mxu0 %v206_v0  ;;  %v197_v1 = vld [vmem:[%s272_s1] sm:$0xff]   ;;  %191 = vmatprep.mubr.msk.bf16.mxu0 %vm207_vm0, %v206_v0  ;;  %v198_v2 = vld [vmem:[%s272_s1 + $0x8] sm:$0xff]   ;;  %v199_v3 = vld [vmem:[%s272_s1 + $0x10] sm:$0xff]  }
   0x2   :  { %176 = vmatpush3.bf16.msra.mxu0 %v197_v1  ;;  %v200_v4 = vld [vmem:[%s272_s1 + $0x18] sm:$0xff]   ;;  %v201_v5 = vld [vmem:[%s272_s1 + $0x20] sm:$0xff]   ;;  %v202_v6 = vld [vmem:[%s272_s1 + $0x28] sm:$0xff]  }
   0x3   :  { %177 = vmatprep.subr.bf16.mxu0 %v206_v0  ;;  %v203_v7 = vld [vmem:[%s272_s1 + $0x30] sm:$0xff]   ;;  %v204_v8 = vld [vmem:[%s272_s1 + $0x38] sm:$0xff]   ;;  %v205_v9 = vld [vmem:[%s273_s0] sm:$0xff]  }
   0x4   :  { %v164_v10 = vld [vmem:[%s274_s2] ss:$0 sm:$0xff] }
   0x5   :  { %v165_v12 = vld [vmem:[%s275_s3] ss:$0 sm:$0xff] }
   0x6   :  { %178 = vmatpush3.bf16.msra.mxu0 %v198_v2 }
   0x7   :  { %179 = vmatprep.subr.bf16.mxu0 %v206_v0 }
   0xa   :  { %180 = vmatpush3.bf16.msra.mxu0 %v199_v3 }
   0xb   :  { %181 = vmatprep.subr.bf16.mxu0 %v206_v0 }
   0xe   :  { %182 = vmatpush3.bf16.msra.mxu0 %v200_v4 }
   0xf   :  { %183 = vmatprep.subr.bf16.mxu0 %v206_v0 }
  0x12   :  { %184 = vmatpush3.bf16.msra.mxu0 %v201_v5 }
  0x13   :  { %185 = vmatprep.subr.bf16.mxu0 %v206_v0 }
  0x16   :  { %186 = vmatpush3.bf16.msra.mxu0 %v202_v6 }
  0x17   :  { %187 = vmatprep.subr.bf16.mxu0 %v206_v0 }
  0x1a   :  { %188 = vmatpush3.bf16.msra.mxu0 %v203_v7 }
  0x1b   :  { %189 = vmatprep.subr.bf16.mxu0 %v206_v0 }
  0x1e   :  { %190 = vmatpush3.bf16.msra.mxu0 %v204_v8 }
  0x21   :  { %192 = vmatmul.mubr.bf16.vlgmr.msra.gmra.mrb[0].mxu0 %v205_v9 }
  0xf4   :  { %v124_v11 = vpop.f32.mrb[0].mxu0 }
  0xf5   :  { %v138_v13 = vmul.f32 %v164_v10, %v124_v11  ;;  %v193_v14 = vpop.f32.mrb[1].mxu0 }
  0xf6   :  { %v127_v15 = vpop.f32.mrb[2].mxu0 }
  0xf7   :  { %v147_v16 = vadd.f32 %v165_v12, %v138_v13  ;;  %v139_v17 = vmul.f32 %v164_v10, %v127_v15  ;;  %v194_v18 = vpop.f32.mrb[3].mxu0 }
  0xf9   :  { %149 = vst [vmem:[%s276_s4] sm:$0xff] %v147_v16  ;;  %v148_v19 = vadd.f32 %v165_v12, %v139_v17 }
  0xfb   :  { %150 = vst [vmem:[%s276_s4 + $0x8] sm:$0xff] %v148_v19 }

</bundles_post_ra>
